<compile_context>
chip_gen: v5e
topology: v5e:2x2
jax: 0.10.0
libtpu: 0.0.40
codegen_flags: <defaults>
</compile_context>

<pallas_src>
import jax
import jax.numpy as jnp
from jax.experimental import pallas as pl
from jax.experimental.pallas import tpu as pltpu

# ----------------- config (small, consistent with the forward pass) -----------------
STATE_SIZE = 8        # state.size(0)
ACTION_SIZE = 4
ENSEMBLE_SIZE = 2
N_CANDIDATES = 32
TOP_CANDIDATES = 8
PLAN_HORIZON = 4
OPT_ITERS = 2
HIDDEN = 32
EXPL_SCALE = 1.0
CLAMP_DELTAS = 20.0
MIN_VAR = 1e-3


# ------------------------------ kernel helpers ---------------------------------------
def _swish(h):
    return h * (1.0 / (1.0 + jnp.exp(-h)))


def _softplus(x):
    # numerically stable softplus (avoids exp overflow for large x)
    return jnp.maximum(x, 0.0) + jnp.log1p(jnp.exp(-jnp.abs(x)))


# --------------------------- fused rollout kernel ------------------------------------
def _cem_rollout_kernel(actions_ref, noise_ref, state_ref,
                        w1s_ref, w1a_ref, b1_ref,
                        w2m_ref, b2m_ref, w2v_ref, b2v_ref,
                        rw1_ref, rb1_ref, rw2_ref, rb2_ref,
                        returns_ref):
    """One optimisation iteration's rollout + reward + return accumulation.

    Layout (candidates N on the lane axis everywhere):
      actions_ref : (H, A, N)        noise_ref : (H*E, S, N)
      state_ref   : (S, 1)
      w1s_ref     : (E, HIDDEN, S)   w1a_ref   : (E, HIDDEN, A)   b1_ref  : (E, HIDDEN, 1)
      w2m_ref     : (E, S, HIDDEN)   b2m_ref   : (E, S, 1)
      w2v_ref     : (E, S, HIDDEN)   b2v_ref   : (E, S, 1)
      rw1_ref     : (HIDDEN, S)      rb1_ref   : (HIDDEN, 1)
      rw2_ref     : (HIDDEN, 1)      rb2_ref   : (1, 1)
      returns_ref : (1, N)
    """
    f32 = jnp.float32
    E, H, S, N = ENSEMBLE_SIZE, PLAN_HORIZON, STATE_SIZE, N_CANDIDATES

    # Load all (tiny) weights once; reused across the fully unrolled horizon.
    w1s = [w1s_ref[e] for e in range(E)]
    w1a = [w1a_ref[e] for e in range(E)]
    b1 = [b1_ref[e] for e in range(E)]
    w2m = [w2m_ref[e] for e in range(E)]
    b2m = [b2m_ref[e] for e in range(E)]
    w2v = [w2v_ref[e] for e in range(E)]
    b2v = [b2v_ref[e] for e in range(E)]
    rw1 = rw1_ref[...]
    rb1 = rb1_ref[...]
    rw2 = rw2_ref[...]
    rb2 = rb2_ref[...]

    # state.unsqueeze(0).unsqueeze(0).repeat(E, N, 1)  -> per-member (S, N) copies
    s0 = jnp.broadcast_to(state_ref[...], (S, N))
    states = [s0 for _ in range(E)]

    returns = jnp.zeros((1, N), f32)

    for t in range(H):
        a_t = actions_ref[t]                                       # (A, N)
        dmeans = []
        rew_t = jnp.zeros((1, N), f32)
        for e in range(E):
            s_e = states[e]                                        # (S, N)
            # dynamics model (first-layer weight split: no concat needed)
            h = (jnp.dot(w1s[e], s_e, preferred_element_type=f32)
                 + jnp.dot(w1a[e], a_t, preferred_element_type=f32)
                 + b1[e])                                          # (HIDDEN, N)
            h = _swish(h)
            dmean = jnp.dot(w2m[e], h, preferred_element_type=f32) + b2m[e]
            dmean = jnp.clip(dmean, -CLAMP_DELTAS, CLAMP_DELTAS)   # planner clamp
            lv = jnp.dot(w2v[e], h, preferred_element_type=f32) + b2v[e]
            var = _softplus(lv) + MIN_VAR                          # (S, N)

            # states[t+1] = states[t] + ensemble.sample(delta_mean, delta_var)
            eps = noise_ref[t * E + e]                             # (S, N)
            s_next = s_e + dmean + jnp.sqrt(var) * eps
            states[e] = s_next
            dmeans.append(dmean)

            # reward model (non-ensemble) on the post-transition state
            hr = _swish(jnp.dot(rw1, s_next, preferred_element_type=f32) + rb1)
            rew_t = rew_t + jnp.sum(hr * rw2, axis=0, keepdims=True) + rb2   # (1, N)

        # TODO(synk): exact InformationGain uses a nearest-neighbour entropy estimator
        # over (delta_means, delta_vars); here the exploration bonus is the ensemble
        # disagreement (variance of delta means across members) summed over state dims.
        dm_mean = sum(dmeans) * (1.0 / E)                          # (S, N)
        dm_var = sum((dm - dm_mean) ** 2 for dm in dmeans) * (1.0 / E)
        expl_t = jnp.sum(dm_var, axis=0, keepdims=True)            # (1, N)

        # returns += expl_bonus[t] + rewards[t].mean(over ensemble)
        returns = returns + EXPL_SCALE * expl_t + rew_t * (1.0 / E)

    # torch.where(torch.isnan(returns), 0, returns)
    returns = jnp.where(returns != returns, jnp.zeros_like(returns), returns)
    returns_ref[...] = returns


def cem_fused_rollout(state_col, actions, noise, ep, rp):
    """state_col (S,1), actions (H,A,N), noise (H*E,S,N) -> returns (1, N)."""
    return pl.pallas_call(
        _cem_rollout_kernel,
        out_shape=jax.ShapeDtypeStruct((1, N_CANDIDATES), jnp.float32),
        # no grid: single invocation, all operands resident in VMEM (total < 32 KB)
    )(actions, noise, state_col,
      ep["w1s_t"], ep["w1a_t"], ep["b1"],
      ep["w2m_t"], ep["b2m"], ep["w2v_t"], ep["b2v"],
      rp["w1_t"], rp["b1"], rp["w2"], rp["b2"])


# ------------------------------- planner glue ---------------------------------------
def cem_plan(state, eparams, rparams, key):
    S = state.shape[0]
    state_col = state.astype(jnp.float32).reshape(S, 1)

    # action mean / std kept in (H, A, 1) layout (candidates on the trailing axis)
    action_mean = jnp.zeros((PLAN_HORIZON, ACTION_SIZE, 1), jnp.float32)
    action_std = jnp.ones((PLAN_HORIZON, ACTION_SIZE, 1), jnp.float32)

    for _ in range(OPT_ITERS):
        key, k_act, k_eps = jax.random.split(key, 3)
        # actions = mean + std * N(0,1), sampled directly in (H, A, N) layout
        actions = action_mean + action_std * jax.random.normal(
            k_act, (PLAN_HORIZON, ACTION_SIZE, N_CANDIDATES), jnp.float32)
        # Gaussian transition noise for ensemble.sample, one draw per opt-iter
        noise = jax.random.normal(
            k_eps, (PLAN_HORIZON * ENSEMBLE_SIZE, STATE_SIZE, N_CANDIDATES),
            jnp.float32)

        # fused rollout + reward + exploration + return accumulation
        returns = cem_fused_rollout(state_col, actions, noise, eparams, rparams)[0]  # (N,)

        # ---- top-k refit ----
        _, topk = jax.lax.top_k(returns, TOP_CANDIDATES)
        best_actions = actions[:, :, topk]                          # (H, A, K)
        action_mean = jnp.mean(best_actions, axis=2, keepdims=True)
        # ddof=0 matches best_actions.std(unbiased=False) in the reference module
        action_std = jnp.std(best_actions, axis=2, keepdims=True)

    return action_mean[0, :, 0]                                     # (A,)


def init_params(key):
    """Stand-in ensemble dynamics + reward model params, stored pre-transposed
    for the candidates-on-lanes kernel layout."""
    ks = jax.random.split(key, 6)
    sc = 0.1
    eparams = dict(
        w1s_t=sc * jax.random.normal(ks[0], (ENSEMBLE_SIZE, HIDDEN, STATE_SIZE), jnp.float32),
        w1a_t=sc * jax.random.normal(ks[1], (ENSEMBLE_SIZE, HIDDEN, ACTION_SIZE), jnp.float32),
        b1=jnp.zeros((ENSEMBLE_SIZE, HIDDEN, 1), jnp.float32),
        w2m_t=sc * jax.random.normal(ks[2], (ENSEMBLE_SIZE, STATE_SIZE, HIDDEN), jnp.float32),
        b2m=jnp.zeros((ENSEMBLE_SIZE, STATE_SIZE, 1), jnp.float32),
        w2v_t=sc * jax.random.normal(ks[3], (ENSEMBLE_SIZE, STATE_SIZE, HIDDEN), jnp.float32),
        b2v=jnp.zeros((ENSEMBLE_SIZE, STATE_SIZE, 1), jnp.float32),
    )
    rparams = dict(
        w1_t=sc * jax.random.normal(ks[4], (HIDDEN, STATE_SIZE), jnp.float32),
        b1=jnp.zeros((HIDDEN, 1), jnp.float32),
        w2=sc * jax.random.normal(ks[5], (HIDDEN, 1), jnp.float32),
        b2=jnp.zeros((1, 1), jnp.float32),
    )
    return eparams, rparams


if __name__ == "__main__":
    key = jax.random.PRNGKey(0)
    key, k_p, k_s = jax.random.split(key, 3)
    eparams, rparams = init_params(k_p)
    state = jax.random.normal(k_s, (STATE_SIZE,), jnp.float32)

    # jit the whole plan so the wrapper glue (RNG, top-k, refit) is a single XLA
    # program around the two fused pallas_calls.
    action = jax.jit(cem_plan)(state, eparams, rparams, key)
    action = jax.block_until_ready(action)
    assert action.shape == (ACTION_SIZE,)
    assert bool(jnp.all(jnp.isfinite(action)))
    print("KERNEL_OK")
</pallas_src>

<mosaic_0001>
module attributes {stable_mosaic.version = 11 : i64} {
  func.func @_cem_rollout_kernel(%arg0: memref<4x4x32xf32, #tpu.memory_space<vmem>>, %arg1: memref<8x8x32xf32, #tpu.memory_space<vmem>>, %arg2: memref<8x1xf32, #tpu.memory_space<vmem>>, %arg3: memref<2x32x8xf32, #tpu.memory_space<vmem>>, %arg4: memref<2x32x4xf32, #tpu.memory_space<vmem>>, %arg5: memref<2x32x1xf32, #tpu.memory_space<vmem>>, %arg6: memref<2x8x32xf32, #tpu.memory_space<vmem>>, %arg7: memref<2x8x1xf32, #tpu.memory_space<vmem>>, %arg8: memref<2x8x32xf32, #tpu.memory_space<vmem>>, %arg9: memref<2x8x1xf32, #tpu.memory_space<vmem>>, %arg10: memref<32x8xf32, #tpu.memory_space<vmem>>, %arg11: memref<32x1xf32, #tpu.memory_space<vmem>>, %arg12: memref<32x1xf32, #tpu.memory_space<vmem>>, %arg13: memref<1x1xf32, #tpu.memory_space<vmem>>, %arg14: memref<1x32xf32, #tpu.memory_space<vmem>>) attributes {dimension_semantics = [], scalar_prefetch = 0 : i64, scratch_operands = 0 : i64, tpu.core_type = #tpu.core_type<tc>} {
    %c0 = arith.constant 0 : index
    %c0_0 = arith.constant 0 : index
    %c0_1 = arith.constant 0 : index
    %0 = vector.load %arg3[%c0, %c0_0, %c0_1] : memref<2x32x8xf32, #tpu.memory_space<vmem>>, vector<1x32x8xf32>
    %1 = vector.shape_cast %0 : vector<1x32x8xf32> to vector<32x8xf32>
    %c1 = arith.constant 1 : index
    %c0_2 = arith.constant 0 : index
    %c0_3 = arith.constant 0 : index
    %2 = vector.load %arg3[%c1, %c0_2, %c0_3] : memref<2x32x8xf32, #tpu.memory_space<vmem>>, vector<1x32x8xf32>
    %3 = vector.shape_cast %2 : vector<1x32x8xf32> to vector<32x8xf32>
    %c0_4 = arith.constant 0 : index
    %c0_5 = arith.constant 0 : index
    %c0_6 = arith.constant 0 : index
    %4 = vector.load %arg4[%c0_4, %c0_5, %c0_6] : memref<2x32x4xf32, #tpu.memory_space<vmem>>, vector<1x32x4xf32>
    %5 = vector.shape_cast %4 : vector<1x32x4xf32> to vector<32x4xf32>
    %c1_7 = arith.constant 1 : index
    %c0_8 = arith.constant 0 : index
    %c0_9 = arith.constant 0 : index
    %6 = vector.load %arg4[%c1_7, %c0_8, %c0_9] : memref<2x32x4xf32, #tpu.memory_space<vmem>>, vector<1x32x4xf32>
    %7 = vector.shape_cast %6 : vector<1x32x4xf32> to vector<32x4xf32>
    %c0_10 = arith.constant 0 : index
    %c0_11 = arith.constant 0 : index
    %c0_12 = arith.constant 0 : index
    %8 = vector.load %arg5[%c0_10, %c0_11, %c0_12] : memref<2x32x1xf32, #tpu.memory_space<vmem>>, vector<1x32x1xf32>
    %9 = vector.shape_cast %8 : vector<1x32x1xf32> to vector<32x1xf32>
    %c1_13 = arith.constant 1 : index
    %c0_14 = arith.constant 0 : index
    %c0_15 = arith.constant 0 : index
    %10 = vector.load %arg5[%c1_13, %c0_14, %c0_15] : memref<2x32x1xf32, #tpu.memory_space<vmem>>, vector<1x32x1xf32>
    %11 = vector.shape_cast %10 : vector<1x32x1xf32> to vector<32x1xf32>
    %c0_16 = arith.constant 0 : index
    %c0_17 = arith.constant 0 : index
    %c0_18 = arith.constant 0 : index
    %12 = vector.load %arg6[%c0_16, %c0_17, %c0_18] : memref<2x8x32xf32, #tpu.memory_space<vmem>>, vector<1x8x32xf32>
    %13 = vector.shape_cast %12 : vector<1x8x32xf32> to vector<8x32xf32>
    %c1_19 = arith.constant 1 : index
    %c0_20 = arith.constant 0 : index
    %c0_21 = arith.constant 0 : index
    %14 = vector.load %arg6[%c1_19, %c0_20, %c0_21] : memref<2x8x32xf32, #tpu.memory_space<vmem>>, vector<1x8x32xf32>
    %15 = vector.shape_cast %14 : vector<1x8x32xf32> to vector<8x32xf32>
    %c0_22 = arith.constant 0 : index
    %c0_23 = arith.constant 0 : index
    %c0_24 = arith.constant 0 : index
    %16 = vector.load %arg7[%c0_22, %c0_23, %c0_24] : memref<2x8x1xf32, #tpu.memory_space<vmem>>, vector<1x8x1xf32>
    %17 = vector.shape_cast %16 : vector<1x8x1xf32> to vector<8x1xf32>
    %c1_25 = arith.constant 1 : index
    %c0_26 = arith.constant 0 : index
    %c0_27 = arith.constant 0 : index
    %18 = vector.load %arg7[%c1_25, %c0_26, %c0_27] : memref<2x8x1xf32, #tpu.memory_space<vmem>>, vector<1x8x1xf32>
    %19 = vector.shape_cast %18 : vector<1x8x1xf32> to vector<8x1xf32>
    %c0_28 = arith.constant 0 : index
    %c0_29 = arith.constant 0 : index
    %c0_30 = arith.constant 0 : index
    %20 = vector.load %arg8[%c0_28, %c0_29, %c0_30] : memref<2x8x32xf32, #tpu.memory_space<vmem>>, vector<1x8x32xf32>
    %21 = vector.shape_cast %20 : vector<1x8x32xf32> to vector<8x32xf32>
    %c1_31 = arith.constant 1 : index
    %c0_32 = arith.constant 0 : index
    %c0_33 = arith.constant 0 : index
    %22 = vector.load %arg8[%c1_31, %c0_32, %c0_33] : memref<2x8x32xf32, #tpu.memory_space<vmem>>, vector<1x8x32xf32>
    %23 = vector.shape_cast %22 : vector<1x8x32xf32> to vector<8x32xf32>
    %c0_34 = arith.constant 0 : index
    %c0_35 = arith.constant 0 : index
    %c0_36 = arith.constant 0 : index
    %24 = vector.load %arg9[%c0_34, %c0_35, %c0_36] : memref<2x8x1xf32, #tpu.memory_space<vmem>>, vector<1x8x1xf32>
    %25 = vector.shape_cast %24 : vector<1x8x1xf32> to vector<8x1xf32>
    %c1_37 = arith.constant 1 : index
    %c0_38 = arith.constant 0 : index
    %c0_39 = arith.constant 0 : index
    %26 = vector.load %arg9[%c1_37, %c0_38, %c0_39] : memref<2x8x1xf32, #tpu.memory_space<vmem>>, vector<1x8x1xf32>
    %27 = vector.shape_cast %26 : vector<1x8x1xf32> to vector<8x1xf32>
    %c0_40 = arith.constant 0 : index
    %c0_41 = arith.constant 0 : index
    %28 = vector.load %arg10[%c0_40, %c0_41] : memref<32x8xf32, #tpu.memory_space<vmem>>, vector<32x8xf32>
    %c0_42 = arith.constant 0 : index
    %c0_43 = arith.constant 0 : index
    %29 = vector.load %arg11[%c0_42, %c0_43] : memref<32x1xf32, #tpu.memory_space<vmem>>, vector<32x1xf32>
    %c0_44 = arith.constant 0 : index
    %c0_45 = arith.constant 0 : index
    %30 = vector.load %arg12[%c0_44, %c0_45] : memref<32x1xf32, #tpu.memory_space<vmem>>, vector<32x1xf32>
    %c0_46 = arith.constant 0 : index
    %c0_47 = arith.constant 0 : index
    %31 = vector.load %arg13[%c0_46, %c0_47] : memref<1x1xf32, #tpu.memory_space<vmem>>, vector<1x1xf32>
    %c0_48 = arith.constant 0 : index
    %c0_49 = arith.constant 0 : index
    %32 = vector.load %arg2[%c0_48, %c0_49] : memref<8x1xf32, #tpu.memory_space<vmem>>, vector<8x1xf32>
    %33 = vector.shape_cast %32 : vector<8x1xf32> to vector<8x1xf32>
    %34 = vector.broadcast %33 : vector<8x1xf32> to vector<8x32xf32>
    %cst = arith.constant 0.000000e+00 : f32
    %35 = vector.broadcast %cst : f32 to vector<1x32xf32>
    %c0_50 = arith.constant 0 : index
    %c0_51 = arith.constant 0 : index
    %c0_52 = arith.constant 0 : index
    %36 = vector.load %arg0[%c0_50, %c0_51, %c0_52] : memref<4x4x32xf32, #tpu.memory_space<vmem>>, vector<1x4x32xf32>
    %37 = vector.shape_cast %36 : vector<1x4x32xf32> to vector<4x32xf32>
    %cst_53 = arith.constant 0.000000e+00 : f32
    %38 = vector.broadcast %cst_53 : f32 to vector<1x32xf32>
    %cst_54 = arith.constant dense<0.000000e+00> : vector<32x32xf32>
    %39 = tpu.matmul %1, %34, %cst_54 {dimension_numbers = #tpu.dot_dimension_numbers<[1], [0], [0], [1], [0, 0, 1, 1], [], []>} : vector<32x8xf32>, vector<8x32xf32>, vector<32x32xf32> -> vector<32x32xf32>
    %cst_55 = arith.constant dense<0.000000e+00> : vector<32x32xf32>
    %40 = tpu.matmul %5, %37, %cst_55 {dimension_numbers = #tpu.dot_dimension_numbers<[1], [0], [0], [1], [0, 0, 1, 1], [], []>} : vector<32x4xf32>, vector<4x32xf32>, vector<32x32xf32> -> vector<32x32xf32>
    %41 = arith.addf %39, %40 : vector<32x32xf32>
    %42 = vector.broadcast %9 : vector<32x1xf32> to vector<32x32xf32>
    %43 = arith.addf %41, %42 : vector<32x32xf32>
    %cst_56 = arith.constant 0.000000e+00 : f32
    %44 = vector.broadcast %cst_56 : f32 to vector<32x32xf32>
    %45 = arith.subf %44, %43 : vector<32x32xf32>
    %46 = math.exp %45 : vector<32x32xf32>
    %cst_57 = arith.constant 1.000000e+00 : f32
    %47 = vector.broadcast %cst_57 : f32 to vector<32x32xf32>
    %48 = arith.addf %47, %46 : vector<32x32xf32>
    %cst_58 = arith.constant 1.000000e+00 : f32
    %49 = vector.broadcast %cst_58 : f32 to vector<32x32xf32>
    %50 = arith.divf %49, %48 : vector<32x32xf32>
    %51 = arith.mulf %43, %50 : vector<32x32xf32>
    %cst_59 = arith.constant dense<0.000000e+00> : vector<8x32xf32>
    %52 = tpu.matmul %13, %51, %cst_59 {dimension_numbers = #tpu.dot_dimension_numbers<[1], [0], [0], [1], [0, 0, 1, 1], [], []>} : vector<8x32xf32>, vector<32x32xf32>, vector<8x32xf32> -> vector<8x32xf32>
    %53 = vector.broadcast %17 : vector<8x1xf32> to vector<8x32xf32>
    %54 = arith.addf %52, %53 : vector<8x32xf32>
    %cst_60 = arith.constant -2.000000e+01 : f32
    %cst_61 = arith.constant 2.000000e+01 : f32
    %55 = vector.broadcast %cst_60 : f32 to vector<8x32xf32>
    %56 = arith.maximumf %55, %54 : vector<8x32xf32>
    %57 = vector.broadcast %cst_61 : f32 to vector<8x32xf32>
    %58 = arith.minimumf %57, %56 : vector<8x32xf32>
    %cst_62 = arith.constant dense<0.000000e+00> : vector<8x32xf32>
    %59 = tpu.matmul %21, %51, %cst_62 {dimension_numbers = #tpu.dot_dimension_numbers<[1], [0], [0], [1], [0, 0, 1, 1], [], []>} : vector<8x32xf32>, vector<32x32xf32>, vector<8x32xf32> -> vector<8x32xf32>
    %60 = vector.broadcast %25 : vector<8x1xf32> to vector<8x32xf32>
    %61 = arith.addf %59, %60 : vector<8x32xf32>
    %cst_63 = arith.constant 0.000000e+00 : f32
    %62 = vector.broadcast %cst_63 : f32 to vector<8x32xf32>
    %63 = arith.maximumf %61, %62 : vector<8x32xf32>
    %64 = math.absf %61 : vector<8x32xf32>
    %cst_64 = arith.constant 0.000000e+00 : f32
    %65 = vector.broadcast %cst_64 : f32 to vector<8x32xf32>
    %66 = arith.subf %65, %64 : vector<8x32xf32>
    %67 = math.exp %66 : vector<8x32xf32>
    %68 = math.log1p %67 : vector<8x32xf32>
    %69 = arith.addf %63, %68 : vector<8x32xf32>
    %cst_65 = arith.constant 1.000000e-03 : f32
    %70 = vector.broadcast %cst_65 : f32 to vector<8x32xf32>
    %71 = arith.addf %69, %70 : vector<8x32xf32>
    %c0_66 = arith.constant 0 : index
    %c0_67 = arith.constant 0 : index
    %c0_68 = arith.constant 0 : index
    %72 = vector.load %arg1[%c0_66, %c0_67, %c0_68] : memref<8x8x32xf32, #tpu.memory_space<vmem>>, vector<1x8x32xf32>
    %73 = vector.shape_cast %72 : vector<1x8x32xf32> to vector<8x32xf32>
    %74 = arith.addf %34, %58 : vector<8x32xf32>
    %75 = math.sqrt %71 : vector<8x32xf32>
    %76 = arith.mulf %75, %73 : vector<8x32xf32>
    %77 = arith.addf %74, %76 : vector<8x32xf32>
    %cst_69 = arith.constant dense<0.000000e+00> : vector<32x32xf32>
    %78 = tpu.matmul %28, %77, %cst_69 {dimension_numbers = #tpu.dot_dimension_numbers<[1], [0], [0], [1], [0, 0, 1, 1], [], []>} : vector<32x8xf32>, vector<8x32xf32>, vector<32x32xf32> -> vector<32x32xf32>
    %79 = vector.broadcast %29 : vector<32x1xf32> to vector<32x32xf32>
    %80 = arith.addf %78, %79 : vector<32x32xf32>
    %cst_70 = arith.constant 0.000000e+00 : f32
    %81 = vector.broadcast %cst_70 : f32 to vector<32x32xf32>
    %82 = arith.subf %81, %80 : vector<32x32xf32>
    %83 = math.exp %82 : vector<32x32xf32>
    %cst_71 = arith.constant 1.000000e+00 : f32
    %84 = vector.broadcast %cst_71 : f32 to vector<32x32xf32>
    %85 = arith.addf %84, %83 : vector<32x32xf32>
    %cst_72 = arith.constant 1.000000e+00 : f32
    %86 = vector.broadcast %cst_72 : f32 to vector<32x32xf32>
    %87 = arith.divf %86, %85 : vector<32x32xf32>
    %88 = arith.mulf %80, %87 : vector<32x32xf32>
    %89 = vector.broadcast %30 : vector<32x1xf32> to vector<32x32xf32>
    %90 = arith.mulf %88, %89 : vector<32x32xf32>
    %cst_73 = arith.constant dense<0.000000e+00> : vector<32xf32>
    %91 = vector.multi_reduction <add>, %90, %cst_73 [0] : vector<32x32xf32> to vector<32xf32>
    %92 = vector.shape_cast %91 : vector<32xf32> to vector<1x32xf32>
    %93 = arith.addf %38, %92 : vector<1x32xf32>
    %94 = vector.broadcast %31 : vector<1x1xf32> to vector<1x32xf32>
    %95 = arith.addf %93, %94 : vector<1x32xf32>
    %cst_74 = arith.constant dense<0.000000e+00> : vector<32x32xf32>
    %96 = tpu.matmul %3, %34, %cst_74 {dimension_numbers = #tpu.dot_dimension_numbers<[1], [0], [0], [1], [0, 0, 1, 1], [], []>} : vector<32x8xf32>, vector<8x32xf32>, vector<32x32xf32> -> vector<32x32xf32>
    %cst_75 = arith.constant dense<0.000000e+00> : vector<32x32xf32>
    %97 = tpu.matmul %7, %37, %cst_75 {dimension_numbers = #tpu.dot_dimension_numbers<[1], [0], [0], [1], [0, 0, 1, 1], [], []>} : vector<32x4xf32>, vector<4x32xf32>, vector<32x32xf32> -> vector<32x32xf32>
    %98 = arith.addf %96, %97 : vector<32x32xf32>
    %99 = vector.broadcast %11 : vector<32x1xf32> to vector<32x32xf32>
    %100 = arith.addf %98, %99 : vector<32x32xf32>
    %cst_76 = arith.constant 0.000000e+00 : f32
    %101 = vector.broadcast %cst_76 : f32 to vector<32x32xf32>
    %102 = arith.subf %101, %100 : vector<32x32xf32>
    %103 = math.exp %102 : vector<32x32xf32>
    %cst_77 = arith.constant 1.000000e+00 : f32
    %104 = vector.broadcast %cst_77 : f32 to vector<32x32xf32>
    %105 = arith.addf %104, %103 : vector<32x32xf32>
    %cst_78 = arith.constant 1.000000e+00 : f32
    %106 = vector.broadcast %cst_78 : f32 to vector<32x32xf32>
    %107 = arith.divf %106, %105 : vector<32x32xf32>
    %108 = arith.mulf %100, %107 : vector<32x32xf32>
    %cst_79 = arith.constant dense<0.000000e+00> : vector<8x32xf32>
    %109 = tpu.matmul %15, %108, %cst_79 {dimension_numbers = #tpu.dot_dimension_numbers<[1], [0], [0], [1], [0, 0, 1, 1], [], []>} : vector<8x32xf32>, vector<32x32xf32>, vector<8x32xf32> -> vector<8x32xf32>
    %110 = vector.broadcast %19 : vector<8x1xf32> to vector<8x32xf32>
    %111 = arith.addf %109, %110 : vector<8x32xf32>
    %cst_80 = arith.constant -2.000000e+01 : f32
    %cst_81 = arith.constant 2.000000e+01 : f32
    %112 = vector.broadcast %cst_80 : f32 to vector<8x32xf32>
    %113 = arith.maximumf %112, %111 : vector<8x32xf32>
    %114 = vector.broadcast %cst_81 : f32 to vector<8x32xf32>
    %115 = arith.minimumf %114, %113 : vector<8x32xf32>
    %cst_82 = arith.constant dense<0.000000e+00> : vector<8x32xf32>
    %116 = tpu.matmul %23, %108, %cst_82 {dimension_numbers = #tpu.dot_dimension_numbers<[1], [0], [0], [1], [0, 0, 1, 1], [], []>} : vector<8x32xf32>, vector<32x32xf32>, vector<8x32xf32> -> vector<8x32xf32>
    %117 = vector.broadcast %27 : vector<8x1xf32> to vector<8x32xf32>
    %118 = arith.addf %116, %117 : vector<8x32xf32>
    %cst_83 = arith.constant 0.000000e+00 : f32
    %119 = vector.broadcast %cst_83 : f32 to vector<8x32xf32>
    %120 = arith.maximumf %118, %119 : vector<8x32xf32>
    %121 = math.absf %118 : vector<8x32xf32>
    %cst_84 = arith.constant 0.000000e+00 : f32
    %122 = vector.broadcast %cst_84 : f32 to vector<8x32xf32>
    %123 = arith.subf %122, %121 : vector<8x32xf32>
    %124 = math.exp %123 : vector<8x32xf32>
    %125 = math.log1p %124 : vector<8x32xf32>
    %126 = arith.addf %120, %125 : vector<8x32xf32>
    %cst_85 = arith.constant 1.000000e-03 : f32
    %127 = vector.broadcast %cst_85 : f32 to vector<8x32xf32>
    %128 = arith.addf %126, %127 : vector<8x32xf32>
    %c1_86 = arith.constant 1 : index
    %c0_87 = arith.constant 0 : index
    %c0_88 = arith.constant 0 : index
    %129 = vector.load %arg1[%c1_86, %c0_87, %c0_88] : memref<8x8x32xf32, #tpu.memory_space<vmem>>, vector<1x8x32xf32>
    %130 = vector.shape_cast %129 : vector<1x8x32xf32> to vector<8x32xf32>
    %131 = arith.addf %34, %115 : vector<8x32xf32>
    %132 = math.sqrt %128 : vector<8x32xf32>
    %133 = arith.mulf %132, %130 : vector<8x32xf32>
    %134 = arith.addf %131, %133 : vector<8x32xf32>
    %cst_89 = arith.constant dense<0.000000e+00> : vector<32x32xf32>
    %135 = tpu.matmul %28, %134, %cst_89 {dimension_numbers = #tpu.dot_dimension_numbers<[1], [0], [0], [1], [0, 0, 1, 1], [], []>} : vector<32x8xf32>, vector<8x32xf32>, vector<32x32xf32> -> vector<32x32xf32>
    %136 = vector.broadcast %29 : vector<32x1xf32> to vector<32x32xf32>
    %137 = arith.addf %135, %136 : vector<32x32xf32>
    %cst_90 = arith.constant 0.000000e+00 : f32
    %138 = vector.broadcast %cst_90 : f32 to vector<32x32xf32>
    %139 = arith.subf %138, %137 : vector<32x32xf32>
    %140 = math.exp %139 : vector<32x32xf32>
    %cst_91 = arith.constant 1.000000e+00 : f32
    %141 = vector.broadcast %cst_91 : f32 to vector<32x32xf32>
    %142 = arith.addf %141, %140 : vector<32x32xf32>
    %cst_92 = arith.constant 1.000000e+00 : f32
    %143 = vector.broadcast %cst_92 : f32 to vector<32x32xf32>
    %144 = arith.divf %143, %142 : vector<32x32xf32>
    %145 = arith.mulf %137, %144 : vector<32x32xf32>
    %146 = vector.broadcast %30 : vector<32x1xf32> to vector<32x32xf32>
    %147 = arith.mulf %145, %146 : vector<32x32xf32>
    %cst_93 = arith.constant dense<0.000000e+00> : vector<32xf32>
    %148 = vector.multi_reduction <add>, %147, %cst_93 [0] : vector<32x32xf32> to vector<32xf32>
    %149 = vector.shape_cast %148 : vector<32xf32> to vector<1x32xf32>
    %150 = arith.addf %95, %149 : vector<1x32xf32>
    %151 = vector.broadcast %31 : vector<1x1xf32> to vector<1x32xf32>
    %152 = arith.addf %150, %151 : vector<1x32xf32>
    %cst_94 = arith.constant 0.000000e+00 : f32
    %153 = vector.broadcast %cst_94 : f32 to vector<8x32xf32>
    %154 = arith.addf %153, %58 : vector<8x32xf32>
    %155 = arith.addf %154, %115 : vector<8x32xf32>
    %cst_95 = arith.constant 5.000000e-01 : f32
    %156 = vector.broadcast %cst_95 : f32 to vector<8x32xf32>
    %157 = arith.mulf %155, %156 : vector<8x32xf32>
    %158 = arith.subf %58, %157 : vector<8x32xf32>
    %159 = arith.mulf %158, %158 : vector<8x32xf32>
    %cst_96 = arith.constant 0.000000e+00 : f32
    %160 = vector.broadcast %cst_96 : f32 to vector<8x32xf32>
    %161 = arith.addf %160, %159 : vector<8x32xf32>
    %162 = arith.subf %115, %157 : vector<8x32xf32>
    %163 = arith.mulf %162, %162 : vector<8x32xf32>
    %164 = arith.addf %161, %163 : vector<8x32xf32>
    %cst_97 = arith.constant 5.000000e-01 : f32
    %165 = vector.broadcast %cst_97 : f32 to vector<8x32xf32>
    %166 = arith.mulf %164, %165 : vector<8x32xf32>
    %cst_98 = arith.constant dense<0.000000e+00> : vector<32xf32>
    %167 = vector.multi_reduction <add>, %166, %cst_98 [0] : vector<8x32xf32> to vector<32xf32>
    %168 = vector.shape_cast %167 : vector<32xf32> to vector<1x32xf32>
    %cst_99 = arith.constant 1.000000e+00 : f32
    %169 = vector.broadcast %cst_99 : f32 to vector<1x32xf32>
    %170 = arith.mulf %169, %168 : vector<1x32xf32>
    %171 = arith.addf %35, %170 : vector<1x32xf32>
    %cst_100 = arith.constant 5.000000e-01 : f32
    %172 = vector.broadcast %cst_100 : f32 to vector<1x32xf32>
    %173 = arith.mulf %152, %172 : vector<1x32xf32>
    %174 = arith.addf %171, %173 : vector<1x32xf32>
    %c1_101 = arith.constant 1 : index
    %c0_102 = arith.constant 0 : index
    %c0_103 = arith.constant 0 : index
    %175 = vector.load %arg0[%c1_101, %c0_102, %c0_103] : memref<4x4x32xf32, #tpu.memory_space<vmem>>, vector<1x4x32xf32>
    %176 = vector.shape_cast %175 : vector<1x4x32xf32> to vector<4x32xf32>
    %cst_104 = arith.constant 0.000000e+00 : f32
    %177 = vector.broadcast %cst_104 : f32 to vector<1x32xf32>
    %cst_105 = arith.constant dense<0.000000e+00> : vector<32x32xf32>
    %178 = tpu.matmul %1, %77, %cst_105 {dimension_numbers = #tpu.dot_dimension_numbers<[1], [0], [0], [1], [0, 0, 1, 1], [], []>} : vector<32x8xf32>, vector<8x32xf32>, vector<32x32xf32> -> vector<32x32xf32>
    %cst_106 = arith.constant dense<0.000000e+00> : vector<32x32xf32>
    %179 = tpu.matmul %5, %176, %cst_106 {dimension_numbers = #tpu.dot_dimension_numbers<[1], [0], [0], [1], [0, 0, 1, 1], [], []>} : vector<32x4xf32>, vector<4x32xf32>, vector<32x32xf32> -> vector<32x32xf32>
    %180 = arith.addf %178, %179 : vector<32x32xf32>
    %181 = vector.broadcast %9 : vector<32x1xf32> to vector<32x32xf32>
    %182 = arith.addf %180, %181 : vector<32x32xf32>
    %cst_107 = arith.constant 0.000000e+00 : f32
    %183 = vector.broadcast %cst_107 : f32 to vector<32x32xf32>
    %184 = arith.subf %183, %182 : vector<32x32xf32>
    %185 = math.exp %184 : vector<32x32xf32>
    %cst_108 = arith.constant 1.000000e+00 : f32
    %186 = vector.broadcast %cst_108 : f32 to vector<32x32xf32>
    %187 = arith.addf %186, %185 : vector<32x32xf32>
    %cst_109 = arith.constant 1.000000e+00 : f32
    %188 = vector.broadcast %cst_109 : f32 to vector<32x32xf32>
    %189 = arith.divf %188, %187 : vector<32x32xf32>
    %190 = arith.mulf %182, %189 : vector<32x32xf32>
    %cst_110 = arith.constant dense<0.000000e+00> : vector<8x32xf32>
    %191 = tpu.matmul %13, %190, %cst_110 {dimension_numbers = #tpu.dot_dimension_numbers<[1], [0], [0], [1], [0, 0, 1, 1], [], []>} : vector<8x32xf32>, vector<32x32xf32>, vector<8x32xf32> -> vector<8x32xf32>
    %192 = vector.broadcast %17 : vector<8x1xf32> to vector<8x32xf32>
    %193 = arith.addf %191, %192 : vector<8x32xf32>
    %cst_111 = arith.constant -2.000000e+01 : f32
    %cst_112 = arith.constant 2.000000e+01 : f32
    %194 = vector.broadcast %cst_111 : f32 to vector<8x32xf32>
    %195 = arith.maximumf %194, %193 : vector<8x32xf32>
    %196 = vector.broadcast %cst_112 : f32 to vector<8x32xf32>
    %197 = arith.minimumf %196, %195 : vector<8x32xf32>
    %cst_113 = arith.constant dense<0.000000e+00> : vector<8x32xf32>
    %198 = tpu.matmul %21, %190, %cst_113 {dimension_numbers = #tpu.dot_dimension_numbers<[1], [0], [0], [1], [0, 0, 1, 1], [], []>} : vector<8x32xf32>, vector<32x32xf32>, vector<8x32xf32> -> vector<8x32xf32>
    %199 = vector.broadcast %25 : vector<8x1xf32> to vector<8x32xf32>
    %200 = arith.addf %198, %199 : vector<8x32xf32>
    %cst_114 = arith.constant 0.000000e+00 : f32
    %201 = vector.broadcast %cst_114 : f32 to vector<8x32xf32>
    %202 = arith.maximumf %200, %201 : vector<8x32xf32>
    %203 = math.absf %200 : vector<8x32xf32>
    %cst_115 = arith.constant 0.000000e+00 : f32
    %204 = vector.broadcast %cst_115 : f32 to vector<8x32xf32>
    %205 = arith.subf %204, %203 : vector<8x32xf32>
    %206 = math.exp %205 : vector<8x32xf32>
    %207 = math.log1p %206 : vector<8x32xf32>
    %208 = arith.addf %202, %207 : vector<8x32xf32>
    %cst_116 = arith.constant 1.000000e-03 : f32
    %209 = vector.broadcast %cst_116 : f32 to vector<8x32xf32>
    %210 = arith.addf %208, %209 : vector<8x32xf32>
    %c2 = arith.constant 2 : index
    %c0_117 = arith.constant 0 : index
    %c0_118 = arith.constant 0 : index
    %211 = vector.load %arg1[%c2, %c0_117, %c0_118] : memref<8x8x32xf32, #tpu.memory_space<vmem>>, vector<1x8x32xf32>
    %212 = vector.shape_cast %211 : vector<1x8x32xf32> to vector<8x32xf32>
    %213 = arith.addf %77, %197 : vector<8x32xf32>
    %214 = math.sqrt %210 : vector<8x32xf32>
    %215 = arith.mulf %214, %212 : vector<8x32xf32>
    %216 = arith.addf %213, %215 : vector<8x32xf32>
    %cst_119 = arith.constant dense<0.000000e+00> : vector<32x32xf32>
    %217 = tpu.matmul %28, %216, %cst_119 {dimension_numbers = #tpu.dot_dimension_numbers<[1], [0], [0], [1], [0, 0, 1, 1], [], []>} : vector<32x8xf32>, vector<8x32xf32>, vector<32x32xf32> -> vector<32x32xf32>
    %218 = vector.broadcast %29 : vector<32x1xf32> to vector<32x32xf32>
    %219 = arith.addf %217, %218 : vector<32x32xf32>
    %cst_120 = arith.constant 0.000000e+00 : f32
    %220 = vector.broadcast %cst_120 : f32 to vector<32x32xf32>
    %221 = arith.subf %220, %219 : vector<32x32xf32>
    %222 = math.exp %221 : vector<32x32xf32>
    %cst_121 = arith.constant 1.000000e+00 : f32
    %223 = vector.broadcast %cst_121 : f32 to vector<32x32xf32>
    %224 = arith.addf %223, %222 : vector<32x32xf32>
    %cst_122 = arith.constant 1.000000e+00 : f32
    %225 = vector.broadcast %cst_122 : f32 to vector<32x32xf32>
    %226 = arith.divf %225, %224 : vector<32x32xf32>
    %227 = arith.mulf %219, %226 : vector<32x32xf32>
    %228 = vector.broadcast %30 : vector<32x1xf32> to vector<32x32xf32>
    %229 = arith.mulf %227, %228 : vector<32x32xf32>
    %cst_123 = arith.constant dense<0.000000e+00> : vector<32xf32>
    %230 = vector.multi_reduction <add>, %229, %cst_123 [0] : vector<32x32xf32> to vector<32xf32>
    %231 = vector.shape_cast %230 : vector<32xf32> to vector<1x32xf32>
    %232 = arith.addf %177, %231 : vector<1x32xf32>
    %233 = vector.broadcast %31 : vector<1x1xf32> to vector<1x32xf32>
    %234 = arith.addf %232, %233 : vector<1x32xf32>
    %cst_124 = arith.constant dense<0.000000e+00> : vector<32x32xf32>
    %235 = tpu.matmul %3, %134, %cst_124 {dimension_numbers = #tpu.dot_dimension_numbers<[1], [0], [0], [1], [0, 0, 1, 1], [], []>} : vector<32x8xf32>, vector<8x32xf32>, vector<32x32xf32> -> vector<32x32xf32>
    %cst_125 = arith.constant dense<0.000000e+00> : vector<32x32xf32>
    %236 = tpu.matmul %7, %176, %cst_125 {dimension_numbers = #tpu.dot_dimension_numbers<[1], [0], [0], [1], [0, 0, 1, 1], [], []>} : vector<32x4xf32>, vector<4x32xf32>, vector<32x32xf32> -> vector<32x32xf32>
    %237 = arith.addf %235, %236 : vector<32x32xf32>
    %238 = vector.broadcast %11 : vector<32x1xf32> to vector<32x32xf32>
    %239 = arith.addf %237, %238 : vector<32x32xf32>
    %cst_126 = arith.constant 0.000000e+00 : f32
    %240 = vector.broadcast %cst_126 : f32 to vector<32x32xf32>
    %241 = arith.subf %240, %239 : vector<32x32xf32>
    %242 = math.exp %241 : vector<32x32xf32>
    %cst_127 = arith.constant 1.000000e+00 : f32
    %243 = vector.broadcast %cst_127 : f32 to vector<32x32xf32>
    %244 = arith.addf %243, %242 : vector<32x32xf32>
    %cst_128 = arith.constant 1.000000e+00 : f32
    %245 = vector.broadcast %cst_128 : f32 to vector<32x32xf32>
    %246 = arith.divf %245, %244 : vector<32x32xf32>
    %247 = arith.mulf %239, %246 : vector<32x32xf32>
    %cst_129 = arith.constant dense<0.000000e+00> : vector<8x32xf32>
    %248 = tpu.matmul %15, %247, %cst_129 {dimension_numbers = #tpu.dot_dimension_numbers<[1], [0], [0], [1], [0, 0, 1, 1], [], []>} : vector<8x32xf32>, vector<32x32xf32>, vector<8x32xf32> -> vector<8x32xf32>
    %249 = vector.broadcast %19 : vector<8x1xf32> to vector<8x32xf32>
    %250 = arith.addf %248, %249 : vector<8x32xf32>
    %cst_130 = arith.constant -2.000000e+01 : f32
    %cst_131 = arith.constant 2.000000e+01 : f32
    %251 = vector.broadcast %cst_130 : f32 to vector<8x32xf32>
    %252 = arith.maximumf %251, %250 : vector<8x32xf32>
    %253 = vector.broadcast %cst_131 : f32 to vector<8x32xf32>
    %254 = arith.minimumf %253, %252 : vector<8x32xf32>
    %cst_132 = arith.constant dense<0.000000e+00> : vector<8x32xf32>
    %255 = tpu.matmul %23, %247, %cst_132 {dimension_numbers = #tpu.dot_dimension_numbers<[1], [0], [0], [1], [0, 0, 1, 1], [], []>} : vector<8x32xf32>, vector<32x32xf32>, vector<8x32xf32> -> vector<8x32xf32>
    %256 = vector.broadcast %27 : vector<8x1xf32> to vector<8x32xf32>
    %257 = arith.addf %255, %256 : vector<8x32xf32>
    %cst_133 = arith.constant 0.000000e+00 : f32
    %258 = vector.broadcast %cst_133 : f32 to vector<8x32xf32>
    %259 = arith.maximumf %257, %258 : vector<8x32xf32>
    %260 = math.absf %257 : vector<8x32xf32>
    %cst_134 = arith.constant 0.000000e+00 : f32
    %261 = vector.broadcast %cst_134 : f32 to vector<8x32xf32>
    %262 = arith.subf %261, %260 : vector<8x32xf32>
    %263 = math.exp %262 : vector<8x32xf32>
    %264 = math.log1p %263 : vector<8x32xf32>
    %265 = arith.addf %259, %264 : vector<8x32xf32>
    %cst_135 = arith.constant 1.000000e-03 : f32
    %266 = vector.broadcast %cst_135 : f32 to vector<8x32xf32>
    %267 = arith.addf %265, %266 : vector<8x32xf32>
    %c3 = arith.constant 3 : index
    %c0_136 = arith.constant 0 : index
    %c0_137 = arith.constant 0 : index
    %268 = vector.load %arg1[%c3, %c0_136, %c0_137] : memref<8x8x32xf32, #tpu.memory_space<vmem>>, vector<1x8x32xf32>
    %269 = vector.shape_cast %268 : vector<1x8x32xf32> to vector<8x32xf32>
    %270 = arith.addf %134, %254 : vector<8x32xf32>
    %271 = math.sqrt %267 : vector<8x32xf32>
    %272 = arith.mulf %271, %269 : vector<8x32xf32>
    %273 = arith.addf %270, %272 : vector<8x32xf32>
    %cst_138 = arith.constant dense<0.000000e+00> : vector<32x32xf32>
    %274 = tpu.matmul %28, %273, %cst_138 {dimension_numbers = #tpu.dot_dimension_numbers<[1], [0], [0], [1], [0, 0, 1, 1], [], []>} : vector<32x8xf32>, vector<8x32xf32>, vector<32x32xf32> -> vector<32x32xf32>
    %275 = vector.broadcast %29 : vector<32x1xf32> to vector<32x32xf32>
    %276 = arith.addf %274, %275 : vector<32x32xf32>
    %cst_139 = arith.constant 0.000000e+00 : f32
    %277 = vector.broadcast %cst_139 : f32 to vector<32x32xf32>
    %278 = arith.subf %277, %276 : vector<32x32xf32>
    %279 = math.exp %278 : vector<32x32xf32>
    %cst_140 = arith.constant 1.000000e+00 : f32
    %280 = vector.broadcast %cst_140 : f32 to vector<32x32xf32>
    %281 = arith.addf %280, %279 : vector<32x32xf32>
    %cst_141 = arith.constant 1.000000e+00 : f32
    %282 = vector.broadcast %cst_141 : f32 to vector<32x32xf32>
    %283 = arith.divf %282, %281 : vector<32x32xf32>
    %284 = arith.mulf %276, %283 : vector<32x32xf32>
    %285 = vector.broadcast %30 : vector<32x1xf32> to vector<32x32xf32>
    %286 = arith.mulf %284, %285 : vector<32x32xf32>
    %cst_142 = arith.constant dense<0.000000e+00> : vector<32xf32>
    %287 = vector.multi_reduction <add>, %286, %cst_142 [0] : vector<32x32xf32> to vector<32xf32>
    %288 = vector.shape_cast %287 : vector<32xf32> to vector<1x32xf32>
    %289 = arith.addf %234, %288 : vector<1x32xf32>
    %290 = vector.broadcast %31 : vector<1x1xf32> to vector<1x32xf32>
    %291 = arith.addf %289, %290 : vector<1x32xf32>
    %cst_143 = arith.constant 0.000000e+00 : f32
    %292 = vector.broadcast %cst_143 : f32 to vector<8x32xf32>
    %293 = arith.addf %292, %197 : vector<8x32xf32>
    %294 = arith.addf %293, %254 : vector<8x32xf32>
    %cst_144 = arith.constant 5.000000e-01 : f32
    %295 = vector.broadcast %cst_144 : f32 to vector<8x32xf32>
    %296 = arith.mulf %294, %295 : vector<8x32xf32>
    %297 = arith.subf %197, %296 : vector<8x32xf32>
    %298 = arith.mulf %297, %297 : vector<8x32xf32>
    %cst_145 = arith.constant 0.000000e+00 : f32
    %299 = vector.broadcast %cst_145 : f32 to vector<8x32xf32>
    %300 = arith.addf %299, %298 : vector<8x32xf32>
    %301 = arith.subf %254, %296 : vector<8x32xf32>
    %302 = arith.mulf %301, %301 : vector<8x32xf32>
    %303 = arith.addf %300, %302 : vector<8x32xf32>
    %cst_146 = arith.constant 5.000000e-01 : f32
    %304 = vector.broadcast %cst_146 : f32 to vector<8x32xf32>
    %305 = arith.mulf %303, %304 : vector<8x32xf32>
    %cst_147 = arith.constant dense<0.000000e+00> : vector<32xf32>
    %306 = vector.multi_reduction <add>, %305, %cst_147 [0] : vector<8x32xf32> to vector<32xf32>
    %307 = vector.shape_cast %306 : vector<32xf32> to vector<1x32xf32>
    %cst_148 = arith.constant 1.000000e+00 : f32
    %308 = vector.broadcast %cst_148 : f32 to vector<1x32xf32>
    %309 = arith.mulf %308, %307 : vector<1x32xf32>
    %310 = arith.addf %174, %309 : vector<1x32xf32>
    %cst_149 = arith.constant 5.000000e-01 : f32
    %311 = vector.broadcast %cst_149 : f32 to vector<1x32xf32>
    %312 = arith.mulf %291, %311 : vector<1x32xf32>
    %313 = arith.addf %310, %312 : vector<1x32xf32>
    %c2_150 = arith.constant 2 : index
    %c0_151 = arith.constant 0 : index
    %c0_152 = arith.constant 0 : index
    %314 = vector.load %arg0[%c2_150, %c0_151, %c0_152] : memref<4x4x32xf32, #tpu.memory_space<vmem>>, vector<1x4x32xf32>
    %315 = vector.shape_cast %314 : vector<1x4x32xf32> to vector<4x32xf32>
    %cst_153 = arith.constant 0.000000e+00 : f32
    %316 = vector.broadcast %cst_153 : f32 to vector<1x32xf32>
    %cst_154 = arith.constant dense<0.000000e+00> : vector<32x32xf32>
    %317 = tpu.matmul %1, %216, %cst_154 {dimension_numbers = #tpu.dot_dimension_numbers<[1], [0], [0], [1], [0, 0, 1, 1], [], []>} : vector<32x8xf32>, vector<8x32xf32>, vector<32x32xf32> -> vector<32x32xf32>
    %cst_155 = arith.constant dense<0.000000e+00> : vector<32x32xf32>
    %318 = tpu.matmul %5, %315, %cst_155 {dimension_numbers = #tpu.dot_dimension_numbers<[1], [0], [0], [1], [0, 0, 1, 1], [], []>} : vector<32x4xf32>, vector<4x32xf32>, vector<32x32xf32> -> vector<32x32xf32>
    %319 = arith.addf %317, %318 : vector<32x32xf32>
    %320 = vector.broadcast %9 : vector<32x1xf32> to vector<32x32xf32>
    %321 = arith.addf %319, %320 : vector<32x32xf32>
    %cst_156 = arith.constant 0.000000e+00 : f32
    %322 = vector.broadcast %cst_156 : f32 to vector<32x32xf32>
    %323 = arith.subf %322, %321 : vector<32x32xf32>
    %324 = math.exp %323 : vector<32x32xf32>
    %cst_157 = arith.constant 1.000000e+00 : f32
    %325 = vector.broadcast %cst_157 : f32 to vector<32x32xf32>
    %326 = arith.addf %325, %324 : vector<32x32xf32>
    %cst_158 = arith.constant 1.000000e+00 : f32
    %327 = vector.broadcast %cst_158 : f32 to vector<32x32xf32>
    %328 = arith.divf %327, %326 : vector<32x32xf32>
    %329 = arith.mulf %321, %328 : vector<32x32xf32>
    %cst_159 = arith.constant dense<0.000000e+00> : vector<8x32xf32>
    %330 = tpu.matmul %13, %329, %cst_159 {dimension_numbers = #tpu.dot_dimension_numbers<[1], [0], [0], [1], [0, 0, 1, 1], [], []>} : vector<8x32xf32>, vector<32x32xf32>, vector<8x32xf32> -> vector<8x32xf32>
    %331 = vector.broadcast %17 : vector<8x1xf32> to vector<8x32xf32>
    %332 = arith.addf %330, %331 : vector<8x32xf32>
    %cst_160 = arith.constant -2.000000e+01 : f32
    %cst_161 = arith.constant 2.000000e+01 : f32
    %333 = vector.broadcast %cst_160 : f32 to vector<8x32xf32>
    %334 = arith.maximumf %333, %332 : vector<8x32xf32>
    %335 = vector.broadcast %cst_161 : f32 to vector<8x32xf32>
    %336 = arith.minimumf %335, %334 : vector<8x32xf32>
    %cst_162 = arith.constant dense<0.000000e+00> : vector<8x32xf32>
    %337 = tpu.matmul %21, %329, %cst_162 {dimension_numbers = #tpu.dot_dimension_numbers<[1], [0], [0], [1], [0, 0, 1, 1], [], []>} : vector<8x32xf32>, vector<32x32xf32>, vector<8x32xf32> -> vector<8x32xf32>
    %338 = vector.broadcast %25 : vector<8x1xf32> to vector<8x32xf32>
    %339 = arith.addf %337, %338 : vector<8x32xf32>
    %cst_163 = arith.constant 0.000000e+00 : f32
    %340 = vector.broadcast %cst_163 : f32 to vector<8x32xf32>
    %341 = arith.maximumf %339, %340 : vector<8x32xf32>
    %342 = math.absf %339 : vector<8x32xf32>
    %cst_164 = arith.constant 0.000000e+00 : f32
    %343 = vector.broadcast %cst_164 : f32 to vector<8x32xf32>
    %344 = arith.subf %343, %342 : vector<8x32xf32>
    %345 = math.exp %344 : vector<8x32xf32>
    %346 = math.log1p %345 : vector<8x32xf32>
    %347 = arith.addf %341, %346 : vector<8x32xf32>
    %cst_165 = arith.constant 1.000000e-03 : f32
    %348 = vector.broadcast %cst_165 : f32 to vector<8x32xf32>
    %349 = arith.addf %347, %348 : vector<8x32xf32>
    %c4 = arith.constant 4 : index
    %c0_166 = arith.constant 0 : index
    %c0_167 = arith.constant 0 : index
    %350 = vector.load %arg1[%c4, %c0_166, %c0_167] : memref<8x8x32xf32, #tpu.memory_space<vmem>>, vector<1x8x32xf32>
    %351 = vector.shape_cast %350 : vector<1x8x32xf32> to vector<8x32xf32>
    %352 = arith.addf %216, %336 : vector<8x32xf32>
    %353 = math.sqrt %349 : vector<8x32xf32>
    %354 = arith.mulf %353, %351 : vector<8x32xf32>
    %355 = arith.addf %352, %354 : vector<8x32xf32>
    %cst_168 = arith.constant dense<0.000000e+00> : vector<32x32xf32>
    %356 = tpu.matmul %28, %355, %cst_168 {dimension_numbers = #tpu.dot_dimension_numbers<[1], [0], [0], [1], [0, 0, 1, 1], [], []>} : vector<32x8xf32>, vector<8x32xf32>, vector<32x32xf32> -> vector<32x32xf32>
    %357 = vector.broadcast %29 : vector<32x1xf32> to vector<32x32xf32>
    %358 = arith.addf %356, %357 : vector<32x32xf32>
    %cst_169 = arith.constant 0.000000e+00 : f32
    %359 = vector.broadcast %cst_169 : f32 to vector<32x32xf32>
    %360 = arith.subf %359, %358 : vector<32x32xf32>
    %361 = math.exp %360 : vector<32x32xf32>
    %cst_170 = arith.constant 1.000000e+00 : f32
    %362 = vector.broadcast %cst_170 : f32 to vector<32x32xf32>
    %363 = arith.addf %362, %361 : vector<32x32xf32>
    %cst_171 = arith.constant 1.000000e+00 : f32
    %364 = vector.broadcast %cst_171 : f32 to vector<32x32xf32>
    %365 = arith.divf %364, %363 : vector<32x32xf32>
    %366 = arith.mulf %358, %365 : vector<32x32xf32>
    %367 = vector.broadcast %30 : vector<32x1xf32> to vector<32x32xf32>
    %368 = arith.mulf %366, %367 : vector<32x32xf32>
    %cst_172 = arith.constant dense<0.000000e+00> : vector<32xf32>
    %369 = vector.multi_reduction <add>, %368, %cst_172 [0] : vector<32x32xf32> to vector<32xf32>
    %370 = vector.shape_cast %369 : vector<32xf32> to vector<1x32xf32>
    %371 = arith.addf %316, %370 : vector<1x32xf32>
    %372 = vector.broadcast %31 : vector<1x1xf32> to vector<1x32xf32>
    %373 = arith.addf %371, %372 : vector<1x32xf32>
    %cst_173 = arith.constant dense<0.000000e+00> : vector<32x32xf32>
    %374 = tpu.matmul %3, %273, %cst_173 {dimension_numbers = #tpu.dot_dimension_numbers<[1], [0], [0], [1], [0, 0, 1, 1], [], []>} : vector<32x8xf32>, vector<8x32xf32>, vector<32x32xf32> -> vector<32x32xf32>
    %cst_174 = arith.constant dense<0.000000e+00> : vector<32x32xf32>
    %375 = tpu.matmul %7, %315, %cst_174 {dimension_numbers = #tpu.dot_dimension_numbers<[1], [0], [0], [1], [0, 0, 1, 1], [], []>} : vector<32x4xf32>, vector<4x32xf32>, vector<32x32xf32> -> vector<32x32xf32>
    %376 = arith.addf %374, %375 : vector<32x32xf32>
    %377 = vector.broadcast %11 : vector<32x1xf32> to vector<32x32xf32>
    %378 = arith.addf %376, %377 : vector<32x32xf32>
    %cst_175 = arith.constant 0.000000e+00 : f32
    %379 = vector.broadcast %cst_175 : f32 to vector<32x32xf32>
    %380 = arith.subf %379, %378 : vector<32x32xf32>
    %381 = math.exp %380 : vector<32x32xf32>
    %cst_176 = arith.constant 1.000000e+00 : f32
    %382 = vector.broadcast %cst_176 : f32 to vector<32x32xf32>
    %383 = arith.addf %382, %381 : vector<32x32xf32>
    %cst_177 = arith.constant 1.000000e+00 : f32
    %384 = vector.broadcast %cst_177 : f32 to vector<32x32xf32>
    %385 = arith.divf %384, %383 : vector<32x32xf32>
    %386 = arith.mulf %378, %385 : vector<32x32xf32>
    %cst_178 = arith.constant dense<0.000000e+00> : vector<8x32xf32>
    %387 = tpu.matmul %15, %386, %cst_178 {dimension_numbers = #tpu.dot_dimension_numbers<[1], [0], [0], [1], [0, 0, 1, 1], [], []>} : vector<8x32xf32>, vector<32x32xf32>, vector<8x32xf32> -> vector<8x32xf32>
    %388 = vector.broadcast %19 : vector<8x1xf32> to vector<8x32xf32>
    %389 = arith.addf %387, %388 : vector<8x32xf32>
    %cst_179 = arith.constant -2.000000e+01 : f32
    %cst_180 = arith.constant 2.000000e+01 : f32
    %390 = vector.broadcast %cst_179 : f32 to vector<8x32xf32>
    %391 = arith.maximumf %390, %389 : vector<8x32xf32>
    %392 = vector.broadcast %cst_180 : f32 to vector<8x32xf32>
    %393 = arith.minimumf %392, %391 : vector<8x32xf32>
    %cst_181 = arith.constant dense<0.000000e+00> : vector<8x32xf32>
    %394 = tpu.matmul %23, %386, %cst_181 {dimension_numbers = #tpu.dot_dimension_numbers<[1], [0], [0], [1], [0, 0, 1, 1], [], []>} : vector<8x32xf32>, vector<32x32xf32>, vector<8x32xf32> -> vector<8x32xf32>
    %395 = vector.broadcast %27 : vector<8x1xf32> to vector<8x32xf32>
    %396 = arith.addf %394, %395 : vector<8x32xf32>
    %cst_182 = arith.constant 0.000000e+00 : f32
    %397 = vector.broadcast %cst_182 : f32 to vector<8x32xf32>
    %398 = arith.maximumf %396, %397 : vector<8x32xf32>
    %399 = math.absf %396 : vector<8x32xf32>
    %cst_183 = arith.constant 0.000000e+00 : f32
    %400 = vector.broadcast %cst_183 : f32 to vector<8x32xf32>
    %401 = arith.subf %400, %399 : vector<8x32xf32>
    %402 = math.exp %401 : vector<8x32xf32>
    %403 = math.log1p %402 : vector<8x32xf32>
    %404 = arith.addf %398, %403 : vector<8x32xf32>
    %cst_184 = arith.constant 1.000000e-03 : f32
    %405 = vector.broadcast %cst_184 : f32 to vector<8x32xf32>
    %406 = arith.addf %404, %405 : vector<8x32xf32>
    %c5 = arith.constant 5 : index
    %c0_185 = arith.constant 0 : index
    %c0_186 = arith.constant 0 : index
    %407 = vector.load %arg1[%c5, %c0_185, %c0_186] : memref<8x8x32xf32, #tpu.memory_space<vmem>>, vector<1x8x32xf32>
    %408 = vector.shape_cast %407 : vector<1x8x32xf32> to vector<8x32xf32>
    %409 = arith.addf %273, %393 : vector<8x32xf32>
    %410 = math.sqrt %406 : vector<8x32xf32>
    %411 = arith.mulf %410, %408 : vector<8x32xf32>
    %412 = arith.addf %409, %411 : vector<8x32xf32>
    %cst_187 = arith.constant dense<0.000000e+00> : vector<32x32xf32>
    %413 = tpu.matmul %28, %412, %cst_187 {dimension_numbers = #tpu.dot_dimension_numbers<[1], [0], [0], [1], [0, 0, 1, 1], [], []>} : vector<32x8xf32>, vector<8x32xf32>, vector<32x32xf32> -> vector<32x32xf32>
    %414 = vector.broadcast %29 : vector<32x1xf32> to vector<32x32xf32>
    %415 = arith.addf %413, %414 : vector<32x32xf32>
    %cst_188 = arith.constant 0.000000e+00 : f32
    %416 = vector.broadcast %cst_188 : f32 to vector<32x32xf32>
    %417 = arith.subf %416, %415 : vector<32x32xf32>
    %418 = math.exp %417 : vector<32x32xf32>
    %cst_189 = arith.constant 1.000000e+00 : f32
    %419 = vector.broadcast %cst_189 : f32 to vector<32x32xf32>
    %420 = arith.addf %419, %418 : vector<32x32xf32>
    %cst_190 = arith.constant 1.000000e+00 : f32
    %421 = vector.broadcast %cst_190 : f32 to vector<32x32xf32>
    %422 = arith.divf %421, %420 : vector<32x32xf32>
    %423 = arith.mulf %415, %422 : vector<32x32xf32>
    %424 = vector.broadcast %30 : vector<32x1xf32> to vector<32x32xf32>
    %425 = arith.mulf %423, %424 : vector<32x32xf32>
    %cst_191 = arith.constant dense<0.000000e+00> : vector<32xf32>
    %426 = vector.multi_reduction <add>, %425, %cst_191 [0] : vector<32x32xf32> to vector<32xf32>
    %427 = vector.shape_cast %426 : vector<32xf32> to vector<1x32xf32>
    %428 = arith.addf %373, %427 : vector<1x32xf32>
    %429 = vector.broadcast %31 : vector<1x1xf32> to vector<1x32xf32>
    %430 = arith.addf %428, %429 : vector<1x32xf32>
    %cst_192 = arith.constant 0.000000e+00 : f32
    %431 = vector.broadcast %cst_192 : f32 to vector<8x32xf32>
    %432 = arith.addf %431, %336 : vector<8x32xf32>
    %433 = arith.addf %432, %393 : vector<8x32xf32>
    %cst_193 = arith.constant 5.000000e-01 : f32
    %434 = vector.broadcast %cst_193 : f32 to vector<8x32xf32>
    %435 = arith.mulf %433, %434 : vector<8x32xf32>
    %436 = arith.subf %336, %435 : vector<8x32xf32>
    %437 = arith.mulf %436, %436 : vector<8x32xf32>
    %cst_194 = arith.constant 0.000000e+00 : f32
    %438 = vector.broadcast %cst_194 : f32 to vector<8x32xf32>
    %439 = arith.addf %438, %437 : vector<8x32xf32>
    %440 = arith.subf %393, %435 : vector<8x32xf32>
    %441 = arith.mulf %440, %440 : vector<8x32xf32>
    %442 = arith.addf %439, %441 : vector<8x32xf32>
    %cst_195 = arith.constant 5.000000e-01 : f32
    %443 = vector.broadcast %cst_195 : f32 to vector<8x32xf32>
    %444 = arith.mulf %442, %443 : vector<8x32xf32>
    %cst_196 = arith.constant dense<0.000000e+00> : vector<32xf32>
    %445 = vector.multi_reduction <add>, %444, %cst_196 [0] : vector<8x32xf32> to vector<32xf32>
    %446 = vector.shape_cast %445 : vector<32xf32> to vector<1x32xf32>
    %cst_197 = arith.constant 1.000000e+00 : f32
    %447 = vector.broadcast %cst_197 : f32 to vector<1x32xf32>
    %448 = arith.mulf %447, %446 : vector<1x32xf32>
    %449 = arith.addf %313, %448 : vector<1x32xf32>
    %cst_198 = arith.constant 5.000000e-01 : f32
    %450 = vector.broadcast %cst_198 : f32 to vector<1x32xf32>
    %451 = arith.mulf %430, %450 : vector<1x32xf32>
    %452 = arith.addf %449, %451 : vector<1x32xf32>
    %c3_199 = arith.constant 3 : index
    %c0_200 = arith.constant 0 : index
    %c0_201 = arith.constant 0 : index
    %453 = vector.load %arg0[%c3_199, %c0_200, %c0_201] : memref<4x4x32xf32, #tpu.memory_space<vmem>>, vector<1x4x32xf32>
    %454 = vector.shape_cast %453 : vector<1x4x32xf32> to vector<4x32xf32>
    %cst_202 = arith.constant 0.000000e+00 : f32
    %455 = vector.broadcast %cst_202 : f32 to vector<1x32xf32>
    %cst_203 = arith.constant dense<0.000000e+00> : vector<32x32xf32>
    %456 = tpu.matmul %1, %355, %cst_203 {dimension_numbers = #tpu.dot_dimension_numbers<[1], [0], [0], [1], [0, 0, 1, 1], [], []>} : vector<32x8xf32>, vector<8x32xf32>, vector<32x32xf32> -> vector<32x32xf32>
    %cst_204 = arith.constant dense<0.000000e+00> : vector<32x32xf32>
    %457 = tpu.matmul %5, %454, %cst_204 {dimension_numbers = #tpu.dot_dimension_numbers<[1], [0], [0], [1], [0, 0, 1, 1], [], []>} : vector<32x4xf32>, vector<4x32xf32>, vector<32x32xf32> -> vector<32x32xf32>
    %458 = arith.addf %456, %457 : vector<32x32xf32>
    %459 = vector.broadcast %9 : vector<32x1xf32> to vector<32x32xf32>
    %460 = arith.addf %458, %459 : vector<32x32xf32>
    %cst_205 = arith.constant 0.000000e+00 : f32
    %461 = vector.broadcast %cst_205 : f32 to vector<32x32xf32>
    %462 = arith.subf %461, %460 : vector<32x32xf32>
    %463 = math.exp %462 : vector<32x32xf32>
    %cst_206 = arith.constant 1.000000e+00 : f32
    %464 = vector.broadcast %cst_206 : f32 to vector<32x32xf32>
    %465 = arith.addf %464, %463 : vector<32x32xf32>
    %cst_207 = arith.constant 1.000000e+00 : f32
    %466 = vector.broadcast %cst_207 : f32 to vector<32x32xf32>
    %467 = arith.divf %466, %465 : vector<32x32xf32>
    %468 = arith.mulf %460, %467 : vector<32x32xf32>
    %cst_208 = arith.constant dense<0.000000e+00> : vector<8x32xf32>
    %469 = tpu.matmul %13, %468, %cst_208 {dimension_numbers = #tpu.dot_dimension_numbers<[1], [0], [0], [1], [0, 0, 1, 1], [], []>} : vector<8x32xf32>, vector<32x32xf32>, vector<8x32xf32> -> vector<8x32xf32>
    %470 = vector.broadcast %17 : vector<8x1xf32> to vector<8x32xf32>
    %471 = arith.addf %469, %470 : vector<8x32xf32>
    %cst_209 = arith.constant -2.000000e+01 : f32
    %cst_210 = arith.constant 2.000000e+01 : f32
    %472 = vector.broadcast %cst_209 : f32 to vector<8x32xf32>
    %473 = arith.maximumf %472, %471 : vector<8x32xf32>
    %474 = vector.broadcast %cst_210 : f32 to vector<8x32xf32>
    %475 = arith.minimumf %474, %473 : vector<8x32xf32>
    %cst_211 = arith.constant dense<0.000000e+00> : vector<8x32xf32>
    %476 = tpu.matmul %21, %468, %cst_211 {dimension_numbers = #tpu.dot_dimension_numbers<[1], [0], [0], [1], [0, 0, 1, 1], [], []>} : vector<8x32xf32>, vector<32x32xf32>, vector<8x32xf32> -> vector<8x32xf32>
    %477 = vector.broadcast %25 : vector<8x1xf32> to vector<8x32xf32>
    %478 = arith.addf %476, %477 : vector<8x32xf32>
    %cst_212 = arith.constant 0.000000e+00 : f32
    %479 = vector.broadcast %cst_212 : f32 to vector<8x32xf32>
    %480 = arith.maximumf %478, %479 : vector<8x32xf32>
    %481 = math.absf %478 : vector<8x32xf32>
    %cst_213 = arith.constant 0.000000e+00 : f32
    %482 = vector.broadcast %cst_213 : f32 to vector<8x32xf32>
    %483 = arith.subf %482, %481 : vector<8x32xf32>
    %484 = math.exp %483 : vector<8x32xf32>
    %485 = math.log1p %484 : vector<8x32xf32>
    %486 = arith.addf %480, %485 : vector<8x32xf32>
    %cst_214 = arith.constant 1.000000e-03 : f32
    %487 = vector.broadcast %cst_214 : f32 to vector<8x32xf32>
    %488 = arith.addf %486, %487 : vector<8x32xf32>
    %c6 = arith.constant 6 : index
    %c0_215 = arith.constant 0 : index
    %c0_216 = arith.constant 0 : index
    %489 = vector.load %arg1[%c6, %c0_215, %c0_216] : memref<8x8x32xf32, #tpu.memory_space<vmem>>, vector<1x8x32xf32>
    %490 = vector.shape_cast %489 : vector<1x8x32xf32> to vector<8x32xf32>
    %491 = arith.addf %355, %475 : vector<8x32xf32>
    %492 = math.sqrt %488 : vector<8x32xf32>
    %493 = arith.mulf %492, %490 : vector<8x32xf32>
    %494 = arith.addf %491, %493 : vector<8x32xf32>
    %cst_217 = arith.constant dense<0.000000e+00> : vector<32x32xf32>
    %495 = tpu.matmul %28, %494, %cst_217 {dimension_numbers = #tpu.dot_dimension_numbers<[1], [0], [0], [1], [0, 0, 1, 1], [], []>} : vector<32x8xf32>, vector<8x32xf32>, vector<32x32xf32> -> vector<32x32xf32>
    %496 = vector.broadcast %29 : vector<32x1xf32> to vector<32x32xf32>
    %497 = arith.addf %495, %496 : vector<32x32xf32>
    %cst_218 = arith.constant 0.000000e+00 : f32
    %498 = vector.broadcast %cst_218 : f32 to vector<32x32xf32>
    %499 = arith.subf %498, %497 : vector<32x32xf32>
    %500 = math.exp %499 : vector<32x32xf32>
    %cst_219 = arith.constant 1.000000e+00 : f32
    %501 = vector.broadcast %cst_219 : f32 to vector<32x32xf32>
    %502 = arith.addf %501, %500 : vector<32x32xf32>
    %cst_220 = arith.constant 1.000000e+00 : f32
    %503 = vector.broadcast %cst_220 : f32 to vector<32x32xf32>
    %504 = arith.divf %503, %502 : vector<32x32xf32>
    %505 = arith.mulf %497, %504 : vector<32x32xf32>
    %506 = vector.broadcast %30 : vector<32x1xf32> to vector<32x32xf32>
    %507 = arith.mulf %505, %506 : vector<32x32xf32>
    %cst_221 = arith.constant dense<0.000000e+00> : vector<32xf32>
    %508 = vector.multi_reduction <add>, %507, %cst_221 [0] : vector<32x32xf32> to vector<32xf32>
    %509 = vector.shape_cast %508 : vector<32xf32> to vector<1x32xf32>
    %510 = arith.addf %455, %509 : vector<1x32xf32>
    %511 = vector.broadcast %31 : vector<1x1xf32> to vector<1x32xf32>
    %512 = arith.addf %510, %511 : vector<1x32xf32>
    %cst_222 = arith.constant dense<0.000000e+00> : vector<32x32xf32>
    %513 = tpu.matmul %3, %412, %cst_222 {dimension_numbers = #tpu.dot_dimension_numbers<[1], [0], [0], [1], [0, 0, 1, 1], [], []>} : vector<32x8xf32>, vector<8x32xf32>, vector<32x32xf32> -> vector<32x32xf32>
    %cst_223 = arith.constant dense<0.000000e+00> : vector<32x32xf32>
    %514 = tpu.matmul %7, %454, %cst_223 {dimension_numbers = #tpu.dot_dimension_numbers<[1], [0], [0], [1], [0, 0, 1, 1], [], []>} : vector<32x4xf32>, vector<4x32xf32>, vector<32x32xf32> -> vector<32x32xf32>
    %515 = arith.addf %513, %514 : vector<32x32xf32>
    %516 = vector.broadcast %11 : vector<32x1xf32> to vector<32x32xf32>
    %517 = arith.addf %515, %516 : vector<32x32xf32>
    %cst_224 = arith.constant 0.000000e+00 : f32
    %518 = vector.broadcast %cst_224 : f32 to vector<32x32xf32>
    %519 = arith.subf %518, %517 : vector<32x32xf32>
    %520 = math.exp %519 : vector<32x32xf32>
    %cst_225 = arith.constant 1.000000e+00 : f32
    %521 = vector.broadcast %cst_225 : f32 to vector<32x32xf32>
    %522 = arith.addf %521, %520 : vector<32x32xf32>
    %cst_226 = arith.constant 1.000000e+00 : f32
    %523 = vector.broadcast %cst_226 : f32 to vector<32x32xf32>
    %524 = arith.divf %523, %522 : vector<32x32xf32>
    %525 = arith.mulf %517, %524 : vector<32x32xf32>
    %cst_227 = arith.constant dense<0.000000e+00> : vector<8x32xf32>
    %526 = tpu.matmul %15, %525, %cst_227 {dimension_numbers = #tpu.dot_dimension_numbers<[1], [0], [0], [1], [0, 0, 1, 1], [], []>} : vector<8x32xf32>, vector<32x32xf32>, vector<8x32xf32> -> vector<8x32xf32>
    %527 = vector.broadcast %19 : vector<8x1xf32> to vector<8x32xf32>
    %528 = arith.addf %526, %527 : vector<8x32xf32>
    %cst_228 = arith.constant -2.000000e+01 : f32
    %cst_229 = arith.constant 2.000000e+01 : f32
    %529 = vector.broadcast %cst_228 : f32 to vector<8x32xf32>
    %530 = arith.maximumf %529, %528 : vector<8x32xf32>
    %531 = vector.broadcast %cst_229 : f32 to vector<8x32xf32>
    %532 = arith.minimumf %531, %530 : vector<8x32xf32>
    %cst_230 = arith.constant dense<0.000000e+00> : vector<8x32xf32>
    %533 = tpu.matmul %23, %525, %cst_230 {dimension_numbers = #tpu.dot_dimension_numbers<[1], [0], [0], [1], [0, 0, 1, 1], [], []>} : vector<8x32xf32>, vector<32x32xf32>, vector<8x32xf32> -> vector<8x32xf32>
    %534 = vector.broadcast %27 : vector<8x1xf32> to vector<8x32xf32>
    %535 = arith.addf %533, %534 : vector<8x32xf32>
    %cst_231 = arith.constant 0.000000e+00 : f32
    %536 = vector.broadcast %cst_231 : f32 to vector<8x32xf32>
    %537 = arith.maximumf %535, %536 : vector<8x32xf32>
    %538 = math.absf %535 : vector<8x32xf32>
    %cst_232 = arith.constant 0.000000e+00 : f32
    %539 = vector.broadcast %cst_232 : f32 to vector<8x32xf32>
    %540 = arith.subf %539, %538 : vector<8x32xf32>
    %541 = math.exp %540 : vector<8x32xf32>
    %542 = math.log1p %541 : vector<8x32xf32>
    %543 = arith.addf %537, %542 : vector<8x32xf32>
    %cst_233 = arith.constant 1.000000e-03 : f32
    %544 = vector.broadcast %cst_233 : f32 to vector<8x32xf32>
    %545 = arith.addf %543, %544 : vector<8x32xf32>
    %c7 = arith.constant 7 : index
    %c0_234 = arith.constant 0 : index
    %c0_235 = arith.constant 0 : index
    %546 = vector.load %arg1[%c7, %c0_234, %c0_235] : memref<8x8x32xf32, #tpu.memory_space<vmem>>, vector<1x8x32xf32>
    %547 = vector.shape_cast %546 : vector<1x8x32xf32> to vector<8x32xf32>
    %548 = arith.addf %412, %532 : vector<8x32xf32>
    %549 = math.sqrt %545 : vector<8x32xf32>
    %550 = arith.mulf %549, %547 : vector<8x32xf32>
    %551 = arith.addf %548, %550 : vector<8x32xf32>
    %cst_236 = arith.constant dense<0.000000e+00> : vector<32x32xf32>
    %552 = tpu.matmul %28, %551, %cst_236 {dimension_numbers = #tpu.dot_dimension_numbers<[1], [0], [0], [1], [0, 0, 1, 1], [], []>} : vector<32x8xf32>, vector<8x32xf32>, vector<32x32xf32> -> vector<32x32xf32>
    %553 = vector.broadcast %29 : vector<32x1xf32> to vector<32x32xf32>
    %554 = arith.addf %552, %553 : vector<32x32xf32>
    %cst_237 = arith.constant 0.000000e+00 : f32
    %555 = vector.broadcast %cst_237 : f32 to vector<32x32xf32>
    %556 = arith.subf %555, %554 : vector<32x32xf32>
    %557 = math.exp %556 : vector<32x32xf32>
    %cst_238 = arith.constant 1.000000e+00 : f32
    %558 = vector.broadcast %cst_238 : f32 to vector<32x32xf32>
    %559 = arith.addf %558, %557 : vector<32x32xf32>
    %cst_239 = arith.constant 1.000000e+00 : f32
    %560 = vector.broadcast %cst_239 : f32 to vector<32x32xf32>
    %561 = arith.divf %560, %559 : vector<32x32xf32>
    %562 = arith.mulf %554, %561 : vector<32x32xf32>
    %563 = vector.broadcast %30 : vector<32x1xf32> to vector<32x32xf32>
    %564 = arith.mulf %562, %563 : vector<32x32xf32>
    %cst_240 = arith.constant dense<0.000000e+00> : vector<32xf32>
    %565 = vector.multi_reduction <add>, %564, %cst_240 [0] : vector<32x32xf32> to vector<32xf32>
    %566 = vector.shape_cast %565 : vector<32xf32> to vector<1x32xf32>
    %567 = arith.addf %512, %566 : vector<1x32xf32>
    %568 = vector.broadcast %31 : vector<1x1xf32> to vector<1x32xf32>
    %569 = arith.addf %567, %568 : vector<1x32xf32>
    %cst_241 = arith.constant 0.000000e+00 : f32
    %570 = vector.broadcast %cst_241 : f32 to vector<8x32xf32>
    %571 = arith.addf %570, %475 : vector<8x32xf32>
    %572 = arith.addf %571, %532 : vector<8x32xf32>
    %cst_242 = arith.constant 5.000000e-01 : f32
    %573 = vector.broadcast %cst_242 : f32 to vector<8x32xf32>
    %574 = arith.mulf %572, %573 : vector<8x32xf32>
    %575 = arith.subf %475, %574 : vector<8x32xf32>
    %576 = arith.mulf %575, %575 : vector<8x32xf32>
    %cst_243 = arith.constant 0.000000e+00 : f32
    %577 = vector.broadcast %cst_243 : f32 to vector<8x32xf32>
    %578 = arith.addf %577, %576 : vector<8x32xf32>
    %579 = arith.subf %532, %574 : vector<8x32xf32>
    %580 = arith.mulf %579, %579 : vector<8x32xf32>
    %581 = arith.addf %578, %580 : vector<8x32xf32>
    %cst_244 = arith.constant 5.000000e-01 : f32
    %582 = vector.broadcast %cst_244 : f32 to vector<8x32xf32>
    %583 = arith.mulf %581, %582 : vector<8x32xf32>
    %cst_245 = arith.constant dense<0.000000e+00> : vector<32xf32>
    %584 = vector.multi_reduction <add>, %583, %cst_245 [0] : vector<8x32xf32> to vector<32xf32>
    %585 = vector.shape_cast %584 : vector<32xf32> to vector<1x32xf32>
    %cst_246 = arith.constant 1.000000e+00 : f32
    %586 = vector.broadcast %cst_246 : f32 to vector<1x32xf32>
    %587 = arith.mulf %586, %585 : vector<1x32xf32>
    %588 = arith.addf %452, %587 : vector<1x32xf32>
    %cst_247 = arith.constant 5.000000e-01 : f32
    %589 = vector.broadcast %cst_247 : f32 to vector<1x32xf32>
    %590 = arith.mulf %569, %589 : vector<1x32xf32>
    %591 = arith.addf %588, %590 : vector<1x32xf32>
    %592 = arith.cmpf one, %591, %591 : vector<1x32xf32>
    %cst_248 = arith.constant 0.000000e+00 : f32
    %593 = vector.broadcast %cst_248 : f32 to vector<1x32xf32>
    %594 = arith.select %592, %593, %591 : vector<1x32xi1>, vector<1x32xf32>
    %c0_249 = arith.constant 0 : index
    %c0_250 = arith.constant 0 : index
    %595 = vector.load %arg14[%c0_249, %c0_250] : memref<1x32xf32, #tpu.memory_space<vmem>>, vector<1x32xf32>
    tpu.vector_store %arg14[%c0_249, %c0_250], %594 {strides = array<i32>} : memref<1x32xf32, #tpu.memory_space<vmem>>, vector<1x32xf32>,
    return
  }
}

</mosaic_0001>

<bundles_post_ra>
// kernel: cem_plan.2
= control target key start
LH: loop header
LB: loop body
LE: loop exit
PB: predicated region body
PF: predicated region fallthrough
CT: control target
= control target key end

     0   :  { %v3673_v0 = vmov 0   ;;  %vm121_vm0 = vcmask 1043456   ;;  %vm108_vm1 = vcmask 31744   ;;  %vm154_vm2 = vcmask 64512   ;;  %s5704_s2 = inlined_call_operand.vmem [shape: f32[8,1], index: 2, kind: input, shape index: {}]   ;;  %s5705_s5 = inlined_call_operand.vmem [shape: f32[2,32,1], index: 5, kind: input, shape index: {}]   ;;  %s5706_s13 = inlined_call_operand.<no memory space> [shape: f32[1,1], index: 13, kind: input, shape index: {}]   ;;  %s5707_s0 = inlined_call_operand.vmem [shape: f32[4,4,32], index: 0, kind: input, shape index: {}]   ;;  %s5708_s4 = inlined_call_operand.vmem [shape: f32[2,32,4], index: 4, kind: input, shape index: {}]   ;;  %s5709_s7 = inlined_call_operand.vmem [shape: f32[2,8,1], index: 7, kind: input, shape index: {}]   ;;  %s5710_s11 = inlined_call_operand.vmem [shape: f32[32,1], index: 11, kind: input, shape index: {}]   ;;  %s5711_s12 = inlined_call_operand.vmem [shape: f32[32,1], index: 12, kind: input, shape index: {}]   ;;  %s5712_s9 = inlined_call_operand.vmem [shape: f32[2,8,1], index: 9, kind: input, shape index: {}]   ;;  %s5713_s3 = inlined_call_operand.vmem [shape: f32[2,32,8], index: 3, kind: input, shape index: {}]   ;;  %s5714_s6 = inlined_call_operand.vmem [shape: f32[2,8,32], index: 6, kind: input, shape index: {}]   ;;  %s5715_s8 = inlined_call_operand.vmem [shape: f32[2,8,32], index: 8, kind: input, shape index: {}]   ;;  %s5716_s1 = inlined_call_operand.vmem [shape: f32[8,8,32], index: 1, kind: input, shape index: {}]   ;;  %s5717_s10 = inlined_call_operand.vmem [shape: f32[32,8], index: 10, kind: input, shape index: {}]   ;;  %s5718_s14 = inlined_call_operand.vmem [shape: f32[1,32], index: 14, kind: output, shape index: {}]  }
   0x1   :  { %3312 = vset.pattern.permute.xlu0 %v3673_v0  ;;  %v101_v1 = vld [vmem:[%s5704_s2] sm:$0xff]  ;;  %3313 = vset.pattern.permute.xlu1 %v3673_v0  ;;  %v70_v2 = vld [vmem:[%s5705_s5 + $0x18] sm:$0xff]  ;;  %v19_v4 = vstv %s5706_s13  ;;  %v69_v6 = vld [vmem:[%s5705_s5 + $0x10] sm:$0xff] }
   0x2   :  { %104 = vperm.xlu0 %3312, %v101_v1   ;;  %3314 = vset.pattern.permute.xlu2 %v3673_v0  ;;  %v3166_v3 = vld [vmem:[%s5705_s5 + $0x38] sm:$0xff]  ;;  %20 = vst [vmem:[#allocation2] sm:$0x1] %v19_v4  ;;  %v3163_v5 = vld [vmem:[%s5705_s5 + $0x20] sm:$0xff]  ;;  %v3168_v9 = vld [vmem:[%s5709_s7 + $0x8] sm:$0xff] }
   0x3   :  { %v3770_v7 = vld [vmem:[%s5707_s0] sm:$0xf]  ;;  %208 = vperm.xlu1 %3313, %v69_v6   ;;  %v68_v10 = vld [vmem:[%s5705_s5 + $0x8] sm:$0xff]  ;;  %v94_v12 = vld [vmem:[%s5710_s11 + $0x10] sm:$0xff] }
   0x4   :  { %3171 = vmatpush.msk.msra.mxu0 %vm121_vm0, %v3770_v7  ;;  %v3777_v8 = vld [vmem:[%s5708_s4] sm:$0xff]  ;;  %v3790_v11 = vld [vmem:[%s5708_s4 + $0x8] sm:$0xff]  ;;  %v3165_v13 = vld [vmem:[%s5705_s5 + $0x30] sm:$0xff] }
   0x5   :  { %3172 = vmatmul.msk.f32.vlgmr.msra.gmra.mxu0 %vm108_vm1, %v3777_v8  ;;  %v97_v14 = vld [vmem:[%s5711_s12 + $0x8] sm:$0xff]  ;;  %v79_v15 = vld [vmem:[%s5709_s7] sm:$0xff]  ;;  %v3809_v17 = vld [vmem:[%s5708_s4 + $0x10] sm:$0xff] }
   0x6   :  { %v92_v18 = vld [vmem:[%s5710_s11] sm:$0xff]  ;;  %v3822_v20 = vld [vmem:[%s5708_s4 + $0x18] sm:$0xff]  ;;  %v98_v23 = vld [vmem:[%s5711_s12 + $0x10] sm:$0xff] }
   0x7   :  { %v67_v19 = vld [vmem:[%s5705_s5] sm:$0xff]  ;;  %v95_v21 = vld [vmem:[%s5710_s11 + $0x18] sm:$0xff]  ;;  %v3164_v24 = vld [vmem:[%s5705_s5 + $0x28] sm:$0xff] }
   0x8   :  { %198 = vperm.xlu2 %3314, %v67_v19   ;;  %v85_v22 = vld [vmem:[%s5712_s9] sm:$0xff]  ;;  %v3170_v25 = vld [vmem:[%s5712_s9 + $0x8] sm:$0xff]  ;;  %v3851_v28 = vld [vmem:[%s5713_s3 + $0x10] sm:$0xff] }
   0x9   :  { %v100_v16 = vld [vmem:[#allocation2] sm:$0x1]  ;;  %v3858_v29 = vld [vmem:[%s5713_s3 + $0x18] sm:$0xff]  ;;  %v93_v30 = vld [vmem:[%s5710_s11 + $0x8] sm:$0xff] }
   0xa   :  { %213 = vperm.xlu0 %3312, %v70_v2   ;;  %v3846_v27 = vld [vmem:[%s5713_s3] sm:$0xff]  ;;  %v3874_v31 = vld [vmem:[%s5713_s3 + $0x8] sm:$0xff]  ;;  %v99_v33 = vld [vmem:[%s5711_s12 + $0x18] sm:$0xff] }
   0xb   :  { %203 = vperm.xlu1 %3313, %v68_v10   ;;  %v96_v32 = vld [vmem:[%s5711_s12] sm:$0xff] }
   0xc   :  { %v3918_v10 = vld [vmem:[%s5713_s3 + $0x20] sm:$0xff] }
   0xd   :  { %3173 = vmatmul.msk.f32.gmra.mxu0 %vm108_vm1, %v3790_v11 }
  0x10   :  { %333 = vperm.xlu2 %3314, %v85_v22  }
  0x12   :  { %676 = vperm.xlu0 %3312, %v3166_v3  }
  0x13   :  { %671 = vperm.xlu1 %3313, %v3165_v13  }
  0x15   :  { %3174 = vmatmul.msk.f32.gmra.mxu0 %vm108_vm1, %v3809_v17 }
  0x18   :  { %666 = vperm.xlu2 %3314, %v3164_v24  }
  0x1a   :  { %661 = vperm.xlu0 %3312, %v3163_v5  }
  0x1b   :  { %302 = vperm.xlu1 %3313, %v79_v15  }
  0x1d   :  { %3175 = vmatmul.msk.f32.gmra.mxu0 %vm108_vm1, %v3822_v20 }
  0x20   :  { %795 = vperm.xlu2 %3314, %v3170_v25  }
  0x22   :  { %765 = vperm.xlu0 %3312, %v3168_v9  }
  0x23   :  { %393 = vperm.xlu1 %3313, %v92_v18  }
  0x28   :  { %398 = vperm.xlu2 %3314, %v93_v30  }
  0x2a   :  { %403 = vperm.xlu0 %3312, %v94_v12  }
  0x2b   :  { %408 = vperm.xlu1 %3313, %v95_v21  }
  0x30   :  { %534 = vperm.xlu2 %3314, %v96_v32  }
  0x32   :  { %539 = vperm.xlu0 %3312, %v97_v14  }
  0x33   :  { %544 = vperm.xlu1 %3313, %v98_v23  }
  0x38   :  { %549 = vperm.xlu2 %3314, %v99_v33  }
  0x3a   :  { %572 = vperm.xlu0 %3312, %v100_v16  }
  0x62   :  { %v3886_v40 = vpop.permute.xlu2 %198 }
  0x74   :  { %v3841_v26 = vpop.permute.xlu0 %104 }
  0x75   :  { %182 = vmatpush.msra.mxu1 %v3841_v26  ;;  %3309 = vmatpush.msra.mxu2 %v3841_v26  ;;  %v3884_v37 = vpop.permute.xlu1 %208 }
  0x76   :  { %3310 = vmatpush.msra.mxu3 %v3841_v26  ;;  %645 = vmatpush.msrb.mxu0 %v3841_v26 }
  0x77   :  { %3176 = vmatmul.msk.f32.vlgmr.msra.gmra.mxu1 %vm154_vm2, %v3846_v27  ;;  %3178 = vmatmul.msk.f32.vlgmr.msra.gmra.mxu2 %vm154_vm2, %v3851_v28 }
  0x78   :  { %3179 = vmatmul.msk.f32.vlgmr.msra.gmra.mxu3 %vm154_vm2, %v3858_v29  ;;  %3192 = vmatmul.msk.f32.vlgmr.msrb.gmra.mxu0 %vm154_vm2, %v3918_v10 }
  0x7c   :  { %v3892_v50 = vpop.permute.xlu0 %213 }
  0x7d   :  { %v3897_v53 = vpop.permute.xlu1 %203 }
  0x7f   :  { %3177 = vmatmul.msk.f32.gmra.mxu1 %vm154_vm2, %v3874_v31 }
  0x82   :  { %v142_v34 = vpop.f32.mrf.mxu0 }
  0x8a   :  { %v145_v35 = vpop.f32.mrf.mxu0 }
  0x92   :  { %v148_v36 = vpop.f32.mrf.mxu0 }
  0x9a   :  { %v151_v42 = vpop.f32.mrf.mxu0 }
  0xf4   :  { %v184_v38 = vpop.f32.mrf.mxu1 }
  0xf5   :  { %v185_v39 = vadd.f32 %v184_v38, %v142_v34  ;;  %v3928_v34 = vld [vmem:[%s5713_s3 + $0x28] sm:$0xff] }
  0xf6   :  { %3193 = vmatmul.msk.f32.gmra.mxu0 %vm154_vm2, %v3928_v34 }
  0xf7   :  { %v3889_v41 = vadd.f32 %v3886_v40, %v185_v39 }
  0xf9   :  { %v220_v43 = vsub.f32 0.0, %v3889_v41 }
  0xfa   :  { %v190_v44 = vpop.f32.mrf.mxu2 }
  0xfb   :  { %v191_v45 = vadd.f32 %v190_v44, %v148_v36  ;;  %v193_v46 = vpop.f32.mrf.mxu3  ;;  %v224_v47 = vmul.f32 1.442695, %v220_v43 }
  0xfc   :  { %v194_v48 = vadd.f32 %v193_v46, %v151_v42  ;;  %v187_v49 = vpop.f32.mrf.mxu1 }
  0xfd   :  { %v188_v51 = vadd.f32 %v187_v49, %v145_v35  ;;  %v3895_v52 = vadd.f32 %v3884_v37, %v191_v45  ;;  %3315 = vpow2.f32 %v224_v47 }
  0xfe   :  { %v3900_v54 = vadd.f32 %v3892_v50, %v194_v48 }
  0xff   :  { %v222_v55 = vsub.f32 0.0, %v3895_v52  ;;  %v3904_v56 = vadd.f32 %v3897_v53, %v188_v51 }
 0x100   :  { %v223_v57 = vsub.f32 0.0, %v3900_v54 }
 0x101   :  { %v228_v58 = vmul.f32 1.442695, %v222_v55  ;;  %v221_v59 = vsub.f32 0.0, %v3904_v56 }
 0x102   :  { %v230_v60 = vmul.f32 1.442695, %v223_v57 }
 0x103   :  { %v3316_v61 = vpop.eup %3315  ;;  %3317 = vpow2.f32 %v228_v58  ;;  %v226_v62 = vmul.f32 1.442695, %v221_v59 }
 0x104   :  { %3319 = vpow2.f32 %v230_v60  ;;  %v3908_v63 = vadd.f32 1.0, %v3316_v61 }
 0x105   :  { %3321 = vpow2.f32 %v226_v62 }
 0x106   :  { %3323 = vrcp.f32 %v3908_v63  ;;  %vm241_vm3 = vweird.f32 %v3908_v63  ;;  %v247_v25 = vand.u32 2147483648, %v3908_v63  ;;  %v245_v55 = vand.u32 2147483647, %v3908_v63 }
 0x109   :  { %v3318_v0 = vpop.eup %3317 }
 0x10a   :  { %v3320_v1 = vpop.eup %3319  ;;  %v234_v2 = vadd.f32 1.0, %v3318_v0 }
 0x10b   :  { %v3322_v3 = vpop.eup %3321  ;;  %v235_v4 = vadd.f32 1.0, %v3320_v1  ;;  %v248_v1 = vor.u32 1.1754944e-38, %v247_v25 }
 0x10c   :  { %v3911_v5 = vpop.eup %3323  ;;  %3325 = vrcp.f32 %v234_v2  ;;  %v233_v6 = vadd.f32 1.0, %v3322_v3  ;;  %v277_v21 = vand.u32 2147483648, %v234_v2  ;;  %vm271_vm4 = vweird.f32 %v234_v2 }
 0x10d   :  { %3327 = vrcp.f32 %v235_v4  ;;  %v237_v9 = vmul.f32 %v3911_v5, %v3908_v63  ;;  %v292_v18 = vand.u32 2147483648, %v235_v4  ;;  %v275_v32 = vand.u32 2147483647, %v234_v2 }
 0x10e   :  { %3329 = vrcp.f32 %v233_v6  ;;  %vm286_vm6 = vweird.f32 %v235_v4  ;;  %v290_v36 = vand.u32 2147483647, %v235_v4  ;;  %v278_v42 = vor.u32 1.1754944e-38, %v277_v21 }
 0x10f   :  { %v238_v13 = vsub.f32 1.0, %v237_v9  ;;  %v293_v38 = vor.u32 1.1754944e-38, %v292_v18  ;;  %v262_v45 = vand.u32 2147483648, %v233_v6  ;;  %vm242_vm9 = vweird.f32 %v3911_v5  ;;  %v3983_v9 = vld [vmem:[%s5708_s4 + $0x28] sm:$0xff]  ;;  %v4004_v18 = vpop.permute.xlu0 %676 }
 0x110   :  { %v260_v49 = vand.u32 2147483647, %v233_v6  ;;  %vm291_vm12 = vcmp.eq.f32.partialorder %v290_v36, 8.507059e+37  ;;  %vm276_vm13 = vcmp.eq.f32.partialorder %v275_v32, 8.507059e+37  ;;  %vm256_vm14 = vweird.f32 %v233_v6  ;;  %vm243_vm15 = vmor %vm241_vm3, %vm242_vm9 }
 0x111   :  { %v239_v24 = vmul.f32 %v3911_v5, %v238_v13  ;;  %v263_v61 = vor.u32 1.1754944e-38, %v262_v45  ;;  %vm246_vm3 = vcmp.eq.f32.partialorder %v245_v55, 8.507059e+37  ;;  %v4001_v13 = vpop.permute.xlu2 %333 }
 0x112   :  { %v3326_v12 = vpop.eup %3325 }
 0x113   :  { %v3328_v14 = vpop.eup %3327  ;;  %v267_v15 = vmul.f32 %v3326_v12, %v234_v2  ;;  %vm272_vm5 = vweird.f32 %v3326_v12  ;;  %v240_v46 = vadd.f32 %v3911_v5, %v239_v24  ;;  %v3943_v2 = vld [vmem:[%s5713_s3 + $0x30] sm:$0xff] }
 0x114   :  { %v282_v16 = vmul.f32 %v3328_v14, %v235_v4  ;;  %v3330_v22 = vpop.eup %3329  ;;  %vm287_vm7 = vweird.f32 %v3328_v14  ;;  %vm273_vm8 = vmor %vm271_vm4, %vm272_vm5  ;;  %vm261_vm5 = vcmp.eq.f32.partialorder %v260_v49, 8.507059e+37  ;;  %3194 = vmatmul.msk.f32.gmra.mxu0 %vm154_vm2, %v3943_v2 }
 0x115   :  { %v268_v19 = vsub.f32 1.0, %v267_v15  ;;  %v252_v33 = vmul.f32 %v3330_v22, %v233_v6  ;;  %vm288_vm10 = vmor %vm286_vm6, %vm287_vm7  ;;  %vm257_vm11 = vweird.f32 %v3330_v22  ;;  %v244_v62 = vsel %vm243_vm15, %v3911_v5, %v240_v46  ;;  %v3953_v6 = vld [vmem:[%s5714_s6] sm:$0xff]  ;;  %v647_v15 = vpop.f32.mrf.mxu0 }
 0x116   :  { %v283_v23 = vsub.f32 1.0, %v282_v16  ;;  %vm258_vm4 = vmor %vm256_vm14, %vm257_vm11  ;;  %v249_v4 = vsel %vm246_vm3, %v248_v1, %v244_v62  ;;  %vm305_vm6 = vcmask 261120  }
 0x117   :  { %v269_v30 = vmul.f32 %v3326_v12, %v268_v19  ;;  %v253_v43 = vsub.f32 1.0, %v252_v33  ;;  %v296_v5 = vmul.f32 %v249_v4, %v3889_v41  ;;  %v3967_v41 = vld [vmem:[%s5713_s3 + $0x38] sm:$0xff] }
 0x118   :  { %v284_v35 = vmul.f32 %v3328_v14, %v283_v23 }
 0x119   :  { %v270_v39 = vadd.f32 %v3326_v12, %v269_v30  ;;  %v254_v48 = vmul.f32 %v3330_v22, %v253_v43  ;;  %v4006_v30 = vpop.permute.xlu0 %661 }
 0x11a   :  { %v285_v44 = vadd.f32 %v3328_v14, %v284_v35 }
 0x11b   :  { %v274_v47 = vsel %vm273_vm8, %v3326_v12, %v270_v39  ;;  %v255_v59 = vadd.f32 %v3330_v22, %v254_v48  ;;  %v3997_v12 = vld [vmem:[%s5708_s4 + $0x38] sm:$0xff] }
 0x11c   :  { %v289_v51 = vsel %vm288_vm10, %v3328_v14, %v285_v44  ;;  %v279_v58 = vsel %vm276_vm13, %v278_v42, %v274_v47  ;;  %3195 = vmatmul.msk.f32.gmra.mxu0 %vm154_vm2, %v3967_v41  ;;  %v4011_v42 = vpop.permute.xlu2 %666 }
 0x11d   :  { %v294_v57 = vsel %vm291_vm12, %v293_v38, %v289_v51  ;;  %v259_v0 = vsel %vm258_vm4, %v3330_v22, %v255_v59  ;;  %v298_v3 = vmul.f32 %v279_v58, %v3895_v52  ;;  %v3958_v52 = vld [vmem:[%s5715_s8] sm:$0xff] }
 0x11e   :  { %v299_v60 = vmul.f32 %v294_v57, %v3900_v54  ;;  %v264_v63 = vsel %vm261_vm5, %v263_v61, %v259_v0  ;;  %v4018_v61 = vpop.permute.xlu1 %671 }
 0x11f   :  { %v297_v54 = vmul.f32 %v264_v63, %v3904_v56  ;;  %v3976_v56 = vld [vmem:[%s5708_s4 + $0x20] sm:$0xff] }
 0x120   :  { %321 = vmatpush.msrb.mxu2 %v299_v60  ;;  %351 = vmatpush.msrb.mxu3 %v299_v60 }
 0x122   :  { %322 = vmatpush.msrb.mxu2 %v298_v3  ;;  %352 = vmatpush.msrb.mxu3 %v298_v3 }
 0x124   :  { %323 = vmatpush.msrb.mxu2 %v297_v54  ;;  %353 = vmatpush.msrb.mxu3 %v297_v54 }
 0x126   :  { %324 = vmatpush.msrb.mxu2 %v296_v5  ;;  %354 = vmatpush.msrb.mxu3 %v296_v5 }
 0x127   :  { %3180 = vmatmul.msk.f32.vlgmr.msrb.gmra.mxu2 %vm305_vm6, %v3953_v6  ;;  %3182 = vmatmul.msk.f32.vlgmr.msrb.gmra.mxu3 %vm305_vm6, %v3958_v52 }
 0x128   :  { %3187 = vmatpush.msk.msra.mxu3 %vm121_vm0, %v3770_v7  ;;  %v3990_v7 = vld [vmem:[%s5708_s4 + $0x30] sm:$0xff] }
 0x12f   :  { %3188 = vmatmul.msk.f32.vlgmr.msra.gmra.mxu3 %vm108_vm1, %v3976_v56 }
 0x137   :  { %3189 = vmatmul.msk.f32.gmra.mxu3 %vm108_vm1, %v3983_v9 }
 0x13f   :  { %3190 = vmatmul.msk.f32.gmra.mxu3 %vm108_vm1, %v3990_v7 }
 0x147   :  { %3191 = vmatmul.msk.f32.gmra.mxu3 %vm108_vm1, %v3997_v12 }
 0x173   :  { %v650_v25 = vpop.f32.mrf.mxu0 }
 0x191   :  { %v653_v45 = vpop.f32.mrf.mxu0 }
 0x199   :  { %v656_v54 = vpop.f32.mrf.mxu0 }
 0x1aa   :  { %v356_v14 = vpop.f32.mrf.mxu3 }
 0x1ab   :  { %v357_v16 = vadd.f32 %v356_v14, %v4001_v13 }
 0x1ad   :  { %v360_v19 = vand.u32 2147483647, %v357_v16  ;;  %v359_v62 = vmax.f32 %v357_v16, 0.0 }
 0x1af   :  { %v361_v21 = vsub.f32 0.0, %v360_v19 }
 0x1b1   :  { %v362_v22 = vmul.f32 1.442695, %v361_v21 }
 0x1b2   :  { %v606_v23 = vpop.f32.mrf.mxu3 }
 0x1b3   :  { %3331 = vpow2.f32 %v362_v22  ;;  %v648_v24 = vadd.f32 %v647_v15, %v606_v23 }
 0x1b5   :  { %v4009_v32 = vadd.f32 %v4006_v30, %v648_v24 }
 0x1b7   :  { %v683_v43 = vsub.f32 0.0, %v4009_v32 }
 0x1b9   :  { %v3332_v33 = vpop.eup %3331  ;;  %v687_v49 = vmul.f32 1.442695, %v683_v43  ;;  %v326_v43 = vpop.f32.mrf.mxu2 }
 0x1ba   :  { %v364_v35 = vadd.f32 1.0, %v3332_v33  ;;  %v609_v36 = vpop.f32.mrf.mxu3  ;;  %v367_v38 = vmul.f32 -0.5, %v3332_v33  ;;  %v370_v48 = vand.u32 2147483647, %v3332_v33 }
 0x1bb   :  { %v651_v39 = vadd.f32 %v650_v25, %v609_v36 }
 0x1bc   :  { %3333 = vlog2.f32 %v364_v35  ;;  %v368_v46 = vadd.f32 1.0, %v367_v38  ;;  %vm371_vm7 = vcmp.lt.f32.partialorder %v370_v48, 0.0004427343 }
 0x1bd   :  { %v4015_v44 = vadd.f32 %v4011_v42, %v651_v39  ;;  %3335 = vpow2.f32 %v687_v49 }
 0x1be   :  { %v369_v59 = vmul.f32 %v3332_v33, %v368_v46  ;;  %v4037_v46 = vpop.permute.xlu1 %302 }
 0x1bf   :  { %v684_v47 = vsub.f32 0.0, %v4015_v44  ;;  %v327_v48 = vadd.f32 %v326_v43, %v4037_v46 }
 0x1c1   :  { %v689_v51 = vmul.f32 1.442695, %v684_v47 }
 0x1c2   :  { %v3334_v55 = vpop.eup %3333  ;;  %v612_v57 = vpop.f32.mrf.mxu3 }
 0x1c3   :  { %v366_v58 = vmul.f32 0.6931472, %v3334_v55  ;;  %v654_v60 = vadd.f32 %v653_v45, %v612_v57  ;;  %3337 = vpow2.f32 %v689_v51  ;;  %v3336_v14 = vpop.eup %3335 }
 0x1c4   :  { %v4024_v16 = vadd.f32 1.0, %v3336_v14 }
 0x1c5   :  { %v372_v0 = vsel %vm371_vm7, %v369_v59, %v366_v58  ;;  %v4021_v1 = vadd.f32 %v4018_v61, %v654_v60  ;;  %v3204_v58 = vld [vmem:[%s5707_s0 + $0x4] sm:$0xf] }
 0x1c6   :  { %v373_v3 = vadd.f32 %v372_v0, %v359_v62  ;;  %3205 = vmatpush.msk.msrb.mxu3 %vm121_vm0, %v3204_v58  ;;  %v4052_v62 = vclamps-f32 %v327_v48, 20.0  ;;  %vm704_vm10 = vweird.f32 %v4024_v16 }
 0x1c7   :  { %v685_v63 = vsub.f32 0.0, %v4021_v1  ;;  %3206 = vmatmul.msk.f32.vlgmr.msrb.gmra.mxu3 %vm108_vm1, %v3777_v8 }
 0x1c8   :  { %v374_v4 = vadd.f32 0.001, %v373_v3  ;;  %3222 = vmatpush.msk.msra.mxu3 %vm121_vm0, %v3204_v58  ;;  %v376_v8 = vadd.f32 %v4052_v62, %v3841_v26 }
 0x1c9   :  { %v691_v5 = vmul.f32 1.442695, %v685_v63  ;;  %v3338_v19 = vpop.eup %3337 }
 0x1ca   :  { %3339 = vrsqrt.f32 %v374_v4  ;;  %v615_v15 = vpop.f32.mrf.mxu3  ;;  %v4029_v23 = vadd.f32 1.0, %v3338_v19  ;;  %vm384_vm8 = vcmp.eq.f32.partialorder %v374_v4, inf  ;;  %vm386_vm9 = vcmp.eq.f32.partialorder %v374_v4, 0.0 }
 0x1cb   :  { %3341 = vpow2.f32 %v691_v5  ;;  %v657_v21 = vadd.f32 %v656_v54, %v615_v15  ;;  %v375_v54 = vld [vmem:[%s5716_s1] sm:$0xff]  ;;  %v387_v5 = vand.u32 2147483648, %v374_v4 }
 0x1cc   :  { %3343 = vrcp.f32 %v4024_v16  ;;  %vm719_vm4 = vweird.f32 %v4029_v23 }
 0x1cd   :  { %v4027_v22 = vadd.f32 %v4004_v18, %v657_v21  ;;  %3345 = vrcp.f32 %v4029_v23 }
 0x1cf   :  { %v686_v24 = vsub.f32 0.0, %v4027_v22  ;;  %3207 = vmatmul.msk.f32.gmra.mxu3 %vm108_vm1, %v3790_v11 }
 0x1d0   :  { %v3340_v25 = vpop.eup %3339 }
 0x1d1   :  { %v3342_v33 = vpop.eup %3341  ;;  %v693_v35 = vmul.f32 1.442695, %v686_v24  ;;  %v378_v36 = vmul.f32 %v3340_v25, %v374_v4 }
 0x1d2   :  { %v4034_v38 = vadd.f32 1.0, %v3342_v33  ;;  %v4039_v47 = vpop.eup %3343 }
 0x1d3   :  { %3347 = vpow2.f32 %v693_v35  ;;  %v379_v39 = vmul.f32 %v3340_v25, %v378_v36  ;;  %v4042_v51 = vpop.eup %3345  ;;  %v700_v14 = vmul.f32 %v4039_v47, %v4024_v16  ;;  %v4074_v36 = vld [vmem:[%s5717_s10] sm:$0xff]  ;;  %vm705_vm5 = vweird.f32 %v4039_v47 }
 0x1d4   :  { %3349 = vrcp.f32 %v4034_v38  ;;  %v715_v63 = vmul.f32 %v4042_v51, %v4029_v23  ;;  %vm720_vm12 = vweird.f32 %v4042_v51  ;;  %vm734_vm13 = vweird.f32 %v4034_v38 }
 0x1d5   :  { %v380_v45 = vmul.f32 0.5, %v379_v39  ;;  %v701_v33 = vsub.f32 1.0, %v700_v14  ;;  %v738_v11 = vand.u32 2147483647, %v4034_v38  ;;  %v740_v58 = vand.u32 2147483648, %v4034_v38  ;;  %vm4114_vm7 = vmor %vm719_vm4, %vm720_vm12 }
 0x1d6   :  { %v725_v14 = vand.u32 2147483648, %v4029_v23  ;;  %vm706_vm12 = vmor %vm704_vm10, %vm705_vm5 }
 0x1d7   :  { %v381_v49 = vsub.f32 1.5, %v380_v45  ;;  %v702_v48 = vmul.f32 %v4039_v47, %v701_v33  ;;  %v710_v33 = vand.u32 2147483648, %v4024_v16  ;;  %3208 = vmatmul.msk.f32.gmra.mxu3 %vm108_vm1, %v3809_v17 }
 0x1d9   :  { %v3348_v55 = vpop.eup %3347  ;;  %v382_v57 = vmul.f32 %v3340_v25, %v381_v49  ;;  %v716_v25 = vsub.f32 1.0, %v715_v63 }
 0x1da   :  { %v4047_v59 = vpop.eup %3349  ;;  %v4049_v60 = vadd.f32 1.0, %v3348_v55 }
 0x1db   :  { %v383_v0 = vmul.f32 %v382_v57, %v374_v4  ;;  %v730_v3 = vmul.f32 %v4047_v59, %v4034_v38  ;;  %v717_v45 = vmul.f32 %v4042_v51, %v716_v25  ;;  %vm735_vm11 = vweird.f32 %v4047_v59  ;;  %v4106_v38 = vld [vmem:[%s5717_s10 + $0x8] sm:$0xff] }
 0x1dc   :  { %3351 = vrcp.f32 %v4049_v60  ;;  %v755_v57 = vand.u32 2147483648, %v4049_v60  ;;  %vm4095_vm15 = vmor %vm734_vm13, %vm735_vm11  ;;  %vm749_vm3 = vweird.f32 %v4049_v60  ;;  %v708_v25 = vand.u32 2147483647, %v4024_v16  ;;  %v4139_v16 = vld [vmem:[%s5717_s10 + $0x10] sm:$0xff] }
 0x1dd   :  { %v385_v15 = vsel %vm384_vm8, %v374_v4, %v383_v0  ;;  %v731_v19 = vsub.f32 1.0, %v730_v3  ;;  %v753_v3 = vand.u32 2147483647, %v4049_v60  ;;  %v718_v63 = vadd.f32 %v4042_v51, %v717_v45 }
 0x1de   :  { %v388_v21 = vsel %vm386_vm9, %v387_v5, %v385_v15  ;;  %v723_v5 = vand.u32 2147483647, %v4029_v23  ;;  %v703_v23 = vadd.f32 %v4039_v47, %v702_v48  ;;  %vm739_vm11 = vcmp.eq.f32.partialorder %v738_v11, 8.507059e+37 }
 0x1df   :  { %v389_v24 = vmul.f32 %v388_v21, %v375_v54  ;;  %v732_v39 = vmul.f32 %v4047_v59, %v731_v19  ;;  %vm754_vm9 = vcmp.eq.f32.partialorder %v753_v3, 8.507059e+37  ;;  %v726_v45 = vor.u32 1.1754944e-38, %v725_v14  ;;  %3209 = vmatmul.msk.f32.gmra.mxu3 %vm108_vm1, %v3822_v20  ;;  %v3169_v20 = vld [vmem:[%s5715_s8 + $0x8] sm:$0xff] }
 0x1e0   :  { %vm724_vm13 = vcmp.eq.f32.partialorder %v723_v5, 8.507059e+37  ;;  %v707_v48 = vsel %vm706_vm12, %v4039_v47, %v703_v23  ;;  %v3167_v47 = vld [vmem:[%s5714_s6 + $0x8] sm:$0xff] }
 0x1e1   :  { %v4069_v35 = vadd.f32 %v389_v24, %v376_v8  ;;  %v733_v55 = vadd.f32 %v4047_v59, %v732_v39  ;;  %v756_v8 = vor.u32 1.1754944e-38, %v755_v57  ;;  %v741_v24 = vor.u32 1.1754944e-38, %v740_v58 }
 0x1e2   :  { %v3352_v43 = vpop.eup %3351 }
 0x1e3   :  { %438 = vmatpush.msra.mxu2 %v4069_v35  ;;  %v745_v4 = vmul.f32 %v3352_v43, %v4049_v60  ;;  %vm750_vm14 = vweird.f32 %v3352_v43  ;;  %v737_v19 = vsel %vm4095_vm15, %v4047_v59, %v733_v55  ;;  %v722_v59 = vsel %vm4114_vm7, %v4042_v51, %v718_v63 }
 0x1e4   :  { %3183 = vmatmul.msk.f32.vlgmr.msra.gmra.mxu2 %vm154_vm2, %v4074_v36  ;;  %vm751_vm8 = vmor %vm749_vm3, %vm750_vm14  ;;  %v727_v51 = vsel %vm724_vm13, %v726_v45, %v722_v59  ;;  %vm709_vm14 = vcmp.eq.f32.partialorder %v708_v25, 8.507059e+37 }
 0x1e5   :  { %v746_v49 = vsub.f32 1.0, %v745_v4  ;;  %v742_v4 = vsel %vm739_vm11, %v741_v24, %v737_v19  ;;  %v760_v57 = vmul.f32 %v727_v51, %v4015_v44  ;;  %v4153_v44 = vld [vmem:[%s5717_s10 + $0x18] sm:$0xff] }
 0x1e6   :  { %v761_v17 = vmul.f32 %v742_v4, %v4021_v1 }
 0x1e7   :  { %v747_v0 = vmul.f32 %v3352_v43, %v746_v49  ;;  %v711_v49 = vor.u32 1.1754944e-38, %v710_v33  ;;  %3223 = vmatmul.msk.f32.vlgmr.msra.gmra.mxu3 %vm108_vm1, %v3976_v56 }
 0x1e9   :  { %v748_v15 = vadd.f32 %v3352_v43, %v747_v0  ;;  %v712_v55 = vsel %vm709_vm14, %v711_v49, %v707_v48 }
 0x1eb   :  { %v752_v60 = vsel %vm751_vm8, %v3352_v43, %v748_v15 }
 0x1ec   :  { %3184 = vmatmul.msk.f32.gmra.mxu2 %vm154_vm2, %v4106_v38  ;;  %v757_v39 = vsel %vm754_vm9, %v756_v8, %v752_v60 }
 0x1ed   :  { %v762_v43 = vmul.f32 %v757_v39, %v4027_v22  ;;  %v759_v22 = vmul.f32 %v712_v55, %v4009_v32 }
 0x1ef   :  { %783 = vmatpush.msrb.mxu1 %v762_v43  ;;  %3224 = vmatmul.msk.f32.gmra.mxu3 %vm108_vm1, %v3983_v9  ;;  %v4180_v9 = vpop.permute.xlu2 %795 }
 0x1f1   :  { %784 = vmatpush.msrb.mxu1 %v761_v17 }
 0x1f3   :  { %785 = vmatpush.msrb.mxu1 %v760_v57 }
 0x1f4   :  { %3185 = vmatmul.msk.f32.gmra.mxu2 %vm154_vm2, %v4139_v16 }
 0x1f5   :  { %786 = vmatpush.msrb.mxu1 %v759_v22 }
 0x1f6   :  { %3196 = vmatmul.msk.f32.vlgmr.msrb.gmra.mxu1 %vm305_vm6, %v3167_v47 }
 0x1f7   :  { %813 = vmatpush.msra.mxu1 %v762_v43  ;;  %3225 = vmatmul.msk.f32.gmra.mxu3 %vm108_vm1, %v3990_v7 }
 0x1f9   :  { %814 = vmatpush.msra.mxu1 %v761_v17 }
 0x1fb   :  { %815 = vmatpush.msra.mxu1 %v760_v57 }
 0x1fc   :  { %3186 = vmatmul.msk.f32.gmra.mxu2 %vm154_vm2, %v4153_v44 }
 0x1fd   :  { %816 = vmatpush.msra.mxu1 %v759_v22 }
 0x1fe   :  { %3198 = vmatmul.msk.f32.vlgmr.msra.gmra.mxu1 %vm305_vm6, %v3169_v20 }
 0x1ff   :  { %1051 = vmatpush.msrb.mxu1 %v4069_v35  ;;  %3226 = vmatmul.msk.f32.gmra.mxu3 %vm108_vm1, %v3997_v12 }
 0x206   :  { %3210 = vmatmul.msk.f32.vlgmr.msrb.gmra.mxu1 %vm154_vm2, %v3846_v27 }
 0x20e   :  { %3211 = vmatmul.msk.f32.gmra.mxu1 %vm154_vm2, %v3874_v31 }
 0x216   :  { %3212 = vmatmul.msk.f32.gmra.mxu1 %vm154_vm2, %v3851_v28 }
 0x21e   :  { %3213 = vmatmul.msk.f32.gmra.mxu1 %vm154_vm2, %v3858_v29 }
 0x24a   :  { %v1024_v32 = vpop.f32.mrf.mxu3 }
 0x252   :  { %v1027_v12 = vpop.f32.mrf.mxu3 }
 0x25a   :  { %v1030_v15 = vpop.f32.mrf.mxu3 }
 0x262   :  { %v1033_v17 = vpop.f32.mrf.mxu3 }
 0x273   :  { %v4178_v56 = vpop.f32.mrf.mxu1 }
 0x27b   :  { %v818_v27 = vpop.f32.mrf.mxu1 }
 0x27c   :  { %v819_v7 = vadd.f32 %v818_v27, %v4180_v9 }
 0x27e   :  { %v822_v1 = vand.u32 2147483647, %v819_v7  ;;  %v821_v43 = vmax.f32 %v819_v7, 0.0 }
 0x280   :  { %v823_v11 = vsub.f32 0.0, %v822_v1 }
 0x282   :  { %v824_v58 = vmul.f32 1.442695, %v823_v11 }
 0x283   :  { %v1053_v31 = vpop.f32.mrf.mxu1 }
 0x284   :  { %v1054_v0 = vadd.f32 %v1053_v31, %v1024_v32  ;;  %3353 = vpow2.f32 %v824_v58 }
 0x286   :  { %v4184_v28 = vadd.f32 %v1054_v0, %v3886_v40 }
 0x288   :  { %v1069_v54 = vsub.f32 0.0, %v4184_v28 }
 0x28a   :  { %v3354_v29 = vpop.eup %3353  ;;  %v1073_v19 = vmul.f32 1.442695, %v1069_v54 }
 0x28b   :  { %v1056_v3 = vpop.f32.mrf.mxu1  ;;  %v826_v63 = vadd.f32 1.0, %v3354_v29  ;;  %v829_v5 = vmul.f32 -0.5, %v3354_v29  ;;  %v832_v8 = vand.u32 2147483647, %v3354_v29 }
 0x28c   :  { %v1057_v14 = vadd.f32 %v1056_v3, %v1027_v12 }
 0x28d   :  { %3355 = vlog2.f32 %v826_v63  ;;  %v830_v21 = vadd.f32 1.0, %v829_v5  ;;  %vm833_vm10 = vcmp.lt.f32.partialorder %v832_v8, 0.0004427343 }
 0x28e   :  { %v4188_v23 = vadd.f32 %v1057_v14, %v3897_v53  ;;  %3357 = vpow2.f32 %v1073_v19  ;;  %v4212_v14 = vpop.permute.xlu0 %765 }
 0x28f   :  { %v831_v39 = vmul.f32 %v3354_v29, %v830_v21  ;;  %v789_v19 = vadd.f32 %v4178_v56, %v4212_v14  ;;  %v3199_v56 = vld [vmem:[%s5716_s1 + $0x8] sm:$0xff] }
 0x290   :  { %v1070_v25 = vsub.f32 0.0, %v4188_v23 }
 0x292   :  { %v1075_v4 = vmul.f32 1.442695, %v1070_v25 }
 0x293   :  { %v1059_v24 = vpop.f32.mrf.mxu1  ;;  %v3356_v60 = vpop.eup %3355 }
 0x294   :  { %v1060_v33 = vadd.f32 %v1059_v24, %v1030_v15  ;;  %v828_v59 = vmul.f32 0.6931472, %v3356_v60  ;;  %3359 = vpow2.f32 %v1075_v4  ;;  %v3358_v57 = vpop.eup %3357 }
 0x295   :  { %v4195_v32 = vadd.f32 1.0, %v3358_v57 }
 0x296   :  { %v4192_v45 = vadd.f32 %v1060_v33, %v3884_v37  ;;  %v834_v48 = vsel %vm833_vm10, %v831_v39, %v828_v59  ;;  %v4224_v39 = vclamps-f32 %v789_v19, 20.0 }
 0x297   :  { %v835_v49 = vadd.f32 %v834_v48, %v821_v43  ;;  %vm1090_vm5 = vweird.f32 %v4195_v32 }
 0x298   :  { %v1071_v51 = vsub.f32 0.0, %v4192_v45  ;;  %v839_v57 = vadd.f32 %v4224_v39, %v3841_v26 }
 0x299   :  { %v836_v22 = vadd.f32 0.001, %v835_v49 }
 0x29a   :  { %v1077_v55 = vmul.f32 1.442695, %v1071_v51  ;;  %v3360_v27 = vpop.eup %3359 }
 0x29b   :  { %v1062_v47 = vpop.f32.mrf.mxu1  ;;  %v4200_v7 = vadd.f32 1.0, %v3360_v27  ;;  %vm847_vm15 = vcmp.eq.f32.partialorder %v836_v22, inf  ;;  %v850_v48 = vand.u32 2147483648, %v836_v22  ;;  %vm849_vm4 = vcmp.eq.f32.partialorder %v836_v22, 0.0 }
 0x29c   :  { %3361 = vpow2.f32 %v1077_v55  ;;  %v1063_v20 = vadd.f32 %v1062_v47, %v1033_v17 }
 0x29d   :  { %3363 = vrsqrt.f32 %v836_v22  ;;  %vm1105_vm12 = vweird.f32 %v4200_v7 }
 0x29e   :  { %v4198_v1 = vadd.f32 %v1063_v20, %v3892_v50  ;;  %3365 = vrcp.f32 %v4195_v32 }
 0x29f   :  { %3367 = vrcp.f32 %v4200_v7 }
 0x2a0   :  { %v1072_v11 = vsub.f32 0.0, %v4198_v1 }
 0x2a2   :  { %v3362_v31 = vpop.eup %3361  ;;  %v1079_v58 = vmul.f32 1.442695, %v1072_v11 }
 0x2a3   :  { %v3364_v0 = vpop.eup %3363  ;;  %v4205_v12 = vadd.f32 1.0, %v3362_v31 }
 0x2a4   :  { %3369 = vpow2.f32 %v1079_v58  ;;  %v841_v3 = vmul.f32 %v3364_v0, %v836_v22  ;;  %v4208_v63 = vpop.eup %3365 }
 0x2a5   :  { %3371 = vrcp.f32 %v4205_v12  ;;  %v4210_v5 = vpop.eup %3367  ;;  %v1086_v59 = vmul.f32 %v4208_v63, %v4195_v32  ;;  %vm1120_vm3 = vweird.f32 %v4205_v12  ;;  %vm1091_vm13 = vweird.f32 %v4208_v63 }
 0x2a6   :  { %v842_v29 = vmul.f32 %v3364_v0, %v841_v3  ;;  %v1101_v60 = vmul.f32 %v4210_v5, %v4200_v7  ;;  %vm1106_vm8 = vweird.f32 %v4210_v5 }
 0x2a7   :  { %v1087_v55 = vsub.f32 1.0, %v1086_v59  ;;  %vm4258_vm10 = vmor %vm1105_vm12, %vm1106_vm8 }
 0x2a8   :  { %v843_v54 = vmul.f32 0.5, %v842_v29  ;;  %v1102_v49 = vsub.f32 1.0, %v1101_v60  ;;  %v1124_v29 = vand.u32 2147483647, %v4205_v12 }
 0x2aa   :  { %v3370_v15 = vpop.eup %3369  ;;  %v844_v21 = vsub.f32 1.5, %v843_v54  ;;  %v1103_v58 = vmul.f32 %v4210_v5, %v1102_v49  ;;  %v1126_v54 = vand.u32 2147483648, %v4205_v12 }
 0x2ab   :  { %v4216_v8 = vpop.eup %3371  ;;  %v1084_v24 = vadd.f32 1.0, %v3370_v15 }
 0x2ac   :  { %v845_v25 = vmul.f32 %v3364_v0, %v844_v21  ;;  %v1116_v33 = vmul.f32 %v4216_v8, %v4205_v12  ;;  %v1088_v0 = vmul.f32 %v4208_v63, %v1087_v55  ;;  %vm1121_vm7 = vweird.f32 %v4216_v8 }
 0x2ad   :  { %3373 = vrcp.f32 %v1084_v24  ;;  %v1141_v26 = vand.u32 2147483648, %v1084_v24  ;;  %v1139_v19 = vand.u32 2147483647, %v1084_v24  ;;  %v1104_v21 = vadd.f32 %v4210_v5, %v1103_v58  ;;  %vm4247_vm11 = vmor %vm1120_vm3, %vm1121_vm7 }
 0x2ae   :  { %v846_v4 = vmul.f32 %v845_v25, %v836_v22  ;;  %v1117_v43 = vsub.f32 1.0, %v1116_v33  ;;  %v1109_v33 = vand.u32 2147483647, %v4200_v7  ;;  %vm1135_vm14 = vweird.f32 %v1084_v24  ;;  %vm1092_vm7 = vmor %vm1090_vm5, %vm1091_vm13 }
 0x2af   :  { %vm1125_vm3 = vcmp.eq.f32.partialorder %v1124_v29, 8.507059e+37 }
 0x2b0   :  { %v848_v51 = vsel %vm847_vm15, %v836_v22, %v846_v4  ;;  %v1118_v20 = vmul.f32 %v4216_v8, %v1117_v43  ;;  %v1089_v4 = vadd.f32 %v4208_v63, %v1088_v0  ;;  %v1142_v43 = vor.u32 1.1754944e-38, %v1141_v26 }
 0x2b1   :  { %v851_v17 = vsel %vm849_vm4, %v850_v48, %v848_v51  ;;  %v1094_v48 = vand.u32 2147483647, %v4195_v32  ;;  %vm1140_vm4 = vcmp.eq.f32.partialorder %v1139_v19, 8.507059e+37  ;;  %vm1110_vm8 = vcmp.eq.f32.partialorder %v1109_v33, 8.507059e+37 }
 0x2b2   :  { %v852_v47 = vmul.f32 %v3199_v56, %v851_v17  ;;  %v1119_v3 = vadd.f32 %v4216_v8, %v1118_v20  ;;  %v1127_v56 = vor.u32 1.1754944e-38, %v1126_v54 }
 0x2b3   :  { %v3374_v27 = vpop.eup %3373 }
 0x2b4   :  { %v1131_v11 = vmul.f32 %v3374_v27, %v1084_v24  ;;  %v4232_v31 = vadd.f32 %v852_v47, %v839_v57  ;;  %vm1136_vm9 = vweird.f32 %v3374_v27  ;;  %v1123_v60 = vsel %vm4247_vm11, %v4216_v8, %v1119_v3 }
 0x2b5   :  { %vm1137_vm15 = vmor %vm1135_vm14, %vm1136_vm9  ;;  %v1108_v8 = vsel %vm4258_vm10, %v4210_v5, %v1104_v21  ;;  %v1128_v49 = vsel %vm1125_vm3, %v1127_v56, %v1123_v60  ;;  %v1093_v57 = vsel %vm1092_vm7, %v4208_v63, %v1089_v4  ;;  %vm1095_vm9 = vcmp.eq.f32.partialorder %v1094_v48, 8.507059e+37 }
 0x2b6   :  { %v1132_v22 = vsub.f32 1.0, %v1131_v11  ;;  %869 = vmatpush.msrb.mxu2 %v4232_v31  ;;  %v1147_v5 = vmul.f32 %v1128_v49, %v4192_v45 }
 0x2b7   :  { %3200 = vmatmul.msk.f32.vlgmr.msrb.gmra.mxu2 %vm154_vm2, %v4074_v36  ;;  %v1111_v36 = vand.u32 2147483648, %v4200_v7  ;;  %v1096_v7 = vand.u32 2147483648, %v4195_v32 }
 0x2b8   :  { %v1133_v15 = vmul.f32 %v3374_v27, %v1132_v22 }
 0x2b9   :  { %v1112_v17 = vor.u32 1.1754944e-38, %v1111_v36  ;;  %v1097_v20 = vor.u32 1.1754944e-38, %v1096_v7 }
 0x2ba   :  { %v1134_v12 = vadd.f32 %v3374_v27, %v1133_v15 }
 0x2bb   :  { %v1113_v47 = vsel %vm1110_vm8, %v1112_v17, %v1108_v8 }
 0x2bc   :  { %v1138_v51 = vsel %vm1137_vm15, %v3374_v27, %v1134_v12  ;;  %v1098_v27 = vsel %vm1095_vm9, %v1097_v20, %v1093_v57  ;;  %v1146_v11 = vmul.f32 %v1113_v47, %v4188_v23 }
 0x2bd   :  { %v1143_v24 = vsel %vm1140_vm4, %v1142_v43, %v1138_v51  ;;  %v1145_v32 = vmul.f32 %v1098_v27, %v4184_v28  ;;  %v4298_v28 = vpop.permute.xlu2 %398 }
 0x2be   :  { %v1148_v55 = vmul.f32 %v1143_v24, %v4198_v1 }
 0x2bf   :  { %3201 = vmatmul.msk.f32.gmra.mxu2 %vm154_vm2, %v4106_v38 }
 0x2c0   :  { %1161 = vmatpush.msra.mxu0 %v1148_v55 }
 0x2c2   :  { %1162 = vmatpush.msra.mxu0 %v1147_v5 }
 0x2c4   :  { %1163 = vmatpush.msra.mxu0 %v1146_v11 }
 0x2c6   :  { %1164 = vmatpush.msra.mxu0 %v1145_v32 }
 0x2c7   :  { %3202 = vmatmul.msk.f32.gmra.mxu2 %vm154_vm2, %v4139_v16  ;;  %3214 = vmatmul.msk.f32.vlgmr.msra.gmra.mxu0 %vm305_vm6, %v3953_v6  ;;  %v440_v6 = vpop.f32.mrf.mxu2 }
 0x2c8   :  { %1183 = vmatpush.msrb.mxu0 %v1148_v55 }
 0x2ca   :  { %1184 = vmatpush.msrb.mxu0 %v1147_v5 }
 0x2cc   :  { %1185 = vmatpush.msrb.mxu0 %v1146_v11 }
 0x2ce   :  { %1186 = vmatpush.msrb.mxu0 %v1145_v32 }
 0x2cf   :  { %3203 = vmatmul.msk.f32.gmra.mxu2 %vm154_vm2, %v4153_v44  ;;  %3216 = vmatmul.msk.f32.vlgmr.msrb.gmra.mxu0 %vm305_vm6, %v3958_v52  ;;  %v443_v38 = vpop.f32.mrf.mxu2  ;;  %v4296_v44 = vpop.permute.xlu1 %393 }
 0x2d0   :  { %1396 = vmatpush.msra.mxu0 %v4232_v31  ;;  %v4301_v52 = vadd.f32 %v443_v38, %v4298_v28 }
 0x2d2   :  { %v453_v45 = vsub.f32 0.0, %v4301_v52 }
 0x2d4   :  { %v458_v0 = vmul.f32 1.442695, %v453_v45 }
 0x2d6   :  { %3375 = vpow2.f32 %v458_v0 }
 0x2d7   :  { %3227 = vmatmul.msk.f32.vlgmr.msra.gmra.mxu0 %vm154_vm2, %v3918_v10  ;;  %v446_v16 = vpop.f32.mrf.mxu2  ;;  %v4303_v10 = vpop.permute.xlu0 %403 }
 0x2dc   :  { %v3376_v54 = vpop.eup %3375 }
 0x2dd   :  { %v465_v21 = vadd.f32 1.0, %v3376_v54 }
 0x2df   :  { %3228 = vmatmul.msk.f32.gmra.mxu0 %vm154_vm2, %v3928_v34  ;;  %v4306_v34 = vadd.f32 %v440_v6, %v4296_v44  ;;  %v449_v23 = vpop.f32.mrf.mxu2  ;;  %v492_v38 = vand.u32 2147483647, %v465_v21  ;;  %v494_v0 = vand.u32 2147483648, %v465_v21  ;;  %vm488_vm14 = vweird.f32 %v465_v21  ;;  %v4425_v54 = vpop.permute.xlu0 %539 }
 0x2e1   :  { %v452_v63 = vsub.f32 0.0, %v4306_v34  ;;  %vm4370_vm4 = vcmp.eq.f32.partialorder %v492_v38, 8.507059e+37 }
 0x2e3   :  { %v456_v3 = vmul.f32 1.442695, %v452_v63 }
 0x2e5   :  { %3377 = vpow2.f32 %v456_v3 }
 0x2e7   :  { %3229 = vmatmul.msk.f32.gmra.mxu0 %vm154_vm2, %v3943_v2  ;;  %v4309_v2 = vadd.f32 %v446_v16, %v4303_v10 }
 0x2e9   :  { %v454_v58 = vsub.f32 0.0, %v4309_v2 }
 0x2eb   :  { %v460_v26 = vmul.f32 1.442695, %v454_v58  ;;  %v3378_v15 = vpop.eup %3377 }
 0x2ec   :  { %v4320_v33 = vadd.f32 1.0, %v3378_v15 }
 0x2ed   :  { %3379 = vpow2.f32 %v460_v26 }
 0x2ee   :  { %v477_v11 = vand.u32 2147483647, %v4320_v33  ;;  %vm473_vm5 = vweird.f32 %v4320_v33  ;;  %v479_v6 = vand.u32 2147483648, %v4320_v33 }
 0x2ef   :  { %3230 = vmatmul.msk.f32.gmra.mxu0 %vm154_vm2, %v3967_v41  ;;  %v4311_v41 = vpop.permute.xlu1 %408 }
 0x2f0   :  { %v4315_v1 = vadd.f32 %v449_v23, %v4311_v41  ;;  %v983_v23 = vadd.f32 %v4224_v39, %v4052_v62  ;;  %vm4358_vm13 = vcmp.eq.f32.partialorder %v477_v11, 8.507059e+37 }
 0x2f2   :  { %v455_v22 = vsub.f32 0.0, %v4315_v1 }
 0x2f3   :  { %v3380_v19 = vpop.eup %3379 }
 0x2f4   :  { %v462_v29 = vmul.f32 1.442695, %v455_v22  ;;  %v4322_v36 = vadd.f32 1.0, %v3380_v19 }
 0x2f6   :  { %3381 = vpow2.f32 %v462_v29  ;;  %vm503_vm3 = vweird.f32 %v4322_v36  ;;  %v509_v19 = vand.u32 2147483648, %v4322_v36 }
 0x2f7   :  { %3383 = vrcp.f32 %v465_v21 }
 0x2f8   :  { %3385 = vrcp.f32 %v4320_v33 }
 0x2f9   :  { %3387 = vrcp.f32 %v4322_v36 }
 0x2fc   :  { %v3382_v25 = vpop.eup %3381 }
 0x2fd   :  { %v4324_v12 = vadd.f32 1.0, %v3382_v25  ;;  %v3384_v60 = vpop.eup %3383 }
 0x2fe   :  { %v4329_v59 = vpop.eup %3385  ;;  %v484_v43 = vmul.f32 %v3384_v60, %v465_v21  ;;  %vm489_vm11 = vweird.f32 %v3384_v60 }
 0x2ff   :  { %3389 = vrcp.f32 %v4324_v12  ;;  %v4331_v4 = vpop.eup %3387  ;;  %v469_v48 = vmul.f32 %v4329_v59, %v4320_v33  ;;  %vm474_vm12 = vweird.f32 %v4329_v59  ;;  %vm4366_vm15 = vmor %vm488_vm14, %vm489_vm11 }
 0x300   :  { %v499_v7 = vmul.f32 %v4331_v4, %v4322_v36  ;;  %v485_v51 = vsub.f32 1.0, %v484_v43  ;;  %vm504_vm10 = vweird.f32 %v4331_v4  ;;  %vm4379_vm7 = vmor %vm473_vm5, %vm474_vm12  ;;  %vm518_vm5 = vweird.f32 %v4324_v12 }
 0x301   :  { %v470_v49 = vsub.f32 1.0, %v469_v48  ;;  %v507_v48 = vand.u32 2147483647, %v4322_v36  ;;  %vm4393_vm9 = vmor %vm503_vm3, %vm504_vm10 }
 0x302   :  { %v500_v55 = vsub.f32 1.0, %v499_v7  ;;  %v486_v47 = vmul.f32 %v3384_v60, %v485_v51 }
 0x303   :  { %v471_v5 = vmul.f32 %v4329_v59, %v470_v49  ;;  %vm508_vm12 = vcmp.eq.f32.partialorder %v507_v48, 8.507059e+37 }
 0x304   :  { %v501_v32 = vmul.f32 %v4331_v4, %v500_v55  ;;  %v487_v16 = vadd.f32 %v3384_v60, %v486_v47  ;;  %v522_v55 = vand.u32 2147483647, %v4324_v12  ;;  %v480_v47 = vor.u32 1.1754944e-38, %v479_v6 }
 0x305   :  { %v4333_v56 = vpop.eup %3389  ;;  %v472_v58 = vadd.f32 %v4329_v59, %v471_v5  ;;  %v510_v5 = vor.u32 1.1754944e-38, %v509_v19 }
 0x306   :  { %v514_v8 = vmul.f32 %v4333_v56, %v4324_v12  ;;  %v502_v26 = vadd.f32 %v4331_v4, %v501_v32  ;;  %v491_v43 = vsel %vm4366_vm15, %v3384_v60, %v487_v16  ;;  %vm519_vm8 = vweird.f32 %v4333_v56 }
 0x307   :  { %v524_v60 = vand.u32 2147483648, %v4324_v12  ;;  %vm520_vm11 = vmor %vm518_vm5, %vm519_vm8  ;;  %vm523_vm14 = vcmp.eq.f32.partialorder %v522_v55, 8.507059e+37 }
 0x308   :  { %v515_v20 = vsub.f32 1.0, %v514_v8  ;;  %v476_v8 = vsel %vm4379_vm7, %v4329_v59, %v472_v58  ;;  %v506_v36 = vsel %vm4393_vm9, %v4331_v4, %v502_v26  ;;  %v4405_v59 = vpop.permute.xlu2 %534  ;;  %v1369_v58 = vpop.f32.mrf.mxu3 }
 0x309   :  { %v481_v11 = vsel %vm4358_vm13, %v480_v47, %v476_v8  ;;  %v511_v32 = vsel %vm508_vm12, %v510_v5, %v506_v36  ;;  %v525_v6 = vor.u32 1.1754944e-38, %v524_v60 }
 0x30a   :  { %v516_v45 = vmul.f32 %v4333_v56, %v515_v20 }
 0x30c   :  { %v517_v7 = vadd.f32 %v4333_v56, %v516_v45 }
 0x30e   :  { %v521_v4 = vsel %vm520_vm11, %v4333_v56, %v517_v7  ;;  %v528_v56 = vmul.f32 %v481_v11, %v4306_v34 }
 0x30f   :  { %v526_v45 = vsel %vm523_vm14, %v525_v6, %v521_v4 }
 0x310   :  { %v4440_v8 = vpop.permute.xlu2 %549 }
 0x33a   :  { %v871_v24 = vpop.f32.mrf.mxu2 }
 0x33b   :  { %v4342_v17 = vadd.f32 %v871_v24, %v4296_v44  ;;  %v495_v24 = vor.u32 1.1754944e-38, %v494_v0  ;;  %v530_v0 = vmul.f32 %v511_v32, %v4309_v2  ;;  %v4434_v2 = vpop.permute.xlu1 %544 }
 0x33d   :  { %v883_v57 = vsub.f32 0.0, %v4342_v17  ;;  %v496_v20 = vsel %vm4370_vm4, %v495_v24, %v491_v43  ;;  %v531_v43 = vmul.f32 %v526_v45, %v4315_v1 }
 0x33e   :  { %v529_v16 = vmul.f32 %v496_v20, %v4301_v52 }
 0x33f   :  { %v887_v27 = vmul.f32 1.442695, %v883_v57  ;;  %v555_v55 = vmul.f32 %v4440_v8, %v531_v43 }
 0x340   :  { %v553_v25 = vmul.f32 %v4425_v54, %v529_v16 }
 0x341   :  { %3391 = vpow2.f32 %v887_v27  ;;  %v984_v27 = vmul.f32 0.5, %v983_v23 }
 0x342   :  { %v874_v63 = vpop.f32.mrf.mxu2 }
 0x343   :  { %v4356_v22 = vadd.f32 %v874_v63, %v4298_v28  ;;  %v985_v15 = vsub.f32 %v4052_v62, %v984_v27  ;;  %v988_v52 = vsub.f32 %v4224_v39, %v984_v27  ;;  %v554_v62 = vmul.f32 %v4434_v2, %v530_v0 }
 0x344   :  { %v4364_v29 = vpop.f32.mrf.mxu0 }
 0x345   :  { %v884_v21 = vsub.f32 0.0, %v4356_v22  ;;  %v986_v24 = vmul.f32 %v985_v15, %v985_v15  ;;  %v989_v36 = vmul.f32 %v988_v52, %v988_v52  ;;  %v559_v11 = vsel %vm305_vm6, %v554_v62, 0.0 }
 0x347   :  { %v3392_v51 = vpop.eup %3391  ;;  %v889_v49 = vmul.f32 1.442695, %v884_v21  ;;  %v990_v43 = vadd.f32 %v989_v36, %v986_v24 }
 0x348   :  { %v4403_v57 = vadd.f32 1.0, %v3392_v51  ;;  %v552_v51 = vmul.f32 %v4405_v59, %v528_v56 }
 0x349   :  { %3393 = vpow2.f32 %v889_v49  ;;  %v557_v49 = vsel %vm305_vm6, %v553_v25, 0.0  ;;  %v4468_v24 = vmul.f32 0.5, %v990_v43 }
 0x34a   :  { %3395 = vrcp.f32 %v4403_v57  ;;  %v877_v12 = vpop.f32.mrf.mxu2  ;;  %v910_v47 = vand.u32 2147483648, %v4403_v57  ;;  %v908_v32 = vand.u32 2147483647, %v4403_v57  ;;  %vm904_vm10 = vweird.f32 %v4403_v57 }
 0x34b   :  { %v4416_v38 = vadd.f32 %v877_v12, %v4303_v10  ;;  %v556_v12 = vsel %vm305_vm6, %v552_v51, 0.0 }
 0x34c   :  { %v1188_v63 = vpop.f32.mrf.mxu0  ;;  %v558_v0 = vadd.f32 %v557_v49, %v556_v12  ;;  %vm909_vm4 = vcmp.eq.f32.partialorder %v908_v32, 8.507059e+37 }
 0x34d   :  { %v885_v23 = vsub.f32 0.0, %v4416_v38  ;;  %v4423_v3 = vadd.f32 %v1188_v63, %v4001_v13  ;;  %v1372_v63 = vpop.f32.mrf.mxu3 }
 0x34f   :  { %v3394_v26 = vpop.eup %3393  ;;  %v891_v19 = vmul.f32 1.442695, %v885_v23  ;;  %v1192_v34 = vand.u32 2147483647, %v4423_v3 }
 0x350   :  { %v3396_v21 = vpop.eup %3395  ;;  %v4431_v48 = vadd.f32 1.0, %v3394_v26  ;;  %v561_v26 = vsel %vm305_vm6, %v555_v55, 0.0 }
 0x351   :  { %v900_v7 = vmul.f32 %v3396_v21, %v4403_v57  ;;  %3397 = vpow2.f32 %v891_v19  ;;  %v1193_v33 = vsub.f32 0.0, %v1192_v34  ;;  %vm905_vm13 = vweird.f32 %v3396_v21 }
 0x352   :  { %3399 = vrcp.f32 %v4431_v48  ;;  %v880_v39 = vpop.f32.mrf.mxu2  ;;  %vm906_vm15 = vmor %vm904_vm10, %vm905_vm13  ;;  %v911_v19 = vor.u32 1.1754944e-38, %v910_v47  ;;  %v925_v62 = vand.u32 2147483648, %v4431_v48  ;;  %vm919_vm7 = vweird.f32 %v4431_v48 }
 0x353   :  { %v901_v1 = vsub.f32 1.0, %v900_v7  ;;  %v4443_v60 = vadd.f32 %v880_v39, %v4311_v41  ;;  %v1194_v5 = vmul.f32 1.442695, %v1193_v33 }
 0x354   :  { %v1398_v4 = vpop.f32.mrf.mxu0 }
 0x355   :  { %v902_v20 = vmul.f32 %v3396_v21, %v901_v1  ;;  %v886_v27 = vsub.f32 0.0, %v4443_v60  ;;  %v1399_v6 = vadd.f32 %v1398_v4, %v1369_v58  ;;  %3401 = vpow2.f32 %v1194_v5 }
 0x356   :  { %v560_v58 = vadd.f32 %v559_v11, %v558_v0  ;;  %v923_v1 = vand.u32 2147483647, %v4431_v48  ;;  %v926_v11 = vor.u32 1.1754944e-38, %v925_v62 }
 0x357   :  { %v3398_v16 = vpop.eup %3397  ;;  %v903_v45 = vadd.f32 %v3396_v21, %v902_v20  ;;  %v893_v23 = vmul.f32 1.442695, %v886_v27  ;;  %v4460_v57 = vadd.f32 %v1399_v6, %v4006_v30 }
 0x358   :  { %v3400_v56 = vpop.eup %3399  ;;  %v4455_v15 = vadd.f32 1.0, %v3398_v16  ;;  %v4462_v51 = vadd.f32 %v561_v26, %v560_v58  ;;  %vm924_vm9 = vcmp.eq.f32.partialorder %v923_v1, 8.507059e+37 }
 0x359   :  { %v907_v52 = vsel %vm906_vm15, %v3396_v21, %v903_v45  ;;  %v915_v25 = vmul.f32 %v3400_v56, %v4431_v48  ;;  %3403 = vpow2.f32 %v893_v23  ;;  %vm920_vm3 = vweird.f32 %v3400_v56  ;;  %v1375_v45 = vpop.f32.mrf.mxu3 }
 0x35a   :  { %3405 = vrcp.f32 %v4455_v15  ;;  %v912_v34 = vsel %vm909_vm4, %v911_v19, %v907_v52  ;;  %v1414_v47 = vsub.f32 0.0, %v4460_v57  ;;  %v563_v12 = vrot.slane %v4462_v51, 4  ;;  %vm921_vm8 = vmor %vm919_vm7, %vm920_vm3 }
 0x35b   :  { %v916_v7 = vsub.f32 1.0, %v915_v25  ;;  %v3402_v39 = vpop.eup %3401  ;;  %v959_v49 = vmul.f32 %v912_v34, %v4342_v17  ;;  %v1191_v52 = vmax.f32 %v4423_v3, 0.0  ;;  %vm934_vm5 = vweird.f32 %v4455_v15 }
 0x35c   :  { %v1401_v33 = vpop.f32.mrf.mxu0  ;;  %v1196_v55 = vadd.f32 1.0, %v3402_v39  ;;  %v1199_v27 = vmul.f32 -0.5, %v3402_v39  ;;  %v1202_v25 = vand.u32 2147483647, %v3402_v39 }
 0x35d   :  { %v917_v21 = vmul.f32 %v3400_v56, %v916_v7  ;;  %v1402_v20 = vadd.f32 %v1401_v33, %v1372_v63  ;;  %v963_v23 = vmul.f32 %v959_v49, %v4405_v59  ;;  %v1418_v63 = vmul.f32 1.442695, %v1414_v47 }
 0x35e   :  { %3407 = vlog2.f32 %v1196_v55  ;;  %v1200_v19 = vadd.f32 1.0, %v1199_v27  ;;  %v938_v7 = vand.u32 2147483647, %v4455_v15  ;;  %vm1203_vm14 = vcmp.lt.f32.partialorder %v1202_v25, 0.0004427343 }
 0x35f   :  { %v3404_v5 = vpop.eup %3403  ;;  %v918_v36 = vadd.f32 %v3400_v56, %v917_v21  ;;  %v4476_v16 = vadd.f32 %v1402_v20, %v4011_v42 }
 0x360   :  { %v3406_v4 = vpop.eup %3405  ;;  %v4472_v32 = vadd.f32 1.0, %v3404_v5  ;;  %v1201_v47 = vmul.f32 %v3402_v39, %v1200_v19  ;;  %vm939_vm13 = vcmp.eq.f32.partialorder %v938_v7, 8.507059e+37 }
 0x361   :  { %v922_v17 = vsel %vm921_vm8, %v3400_v56, %v918_v36  ;;  %v930_v6 = vmul.f32 %v3406_v4, %v4455_v15  ;;  %v940_v56 = vand.u32 2147483648, %v4455_v15  ;;  %v1415_v58 = vsub.f32 0.0, %v4476_v16  ;;  %v1378_v15 = vpop.f32.mrf.mxu3 }
 0x362   :  { %v927_v48 = vsel %vm924_vm9, %v926_v11, %v922_v17  ;;  %3409 = vrcp.f32 %v4472_v32  ;;  %vm935_vm11 = vweird.f32 %v3406_v4  ;;  %v955_v19 = vand.u32 2147483648, %v4472_v32 }
 0x363   :  { %v960_v0 = vmul.f32 %v927_v48, %v4356_v22  ;;  %v931_v26 = vsub.f32 1.0, %v930_v6  ;;  %v967_v22 = vsel %vm305_vm6, %v963_v23, 0.0  ;;  %3411 = vpow2.f32 %v1418_v63  ;;  %vm936_vm12 = vmor %vm934_vm5, %vm935_vm11 }
 0x364   :  { %v1404_v62 = vpop.f32.mrf.mxu0  ;;  %v3408_v21 = vpop.eup %3407  ;;  %v1420_v3 = vmul.f32 1.442695, %v1415_v58  ;;  %v941_v36 = vor.u32 1.1754944e-38, %v940_v56  ;;  %v953_v58 = vand.u32 2147483647, %v4472_v32  ;;  %vm949_vm15 = vweird.f32 %v4472_v32 }
 0x365   :  { %v964_v43 = vmul.f32 %v960_v0, %v4425_v54  ;;  %v932_v34 = vmul.f32 %v3406_v4, %v931_v26  ;;  %v1405_v1 = vadd.f32 %v1404_v62, %v1375_v45  ;;  %v1198_v55 = vmul.f32 0.6931472, %v3408_v21 }
 0x366   :  { %3413 = vpow2.f32 %v1420_v3  ;;  %v956_v3 = vor.u32 1.1754944e-38, %v955_v19  ;;  %vm954_vm3 = vcmp.eq.f32.partialorder %v953_v58, 8.507059e+37 }
 0x367   :  { %v968_v33 = vsel %vm305_vm6, %v964_v43, 0.0  ;;  %v933_v49 = vadd.f32 %v3406_v4, %v932_v34  ;;  %v4492_v27 = vadd.f32 %v1405_v1, %v4018_v61  ;;  %v1204_v17 = vsel %vm1203_vm14, %v1201_v47, %v1198_v55 }
 0x368   :  { %v3410_v20 = vpop.eup %3409  ;;  %v969_v5 = vadd.f32 %v968_v33, %v967_v22  ;;  %v1205_v23 = vadd.f32 %v1204_v17, %v1191_v52  ;;  %v992_v43 = vsel %vm305_vm6, %v4468_v24, 0.0 }
 0x369   :  { %v937_v11 = vsel %vm936_vm12, %v3406_v4, %v933_v49  ;;  %v945_v6 = vmul.f32 %v3410_v20, %v4472_v32  ;;  %v1416_v39 = vsub.f32 0.0, %v4492_v27  ;;  %v3412_v0 = vpop.eup %3411  ;;  %vm950_vm10 = vweird.f32 %v3410_v20 }
 0x36a   :  { %v942_v45 = vsel %vm939_vm13, %v941_v36, %v937_v11  ;;  %v4497_v26 = vadd.f32 0.001, %v1205_v23  ;;  %vm951_vm4 = vmor %vm949_vm15, %vm950_vm10  ;;  %v4510_v1 = vadd.f32 1.0, %v3412_v0  ;;  %v993_v33 = vrot.slane %v992_v43, 4 }
 0x36b   :  { %v961_v48 = vmul.f32 %v942_v45, %v4416_v38  ;;  %v946_v63 = vsub.f32 1.0, %v945_v6  ;;  %v1422_v56 = vmul.f32 1.442695, %v1416_v39  ;;  %v564_v38 = vadd.f32 %v563_v12, %v4462_v51 }
 0x36c   :  { %v1407_v52 = vpop.f32.mrf.mxu0  ;;  %3415 = vrsqrt.f32 %v4497_v26  ;;  %v3414_v21 = vpop.eup %3413  ;;  %v994_v17 = vadd.f32 %v993_v33, %v992_v43  ;;  %v1167_v43 = vadd.f32 %v4364_v29, %v4037_v46  ;;  %vm1217_vm7 = vcmp.eq.f32.partialorder %v4497_v26, inf }
 0x36d   :  { %v965_v4 = vmul.f32 %v961_v48, %v4434_v2  ;;  %v947_v25 = vmul.f32 %v3410_v20, %v946_v63  ;;  %v1408_v34 = vadd.f32 %v1407_v52, %v1378_v15  ;;  %3417 = vpow2.f32 %v1422_v56  ;;  %v573_v52 = vpop.permute.xlu0 %572 }
 0x36e   :  { %v4515_v12 = vadd.f32 1.0, %v3414_v21  ;;  %v565_v47 = vrot.slane %v564_v38, 2  ;;  %3419 = vrcp.f32 %v4510_v1  ;;  %v995_v63 = vrot.slane %v994_v17, 2 }
 0x36f   :  { %v970_v7 = vsel %vm305_vm6, %v965_v4, 0.0  ;;  %v948_v62 = vadd.f32 %v3410_v20, %v947_v25  ;;  %v4513_v24 = vadd.f32 %v1408_v34, %v4004_v18  ;;  %v4539_v33 = vperm.slane %v573_v52, 0 }
 0x370   :  { %v971_v22 = vadd.f32 %v970_v7, %v969_v5  ;;  %3421 = vrcp.f32 %v4515_v12  ;;  %v566_v23 = vadd.f32 %v565_v47, %v564_v38  ;;  %v996_v34 = vadd.f32 %v995_v63, %v994_v17 }
 0x371   :  { %v952_v51 = vsel %vm951_vm4, %v3410_v20, %v948_v62  ;;  %v1417_v55 = vsub.f32 0.0, %v4513_v24  ;;  %v4544_v29 = vclamps-f32 %v1167_v43, 20.0  ;;  %vm1219_vm8 = vcmp.eq.f32.partialorder %v4497_v26, 0.0 }
 0x372   :  { %v957_v49 = vsel %vm954_vm3, %v956_v3, %v952_v51  ;;  %v3416_v36 = vpop.eup %3415  ;;  %v567_v4 = vrot.slane %v566_v23, 1  ;;  %vm1435_vm9 = vweird.f32 %v4510_v1  ;;  %vm1450_vm15 = vweird.f32 %v4515_v12 }
 0x373   :  { %v962_v32 = vmul.f32 %v957_v49, %v4443_v60  ;;  %v1424_v5 = vmul.f32 1.442695, %v1417_v55  ;;  %v3418_v11 = vpop.eup %3417  ;;  %v1211_v20 = vmul.f32 %v3416_v36, %v4497_v26  ;;  %v1209_v63 = vadd.f32 %v4544_v29, %v4069_v35 }
 0x374   :  { %v4523_v45 = vadd.f32 1.0, %v3418_v11  ;;  %v4527_v0 = vpop.eup %3419  ;;  %v568_v51 = vadd.f32 %v567_v4, %v566_v23  ;;  %v1220_v11 = vand.u32 2147483648, %v4497_v26 }
 0x375   :  { %v966_v6 = vmul.f32 %v962_v32, %v4440_v8  ;;  %3423 = vpow2.f32 %v1424_v5  ;;  %v1212_v48 = vmul.f32 %v3416_v36, %v1211_v20  ;;  %v1431_v49 = vmul.f32 %v4527_v0, %v4510_v1  ;;  %v3217_v5 = vld [vmem:[%s5716_s1 + $0x10] sm:$0xff] }
 0x376   :  { %3425 = vrcp.f32 %v4523_v45  ;;  %v4529_v56 = vpop.eup %3421  ;;  %vm1465_vm5 = vweird.f32 %v4523_v45  ;;  %vm1436_vm11 = vweird.f32 %v4527_v0 }
 0x377   :  { %v972_v39 = vsel %vm305_vm6, %v966_v6, 0.0  ;;  %v1213_v15 = vmul.f32 0.5, %v1212_v48  ;;  %v1446_v3 = vmul.f32 %v4529_v56, %v4515_v12  ;;  %vm1451_vm14 = vweird.f32 %v4529_v56 }
 0x378   :  { %v973_v60 = vadd.f32 %v972_v39, %v971_v22  ;;  %v576_v39 = vadd.f32 %v4539_v33, %v568_v51  ;;  %vm4613_vm3 = vmor %vm1450_vm15, %vm1451_vm14 }
 0x379   :  { %v1214_v25 = vsub.f32 1.5, %v1213_v15  ;;  %v1447_v23 = vsub.f32 1.0, %v1446_v3 }
 0x37a   :  { %v974_v19 = vrot.slane %v973_v60, 4 }
 0x37b   :  { %v3424_v58 = vpop.eup %3423  ;;  %v1215_v62 = vmul.f32 %v3416_v36, %v1214_v25  ;;  %v997_v36 = vrot.slane %v996_v34, 1 }
 0x37c   :  { %v975_v38 = vadd.f32 %v974_v19, %v973_v60  ;;  %v4533_v7 = vadd.f32 1.0, %v3424_v58  ;;  %v4535_v21 = vpop.eup %3425  ;;  %v1432_v60 = vsub.f32 1.0, %v1431_v49 }
 0x37d   :  { %v1216_v47 = vmul.f32 %v1215_v62, %v4497_v26  ;;  %v1461_v32 = vmul.f32 %v4535_v21, %v4523_v45  ;;  %v998_v58 = vadd.f32 %v997_v36, %v996_v34  ;;  %v1469_v62 = vand.u32 2147483647, %v4523_v45  ;;  %v4572_v34 = vld [vmem:[%s5707_s0 + $0x8] sm:$0xf]  ;;  %v3620_v36 = vld [vmem:[%s5713_s3] sm:$0xff] }
 0x37e   :  { %v976_v22 = vrot.slane %v975_v38, 2  ;;  %3427 = vrcp.f32 %v4533_v7  ;;  %v1433_v35 = vmul.f32 %v4527_v0, %v1432_v60  ;;  %vm1466_vm12 = vweird.f32 %v4535_v21 }
 0x37f   :  { %v1218_v6 = vsel %vm1217_vm7, %v4497_v26, %v1216_v47  ;;  %v1462_v20 = vsub.f32 1.0, %v1461_v32  ;;  %v1448_v26 = vmul.f32 %v4529_v56, %v1447_v23  ;;  %v1484_v49 = vand.u32 2147483647, %v4533_v7  ;;  %v4584_v47 = vld [vmem:[%s5717_s10] sm:$0xff]  ;;  %vm4599_vm10 = vmor %vm1465_vm5, %vm1466_vm12 }
 0x380   :  { %v977_v55 = vadd.f32 %v976_v22, %v975_v38  ;;  %v1221_v48 = vsel %vm1219_vm8, %v1220_v11, %v1218_v6  ;;  %v1471_v32 = vand.u32 2147483648, %v4523_v45  ;;  %v1456_v23 = vand.u32 2147483648, %v4515_v12  ;;  %vm1437_vm12 = vmor %vm1435_vm9, %vm1436_vm11 }
 0x381   :  { %v1222_v19 = vmul.f32 %v3217_v5, %v1221_v48  ;;  %v1463_v4 = vmul.f32 %v4535_v21, %v1462_v20  ;;  %v1454_v20 = vand.u32 2147483647, %v4515_v12  ;;  %vm1480_vm4 = vweird.f32 %v4533_v7 }
 0x382   :  { %v978_v17 = vrot.slane %v977_v55, 1  ;;  %v1472_v12 = vor.u32 1.1754944e-38, %v1471_v32  ;;  %vm1485_vm8 = vcmp.eq.f32.partialorder %v1484_v49, 8.507059e+37  ;;  %vm1470_vm5 = vcmp.eq.f32.partialorder %v1469_v62, 8.507059e+37  ;;  %v3627_v49 = vld [vmem:[%s5715_s8 + $0x8] sm:$0xff]  ;;  %v3629_v32 = vld [vmem:[%s5708_s4] sm:$0xff] }
 0x383   :  { %v4561_v38 = vadd.f32 %v1222_v19, %v1209_v63  ;;  %v1464_v51 = vadd.f32 %v4535_v21, %v1463_v4  ;;  %v1439_v19 = vand.u32 2147483647, %v4510_v1  ;;  %v1441_v4 = vand.u32 2147483648, %v4510_v1  ;;  %v3622_v1 = vld [vmem:[%s5713_s3 + $0x8] sm:$0xff] }
 0x384   :  { %v979_v15 = vadd.f32 %v978_v17, %v977_v55  ;;  %v3428_v25 = vpop.eup %3427  ;;  %v1486_v55 = vand.u32 2147483648, %v4533_v7  ;;  %v1449_v17 = vadd.f32 %v4529_v56, %v1448_v26  ;;  %v1457_v26 = vor.u32 1.1754944e-38, %v1456_v23 }
 0x385   :  { %v1476_v43 = vmul.f32 %v3428_v25, %v4533_v7  ;;  %1239 = vmatpush.msra.mxu2 %v4561_v38  ;;  %1766 = vmatpush.msrb.mxu3 %v4561_v38  ;;  %vm1481_vm13 = vweird.f32 %v3428_v25  ;;  %v1468_v60 = vsel %vm4599_vm10, %v4535_v21, %v1464_v51  ;;  %vm1455_vm14 = vcmp.eq.f32.partialorder %v1454_v20, 8.507059e+37  ;;  %v4647_v51 = vld [vmem:[%s5717_s10 + $0x10] sm:$0xff] }
 0x386   :  { %v980_v52 = vadd.f32 %v979_v15, %v576_v39  ;;  %3218 = vmatmul.msk.f32.vlgmr.msra.gmra.mxu2 %vm154_vm2, %v4584_v47  ;;  %3245 = vmatmul.msk.f32.vlgmr.msrb.gmra.mxu3 %vm154_vm2, %v3620_v36  ;;  %v1434_v39 = vadd.f32 %v4527_v0, %v1433_v35  ;;  %vm1482_vm7 = vmor %vm1480_vm4, %vm1481_vm13  ;;  %v1487_v15 = vor.u32 1.1754944e-38, %v1486_v55  ;;  %v1453_v21 = vsel %vm4613_vm3, %v4529_v56, %v1449_v17  ;;  %v3628_v55 = vld [vmem:[%s5713_s3 + $0x18] sm:$0xff]  ;;  %v3630_v36 = vld [vmem:[%s5708_s4 + $0x8] sm:$0xff] }
 0x387   :  { %v1477_v3 = vsub.f32 1.0, %v1476_v43  ;;  %3240 = vmatpush.msk.msrb.mxu2 %vm121_vm0, %v4572_v34  ;;  %v1473_v43 = vsel %vm1470_vm5, %v1472_v12, %v1468_v60  ;;  %v1458_v56 = vsel %vm1455_vm14, %v1457_v26, %v1453_v21  ;;  %v1442_v62 = vor.u32 1.1754944e-38, %v1441_v4 }
 0x388   :  { %v981_v22 = vadd.f32 %v980_v52, %v4539_v33  ;;  %v1438_v35 = vsel %vm1437_vm12, %v4527_v0, %v1434_v39  ;;  %vm1440_vm9 = vcmp.eq.f32.partialorder %v1439_v19, 8.507059e+37 }
 0x389   :  { %v1478_v11 = vmul.f32 %v3428_v25, %v1477_v3  ;;  %v1443_v0 = vsel %vm1440_vm9, %v1442_v62, %v1438_v35 }
 0x38a   :  { %v1000_v5 = vmul.f32 0.5, %v981_v22  ;;  %v1491_v22 = vmul.f32 %v1458_v56, %v4476_v16  ;;  %v1490_v3 = vmul.f32 %v1443_v0, %v4460_v57  ;;  %v3625_v57 = vld [vmem:[%s5713_s3 + $0x10] sm:$0xff]  ;;  %v4662_v16 = vld [vmem:[%s5717_s10 + $0x18] sm:$0xff] }
 0x38b   :  { %v1479_v48 = vadd.f32 %v3428_v25, %v1478_v11  ;;  %v3632_v11 = vld [vmem:[%s5708_s4 + $0x18] sm:$0xff] }
 0x38c   :  { %v4617_v63 = vadd.f32 %v1000_v5, %v998_v58  ;;  %v3631_v5 = vld [vmem:[%s5708_s4 + $0x10] sm:$0xff] }
 0x38d   :  { %v1483_v7 = vsel %vm1482_vm7, %v3428_v25, %v1479_v48  ;;  %v4633_v25 = vld [vmem:[%s5717_s10 + $0x8] sm:$0xff] }
 0x38e   :  { %v1488_v52 = vsel %vm1485_vm8, %v1487_v15, %v1483_v7  ;;  %3219 = vmatmul.msk.f32.gmra.mxu2 %vm154_vm2, %v4633_v25  ;;  %3246 = vmatmul.msk.f32.gmra.mxu3 %vm154_vm2, %v3622_v1 }
 0x38f   :  { %v1493_v58 = vmul.f32 %v1488_v52, %v4513_v24  ;;  %v1492_v24 = vmul.f32 %v1473_v43, %v4492_v27  ;;  %v3624_v27 = vld [vmem:[%s5714_s6 + $0x8] sm:$0xff] }
 0x391   :  { %1506 = vmatpush.msra.mxu1 %v1493_v58 }
 0x393   :  { %1507 = vmatpush.msra.mxu1 %v1492_v24 }
 0x395   :  { %1508 = vmatpush.msra.mxu1 %v1491_v22 }
 0x396   :  { %3220 = vmatmul.msk.f32.gmra.mxu2 %vm154_vm2, %v4647_v51  ;;  %3247 = vmatmul.msk.f32.gmra.mxu3 %vm154_vm2, %v3625_v57 }
 0x397   :  { %1509 = vmatpush.msra.mxu1 %v1490_v3 }
 0x398   :  { %3231 = vmatmul.msk.f32.vlgmr.msra.gmra.mxu1 %vm305_vm6, %v3624_v27 }
 0x399   :  { %1528 = vmatpush.msrb.mxu1 %v1493_v58 }
 0x39b   :  { %1529 = vmatpush.msrb.mxu1 %v1492_v24 }
 0x39d   :  { %1530 = vmatpush.msrb.mxu1 %v1491_v22 }
 0x39e   :  { %3221 = vmatmul.msk.f32.gmra.mxu2 %vm154_vm2, %v4662_v16  ;;  %3248 = vmatmul.msk.f32.gmra.mxu3 %vm154_vm2, %v3628_v55 }
 0x39f   :  { %1531 = vmatpush.msrb.mxu1 %v1490_v3 }
 0x3a0   :  { %3233 = vmatmul.msk.f32.vlgmr.msrb.gmra.mxu1 %vm305_vm6, %v3627_v49 }
 0x3a6   :  { %3241 = vmatmul.msk.f32.vlgmr.msrb.gmra.mxu2 %vm108_vm1, %v3629_v32 }
 0x3ae   :  { %3242 = vmatmul.msk.f32.gmra.mxu2 %vm108_vm1, %v3630_v36 }
 0x3b6   :  { %3243 = vmatmul.msk.f32.gmra.mxu2 %vm108_vm1, %v3631_v5 }
 0x3be   :  { %3244 = vmatmul.msk.f32.gmra.mxu2 %vm108_vm1, %v3632_v11 }
 0x409   :  { %v1241_v17 = vpop.f32.mrf.mxu2  ;;  %v1768_v36 = vpop.f32.mrf.mxu3 }
 0x40a   :  { %v4691_v6 = vadd.f32 %v1241_v17, %v4296_v44 }
 0x40c   :  { %v1253_v20 = vsub.f32 0.0, %v4691_v6 }
 0x40e   :  { %v1257_v23 = vmul.f32 1.442695, %v1253_v20 }
 0x410   :  { %3429 = vpow2.f32 %v1257_v23 }
 0x411   :  { %v1244_v39 = vpop.f32.mrf.mxu2 }
 0x412   :  { %v4695_v48 = vadd.f32 %v1244_v39, %v4298_v28 }
 0x414   :  { %v1254_v45 = vsub.f32 0.0, %v4695_v48 }
 0x415   :  { %v1511_v60 = vpop.f32.mrf.mxu1 }
 0x416   :  { %v1512_v15 = vadd.f32 %v1511_v60, %v4212_v14  ;;  %v3430_v12 = vpop.eup %3429  ;;  %v1259_v19 = vmul.f32 1.442695, %v1254_v45 }
 0x417   :  { %v1265_v7 = vadd.f32 1.0, %v3430_v12 }
 0x418   :  { %v4699_v4 = vclamps-f32 %v1512_v15, 20.0  ;;  %3431 = vpow2.f32 %v1259_v19 }
 0x419   :  { %3433 = vrcp.f32 %v1265_v7  ;;  %v1247_v52 = vpop.f32.mrf.mxu2  ;;  %v1280_v23 = vand.u32 2147483648, %v1265_v7  ;;  %v1278_v12 = vand.u32 2147483647, %v1265_v7  ;;  %vm1274_vm13 = vweird.f32 %v1265_v7 }
 0x41a   :  { %v1698_v21 = vadd.f32 %v4699_v4, %v4544_v29  ;;  %v4704_v26 = vadd.f32 %v1247_v52, %v4303_v10 }
 0x41b   :  { %vm1279_vm15 = vcmp.eq.f32.partialorder %v1278_v12, 8.507059e+37 }
 0x41c   :  { %v1699_v43 = vmul.f32 0.5, %v1698_v21  ;;  %v1255_v62 = vsub.f32 0.0, %v4704_v26 }
 0x41d   :  { %v1533_v58 = vpop.f32.mrf.mxu1 }
 0x41e   :  { %v1700_v35 = vsub.f32 %v4544_v29, %v1699_v43  ;;  %v1703_v56 = vsub.f32 %v4699_v4, %v1699_v43  ;;  %v4710_v1 = vadd.f32 %v1533_v58, %v4180_v9  ;;  %v3432_v24 = vpop.eup %3431  ;;  %v1261_v3 = vmul.f32 1.442695, %v1255_v62 }
 0x41f   :  { %v3434_v27 = vpop.eup %3433  ;;  %v1266_v57 = vadd.f32 1.0, %v3432_v24  ;;  %v1281_v24 = vor.u32 1.1754944e-38, %v1280_v23 }
 0x420   :  { %v1701_v0 = vmul.f32 %v1700_v35, %v1700_v35  ;;  %v1704_v22 = vmul.f32 %v1703_v56, %v1703_v56  ;;  %v1537_v49 = vand.u32 2147483647, %v4710_v1  ;;  %v1270_v55 = vmul.f32 %v3434_v27, %v1265_v7 }
 0x421   :  { %3435 = vpow2.f32 %v1261_v3  ;;  %v1250_v29 = vpop.f32.mrf.mxu2  ;;  %vm1275_vm11 = vweird.f32 %v3434_v27  ;;  %vm1289_vm3 = vweird.f32 %v1266_v57 }
 0x422   :  { %v1705_v32 = vadd.f32 %v1704_v22, %v1701_v0  ;;  %3437 = vrcp.f32 %v1266_v57  ;;  %v1271_v5 = vsub.f32 1.0, %v1270_v55  ;;  %v1538_v17 = vsub.f32 0.0, %v1537_v49  ;;  %vm1276_vm10 = vmor %vm1274_vm13, %vm1275_vm11 }
 0x423   :  { %v4714_v20 = vadd.f32 %v1250_v29, %v4311_v41 }
 0x424   :  { %v1706_v11 = vmul.f32 0.5, %v1705_v32  ;;  %v1272_v39 = vmul.f32 %v3434_v27, %v1271_v5  ;;  %v1539_v45 = vmul.f32 1.442695, %v1538_v17  ;;  %v1295_v32 = vand.u32 2147483648, %v1266_v57  ;;  %v1771_v5 = vpop.f32.mrf.mxu3 }
 0x425   :  { %v1256_v15 = vsub.f32 0.0, %v4714_v20 }
 0x426   :  { %v1707_v60 = vsel %vm305_vm6, %v1706_v11, 0.0  ;;  %v1273_v52 = vadd.f32 %v3434_v27, %v1272_v39  ;;  %3439 = vpow2.f32 %v1539_v45  ;;  %v1293_v39 = vand.u32 2147483647, %v1266_v57 }
 0x427   :  { %v1708_v19 = vrot.slane %v1707_v60, 4  ;;  %v3436_v21 = vpop.eup %3435  ;;  %v1263_v43 = vmul.f32 1.442695, %v1256_v15 }
 0x428   :  { %v3438_v58 = vpop.eup %3437  ;;  %v4718_v56 = vadd.f32 1.0, %v3436_v21  ;;  %v1277_v62 = vsel %vm1276_vm10, %v3434_v27, %v1273_v52  ;;  %v1296_v21 = vor.u32 1.1754944e-38, %v1295_v32  ;;  %vm1294_vm8 = vcmp.eq.f32.partialorder %v1293_v39, 8.507059e+37 }
 0x429   :  { %v1709_v35 = vadd.f32 %v1708_v19, %v1707_v60  ;;  %v1285_v0 = vmul.f32 %v3438_v58, %v1266_v57  ;;  %3441 = vpow2.f32 %v1263_v43  ;;  %v1739_v3 = vpop.f32.mrf.mxu2  ;;  %v1282_v49 = vsel %vm1279_vm15, %v1281_v24, %v1277_v62 }
 0x42a   :  { %3443 = vrcp.f32 %v4718_v56  ;;  %v1769_v29 = vadd.f32 %v1768_v36, %v1739_v3  ;;  %vm1290_vm4 = vweird.f32 %v3438_v58  ;;  %v1329_v27 = vmul.f32 %v1282_v49, %v4691_v6 }
 0x42b   :  { %v1710_v22 = vrot.slane %v1709_v35, 2  ;;  %v1286_v55 = vsub.f32 1.0, %v1285_v0  ;;  %vm1291_vm7 = vmor %vm1289_vm3, %vm1290_vm4  ;;  %v1310_v0 = vand.u32 2147483648, %v4718_v56  ;;  %vm1304_vm12 = vweird.f32 %v4718_v56 }
 0x42c   :  { %v3440_v11 = vpop.eup %3439  ;;  %v4723_v36 = vadd.f32 %v1769_v29, %v3886_v40  ;;  %v1333_v6 = vmul.f32 %v1329_v27, %v4405_v59 }
 0x42d   :  { %v1711_v7 = vadd.f32 %v1710_v22, %v1709_v35  ;;  %v1287_v17 = vmul.f32 %v3438_v58, %v1286_v55  ;;  %v1541_v60 = vadd.f32 1.0, %v3440_v11  ;;  %v1544_v12 = vmul.f32 -0.5, %v3440_v11 }
 0x42e   :  { %v1547_v32 = vand.u32 2147483647, %v3440_v11 }
 0x42f   :  { %v1712_v23 = vrot.slane %v1711_v7, 1  ;;  %v3442_v45 = vpop.eup %3441  ;;  %v1288_v15 = vadd.f32 %v3438_v58, %v1287_v17  ;;  %3445 = vlog2.f32 %v1541_v60  ;;  %v1545_v55 = vadd.f32 1.0, %v1544_v12 }
 0x430   :  { %v3444_v19 = vpop.eup %3443  ;;  %v4726_v62 = vadd.f32 1.0, %v3442_v45  ;;  %vm1548_vm9 = vcmp.lt.f32.partialorder %v1547_v32, 0.0004427343 }
 0x431   :  { %v1713_v52 = vadd.f32 %v1712_v23, %v1711_v7  ;;  %v1292_v43 = vsel %vm1291_vm7, %v3438_v58, %v1288_v15  ;;  %v1300_v35 = vmul.f32 %v3444_v19, %v4718_v56  ;;  %v1742_v22 = vpop.f32.mrf.mxu2  ;;  %v1536_v58 = vmax.f32 %v4710_v1, 0.0  ;;  %v1774_v1 = vpop.f32.mrf.mxu3 }
 0x432   :  { %v1297_v24 = vsel %vm1294_vm8, %v1296_v21, %v1292_v43  ;;  %3447 = vrcp.f32 %v4726_v62  ;;  %v1784_v7 = vsub.f32 0.0, %v4723_v36  ;;  %v1772_v29 = vadd.f32 %v1771_v5, %v1742_v22 }
 0x433   :  { %v4730_v57 = vadd.f32 %v1713_v52, %v4617_v63  ;;  %v1330_v3 = vmul.f32 %v1297_v24, %v4695_v48  ;;  %v1301_v49 = vsub.f32 1.0, %v1300_v35  ;;  %vm1305_vm5 = vweird.f32 %v3444_v19 }
 0x434   :  { %v1308_v63 = vand.u32 2147483647, %v4718_v56  ;;  %v1337_v23 = vsel %vm305_vm6, %v1333_v6, 0.0  ;;  %v1311_v48 = vor.u32 1.1754944e-38, %v1310_v0  ;;  %v4742_v60 = vadd.f32 %v1772_v29, %v3897_v53  ;;  %vm1306_vm14 = vmor %vm1304_vm12, %vm1305_vm5 }
 0x435   :  { %v1334_v17 = vmul.f32 %v1330_v3, %v4425_v54  ;;  %v1302_v39 = vmul.f32 %v3444_v19, %v1301_v49  ;;  %v3446_v27 = vpop.eup %3445  ;;  %v1546_v12 = vmul.f32 %v3440_v11, %v1545_v55  ;;  %v1788_v52 = vmul.f32 1.442695, %v1784_v7 }
 0x436   :  { %v1543_v5 = vmul.f32 0.6931472, %v3446_v27  ;;  %v1785_v43 = vsub.f32 0.0, %v4742_v60  ;;  %vm1309_vm11 = vcmp.eq.f32.partialorder %v1308_v63, 8.507059e+37  ;;  %v1325_v7 = vand.u32 2147483648, %v4726_v62 }
 0x437   :  { %v1338_v45 = vsel %vm305_vm6, %v1334_v17, 0.0  ;;  %v1303_v15 = vadd.f32 %v3444_v19, %v1302_v39  ;;  %3449 = vpow2.f32 %v1788_v52  ;;  %v1323_v39 = vand.u32 2147483647, %v4726_v62 }
 0x438   :  { %v1339_v21 = vadd.f32 %v1338_v45, %v1337_v23  ;;  %v3448_v35 = vpop.eup %3447  ;;  %v1549_v56 = vsel %vm1548_vm9, %v1546_v12, %v1543_v5  ;;  %v1790_v29 = vmul.f32 1.442695, %v1785_v43  ;;  %vm1319_vm10 = vweird.f32 %v4726_v62 }
 0x439   :  { %v1307_v6 = vsel %vm1306_vm14, %v3444_v19, %v1303_v15  ;;  %v1550_v0 = vadd.f32 %v1549_v56, %v1536_v58  ;;  %v1315_v22 = vmul.f32 %v3448_v35, %v4726_v62  ;;  %v1745_v3 = vpop.f32.mrf.mxu2  ;;  %vm1320_vm13 = vweird.f32 %v3448_v35 }
 0x43a   :  { %v1312_v24 = vsel %vm1309_vm11, %v1311_v48, %v1307_v6  ;;  %v1775_v17 = vadd.f32 %v1774_v1, %v1745_v3  ;;  %3451 = vpow2.f32 %v1790_v29  ;;  %v1777_v48 = vpop.f32.mrf.mxu3  ;;  %vm1321_vm15 = vmor %vm1319_vm10, %vm1320_vm13  ;;  %v1326_v1 = vor.u32 1.1754944e-38, %v1325_v7 }
 0x43b   :  { %v1331_v49 = vmul.f32 %v1312_v24, %v4704_v26  ;;  %v1551_v11 = vadd.f32 0.001, %v1550_v0  ;;  %v1316_v55 = vsub.f32 1.0, %v1315_v22  ;;  %vm1324_vm4 = vcmp.eq.f32.partialorder %v1323_v39, 8.507059e+37 }
 0x43c   :  { %v4751_v19 = vadd.f32 %v1775_v17, %v3884_v37 }
 0x43d   :  { %v1335_v32 = vmul.f32 %v1331_v49, %v4434_v2  ;;  %3453 = vrsqrt.f32 %v1551_v11  ;;  %v1317_v58 = vmul.f32 %v3448_v35, %v1316_v55  ;;  %v3450_v15 = vpop.eup %3449  ;;  %vm1562_vm3 = vcmp.eq.f32.partialorder %v1551_v11, inf }
 0x43e   :  { %v1786_v63 = vsub.f32 0.0, %v4751_v19  ;;  %v4758_v0 = vadd.f32 1.0, %v3450_v15  ;;  %vm1564_vm7 = vcmp.eq.f32.partialorder %v1551_v11, 0.0 }
 0x43f   :  { %v1340_v26 = vsel %vm305_vm6, %v1335_v32, 0.0  ;;  %v1318_v23 = vadd.f32 %v3448_v35, %v1317_v58 }
 0x440   :  { %v1341_v27 = vadd.f32 %v1340_v26, %v1339_v21  ;;  %v1792_v45 = vmul.f32 1.442695, %v1786_v63  ;;  %v3452_v52 = vpop.eup %3451  ;;  %vm1805_vm5 = vweird.f32 %v4758_v0 }
 0x441   :  { %v1322_v5 = vsel %vm1321_vm15, %v3448_v35, %v1318_v23  ;;  %v1748_v12 = vpop.f32.mrf.mxu2  ;;  %v4764_v3 = vadd.f32 1.0, %v3452_v52  ;;  %v1554_v52 = vadd.f32 %v4699_v4, %v4232_v31  ;;  %v3633_v31 = vld [vmem:[%s5713_s3 + $0x20] sm:$0xff] }
 0x442   :  { %v1327_v43 = vsel %vm1324_vm4, %v1326_v1, %v1322_v5  ;;  %3455 = vpow2.f32 %v1792_v45  ;;  %v1778_v6 = vadd.f32 %v1777_v48, %v1748_v12  ;;  %v1565_v48 = vand.u32 2147483648, %v1551_v11 }
 0x443   :  { %v3454_v56 = vpop.eup %3453  ;;  %v1332_v24 = vmul.f32 %v1327_v43, %v4714_v20  ;;  %3457 = vrcp.f32 %v4758_v0  ;;  %vm1820_vm13 = vweird.f32 %v4764_v3 }
 0x444   :  { %v4761_v21 = vadd.f32 %v1778_v6, %v3892_v50  ;;  %v1556_v62 = vmul.f32 %v3454_v56, %v1551_v11  ;;  %3459 = vrcp.f32 %v4764_v3 }
 0x445   :  { %v1336_v22 = vmul.f32 %v1332_v24, %v4440_v8 }
 0x446   :  { %v1787_v35 = vsub.f32 0.0, %v4761_v21  ;;  %v1557_v49 = vmul.f32 %v3454_v56, %v1556_v62 }
 0x447   :  { %v1342_v29 = vsel %vm305_vm6, %v1336_v22, 0.0 }
 0x448   :  { %v3456_v17 = vpop.eup %3455  ;;  %v4768_v55 = vadd.f32 %v1342_v29, %v1341_v27  ;;  %v1794_v20 = vmul.f32 1.442695, %v1787_v35  ;;  %v1558_v32 = vmul.f32 0.5, %v1557_v49  ;;  %v3234_v27 = vld [vmem:[%s5716_s1 + $0x18] sm:$0xff] }
 0x449   :  { %v4772_v7 = vadd.f32 1.0, %v3456_v17  ;;  %v4775_v26 = vpop.eup %3457 }
 0x44a   :  { %3461 = vpow2.f32 %v1794_v20  ;;  %v1559_v58 = vsub.f32 1.5, %v1558_v32  ;;  %v4777_v23 = vpop.eup %3459  ;;  %v1801_v22 = vmul.f32 %v4775_v26, %v4758_v0  ;;  %vm1806_vm10 = vweird.f32 %v4775_v26 }
 0x44b   :  { %3463 = vrcp.f32 %v4772_v7  ;;  %vm1835_vm8 = vweird.f32 %v4772_v7  ;;  %vm1821_vm14 = vweird.f32 %v4777_v23 }
 0x44c   :  { %v1560_v39 = vmul.f32 %v3454_v56, %v1559_v58  ;;  %v1816_v56 = vmul.f32 %v4777_v23, %v4764_v3  ;;  %v1802_v35 = vsub.f32 1.0, %v1801_v22  ;;  %vm4829_vm4 = vmor %vm1820_vm13, %vm1821_vm14  ;;  %v1811_v22 = vand.u32 2147483648, %v4758_v0 }
 0x44e   :  { %v1561_v63 = vmul.f32 %v1560_v39, %v1551_v11  ;;  %v1803_v32 = vmul.f32 %v4775_v26, %v1802_v35  ;;  %v1839_v39 = vand.u32 2147483647, %v4772_v7 }
 0x450   :  { %v3462_v1 = vpop.eup %3461  ;;  %v1563_v45 = vsel %vm1562_vm3, %v1551_v11, %v1561_v63  ;;  %v1817_v11 = vsub.f32 1.0, %v1816_v56  ;;  %v1841_v63 = vand.u32 2147483648, %v4772_v7 }
 0x451   :  { %v3464_v15 = vpop.eup %3463  ;;  %v1799_v5 = vadd.f32 1.0, %v3462_v1  ;;  %v1566_v12 = vsel %vm1564_vm7, %v1565_v48, %v1563_v45  ;;  %v1824_v45 = vand.u32 2147483647, %v4764_v3 }
 0x452   :  { %v1567_v43 = vmul.f32 %v3234_v27, %v1566_v12  ;;  %v1831_v6 = vmul.f32 %v3464_v15, %v4772_v7  ;;  %v1818_v17 = vmul.f32 %v4777_v23, %v1817_v11  ;;  %vm1836_vm12 = vweird.f32 %v3464_v15 }
 0x453   :  { %3465 = vrcp.f32 %v1799_v5  ;;  %v1856_v58 = vand.u32 2147483648, %v1799_v5  ;;  %v1854_v27 = vand.u32 2147483647, %v1799_v5  ;;  %vm4813_vm11 = vmor %vm1835_vm8, %vm1836_vm12  ;;  %v1826_v12 = vand.u32 2147483648, %v4764_v3 }
 0x454   :  { %v4787_v24 = vadd.f32 %v1567_v43, %v1554_v52  ;;  %v1832_v62 = vsub.f32 1.0, %v1831_v6  ;;  %v1819_v48 = vadd.f32 %v4777_v23, %v1818_v17  ;;  %v3634_v52 = vld [vmem:[%s5713_s3 + $0x28] sm:$0xff]  ;;  %vm1850_vm15 = vweird.f32 %v1799_v5  ;;  %vm1807_vm12 = vmor %vm1805_vm5, %vm1806_vm10 }
 0x455   :  { %v1804_v3 = vadd.f32 %v4775_v26, %v1803_v32  ;;  %v1857_v6 = vor.u32 1.1754944e-38, %v1856_v58  ;;  %v1842_v56 = vor.u32 1.1754944e-38, %v1841_v63  ;;  %vm1855_vm7 = vcmp.eq.f32.partialorder %v1854_v27, 8.507059e+37  ;;  %v3642_v32 = vld [vmem:[%s5708_s4 + $0x38] sm:$0xff] }
 0x456   :  { %1584 = vmatpush.msra.mxu1 %v4787_v24  ;;  %2111 = vmatpush.msra.mxu2 %v4787_v24  ;;  %v1833_v4 = vmul.f32 %v3464_v15, %v1832_v62  ;;  %v1809_v62 = vand.u32 2147483647, %v4758_v0  ;;  %vm1840_vm8 = vcmp.eq.f32.partialorder %v1839_v39, 8.507059e+37  ;;  %vm1825_vm14 = vcmp.eq.f32.partialorder %v1824_v45, 8.507059e+37  ;;  %v3635_v0 = vld [vmem:[%s5713_s3 + $0x30] sm:$0xff] }
 0x457   :  { %3235 = vmatmul.msk.f32.vlgmr.msra.gmra.mxu1 %vm154_vm2, %v4584_v47  ;;  %3262 = vmatmul.msk.f32.vlgmr.msra.gmra.mxu2 %vm154_vm2, %v3633_v31  ;;  %v1812_v17 = vor.u32 1.1754944e-38, %v1811_v22 }
 0x458   :  { %3257 = vmatpush.msk.msrb.mxu1 %vm121_vm0, %v4572_v34  ;;  %v1834_v20 = vadd.f32 %v3464_v15, %v1833_v4  ;;  %v1827_v4 = vor.u32 1.1754944e-38, %v1826_v12 }
 0x459   :  { %v3466_v49 = vpop.eup %3465 }
 0x45a   :  { %v1846_v29 = vmul.f32 %v3466_v49, %v1799_v5  ;;  %vm1851_vm9 = vweird.f32 %v3466_v49  ;;  %v1838_v7 = vsel %vm4813_vm11, %v3464_v15, %v1834_v20  ;;  %v1823_v15 = vsel %vm4829_vm4, %v4777_v23, %v1819_v48  ;;  %v3641_v20 = vld [vmem:[%s5708_s4 + $0x30] sm:$0xff] }
 0x45b   :  { %vm1852_vm3 = vmor %vm1850_vm15, %vm1851_vm9  ;;  %v1843_v31 = vsel %vm1840_vm8, %v1842_v56, %v1838_v7  ;;  %vm1810_vm9 = vcmp.eq.f32.partialorder %v1809_v62, 8.507059e+37 }
 0x45c   :  { %v1847_v47 = vsub.f32 1.0, %v1846_v29  ;;  %v1808_v29 = vsel %vm1807_vm12, %v4775_v26, %v1804_v3 }
 0x45d   :  { %v1813_v23 = vsel %vm1810_vm9, %v1812_v17, %v1808_v29 }
 0x45e   :  { %v1848_v34 = vmul.f32 %v3466_v49, %v1847_v47  ;;  %v1862_v47 = vmul.f32 %v1843_v31, %v4751_v19  ;;  %v1860_v26 = vmul.f32 %v1813_v23, %v4723_v36  ;;  %v3636_v19 = vld [vmem:[%s5714_s6] sm:$0xff] }
 0x45f   :  { %3236 = vmatmul.msk.f32.gmra.mxu1 %vm154_vm2, %v4633_v25  ;;  %3263 = vmatmul.msk.f32.gmra.mxu2 %vm154_vm2, %v3634_v52  ;;  %v3638_v36 = vld [vmem:[%s5715_s8] sm:$0xff] }
 0x460   :  { %v1849_v25 = vadd.f32 %v3466_v49, %v1848_v34 }
 0x462   :  { %v1853_v5 = vsel %vm1852_vm3, %v3466_v49, %v1849_v25  ;;  %v1828_v49 = vsel %vm1825_vm14, %v1827_v4, %v1823_v15 }
 0x463   :  { %v1858_v11 = vsel %vm1855_vm7, %v1857_v6, %v1853_v5 }
 0x464   :  { %v1863_v35 = vmul.f32 %v1858_v11, %v4761_v21  ;;  %v1861_v21 = vmul.f32 %v1828_v49, %v4742_v60  ;;  %v3639_v60 = vld [vmem:[%s5708_s4 + $0x20] sm:$0xff] }
 0x466   :  { %1876 = vmatpush.msrb.mxu0 %v1863_v35 }
 0x467   :  { %3237 = vmatmul.msk.f32.gmra.mxu1 %vm154_vm2, %v4647_v51  ;;  %3264 = vmatmul.msk.f32.gmra.mxu2 %vm154_vm2, %v3635_v0  ;;  %v3637_v51 = vld [vmem:[%s5713_s3 + $0x38] sm:$0xff] }
 0x468   :  { %1877 = vmatpush.msrb.mxu0 %v1862_v47 }
 0x46a   :  { %1878 = vmatpush.msrb.mxu0 %v1861_v21 }
 0x46c   :  { %1879 = vmatpush.msrb.mxu0 %v1860_v26 }
 0x46d   :  { %3249 = vmatmul.msk.f32.vlgmr.msrb.gmra.mxu0 %vm305_vm6, %v3636_v19 }
 0x46e   :  { %1898 = vmatpush.msra.mxu0 %v1863_v35 }
 0x46f   :  { %3238 = vmatmul.msk.f32.gmra.mxu1 %vm154_vm2, %v4662_v16  ;;  %3265 = vmatmul.msk.f32.gmra.mxu2 %vm154_vm2, %v3637_v51  ;;  %v3640_v16 = vld [vmem:[%s5708_s4 + $0x28] sm:$0xff] }
 0x470   :  { %1899 = vmatpush.msra.mxu0 %v1862_v47 }
 0x472   :  { %1900 = vmatpush.msra.mxu0 %v1861_v21 }
 0x474   :  { %1901 = vmatpush.msra.mxu0 %v1860_v26 }
 0x475   :  { %3251 = vmatmul.msk.f32.vlgmr.msra.gmra.mxu0 %vm305_vm6, %v3638_v36 }
 0x477   :  { %3258 = vmatmul.msk.f32.vlgmr.msrb.gmra.mxu1 %vm108_vm1, %v3639_v60 }
 0x47f   :  { %3259 = vmatmul.msk.f32.gmra.mxu1 %vm108_vm1, %v3640_v16 }
 0x487   :  { %3260 = vmatmul.msk.f32.gmra.mxu1 %vm108_vm1, %v3641_v20 }
 0x48f   :  { %3261 = vmatmul.msk.f32.gmra.mxu1 %vm108_vm1, %v3642_v32 }
 0x4d4   :  { %v1586_v58 = vpop.f32.mrf.mxu1 }
 0x4d5   :  { %v1587_v39 = vadd.f32 %v1586_v58, %v4296_v44 }
 0x4d7   :  { %v1598_v63 = vsub.f32 0.0, %v1587_v39 }
 0x4d9   :  { %v1602_v34 = vmul.f32 1.442695, %v1598_v63 }
 0x4da   :  { %v2113_v11 = vpop.f32.mrf.mxu2 }
 0x4db   :  { %3467 = vpow2.f32 %v1602_v34 }
 0x4dc   :  { %v1589_v27 = vpop.f32.mrf.mxu1 }
 0x4dd   :  { %v4887_v48 = vadd.f32 %v1589_v27, %v4298_v28 }
 0x4df   :  { %v1599_v1 = vsub.f32 0.0, %v4887_v48 }
 0x4e1   :  { %v3468_v45 = vpop.eup %3467  ;;  %v1604_v12 = vmul.f32 1.442695, %v1599_v1 }
 0x4e2   :  { %v1610_v52 = vadd.f32 1.0, %v3468_v45  ;;  %v2116_v27 = vpop.f32.mrf.mxu2 }
 0x4e3   :  { %3469 = vpow2.f32 %v1604_v12 }
 0x4e4   :  { %3471 = vrcp.f32 %v1610_v52  ;;  %v1592_v25 = vpop.f32.mrf.mxu1  ;;  %v1625_v29 = vand.u32 2147483648, %v1610_v52  ;;  %v1623_v17 = vand.u32 2147483647, %v1610_v52  ;;  %vm1619_vm11 = vweird.f32 %v1610_v52 }
 0x4e5   :  { %v4891_v7 = vadd.f32 %v1592_v25, %v4303_v10 }
 0x4e6   :  { %v1626_v36 = vor.u32 1.1754944e-38, %v1625_v29  ;;  %vm1624_vm10 = vcmp.eq.f32.partialorder %v1623_v17, 8.507059e+37 }
 0x4e7   :  { %v1600_v43 = vsub.f32 0.0, %v4891_v7 }
 0x4e9   :  { %v3470_v3 = vpop.eup %3469  ;;  %v1606_v6 = vmul.f32 1.442695, %v1600_v43 }
 0x4ea   :  { %v3472_v56 = vpop.eup %3471  ;;  %v1611_v62 = vadd.f32 1.0, %v3470_v3  ;;  %v4894_v22 = vpop.f32.mrf.mxu0 }
 0x4eb   :  { %v1615_v5 = vmul.f32 %v3472_v56, %v1610_v52  ;;  %3473 = vpow2.f32 %v1606_v6  ;;  %vm1620_vm5 = vweird.f32 %v3472_v56 }
 0x4ec   :  { %3475 = vrcp.f32 %v1611_v62  ;;  %v1595_v15 = vpop.f32.mrf.mxu1  ;;  %vm1621_vm13 = vmor %vm1619_vm11, %vm1620_vm5  ;;  %v1640_v63 = vand.u32 2147483648, %v1611_v62  ;;  %v1638_v45 = vand.u32 2147483647, %v1611_v62  ;;  %vm1634_vm4 = vweird.f32 %v1611_v62 }
 0x4ed   :  { %v1616_v31 = vsub.f32 1.0, %v1615_v5  ;;  %v4897_v4 = vadd.f32 %v1595_v15, %v4311_v41 }
 0x4ee   :  { %vm1639_vm7 = vcmp.eq.f32.partialorder %v1638_v45, 8.507059e+37 }
 0x4ef   :  { %v1617_v35 = vmul.f32 %v3472_v56, %v1616_v31  ;;  %v1601_v49 = vsub.f32 0.0, %v4897_v4 }
 0x4f1   :  { %v3474_v47 = vpop.eup %3473  ;;  %v1618_v23 = vadd.f32 %v3472_v56, %v1617_v35  ;;  %v1608_v0 = vmul.f32 1.442695, %v1601_v49 }
 0x4f2   :  { %v3476_v21 = vpop.eup %3475  ;;  %v1612_v26 = vadd.f32 1.0, %v3474_v47  ;;  %v1903_v19 = vpop.f32.mrf.mxu0 }
 0x4f3   :  { %v1622_v51 = vsel %vm1621_vm13, %v3472_v56, %v1618_v23  ;;  %v1630_v60 = vmul.f32 %v3476_v21, %v1611_v62  ;;  %3477 = vpow2.f32 %v1608_v0  ;;  %v4901_v58 = vadd.f32 %v1903_v19, %v4001_v13 }
 0x4f4   :  { %3479 = vrcp.f32 %v1612_v26  ;;  %v2084_v16 = vpop.f32.mrf.mxu1  ;;  %v1627_v20 = vsel %vm1624_vm10, %v1626_v36, %v1622_v51  ;;  %vm1635_vm15 = vweird.f32 %v3476_v21  ;;  %v1641_v56 = vor.u32 1.1754944e-38, %v1640_v63 }
 0x4f5   :  { %v1631_v32 = vsub.f32 1.0, %v1630_v60  ;;  %v2114_v34 = vadd.f32 %v2113_v11, %v2084_v16  ;;  %v1674_v12 = vmul.f32 %v1627_v20, %v1587_v39  ;;  %v1907_v52 = vand.u32 2147483647, %v4901_v58  ;;  %vm1636_vm3 = vmor %vm1634_vm4, %vm1635_vm15  ;;  %v2119_v60 = vpop.f32.mrf.mxu2 }
 0x4f6   :  { %v1653_v23 = vand.u32 2147483647, %v1612_v26  ;;  %v1655_v0 = vand.u32 2147483648, %v1612_v26  ;;  %vm1649_vm12 = vweird.f32 %v1612_v26 }
 0x4f7   :  { %v1632_v1 = vmul.f32 %v3476_v21, %v1631_v32  ;;  %v4905_v3 = vadd.f32 %v2114_v34, %v4006_v30  ;;  %v1908_v15 = vsub.f32 0.0, %v1907_v52  ;;  %v1678_v35 = vmul.f32 %v1674_v12, %v4405_v59 }
 0x4f8   :  { %vm1654_vm9 = vcmp.eq.f32.partialorder %v1653_v23, 8.507059e+37  ;;  %v1344_v12 = vrot.slane %v4768_v55, 4 }
 0x4f9   :  { %v3478_v25 = vpop.eup %3477  ;;  %v1633_v43 = vadd.f32 %v3476_v21, %v1632_v1  ;;  %v1909_v17 = vmul.f32 1.442695, %v1908_v15  ;;  %v2129_v47 = vsub.f32 0.0, %v4905_v3  ;;  %v1682_v16 = vsel %vm305_vm6, %v1678_v35, 0.0 }
 0x4fa   :  { %v3480_v6 = vpop.eup %3479  ;;  %v4907_v5 = vadd.f32 1.0, %v3478_v25 }
 0x4fb   :  { %v1637_v11 = vsel %vm1636_vm3, %v3476_v21, %v1633_v43  ;;  %v1645_v31 = vmul.f32 %v3480_v6, %v1612_v26  ;;  %vm1650_vm8 = vweird.f32 %v3480_v6  ;;  %v2133_v32 = vmul.f32 1.442695, %v2129_v47 }
 0x4fc   :  { %v1642_v39 = vsel %vm1639_vm7, %v1641_v56, %v1637_v11  ;;  %3481 = vrcp.f32 %v4907_v5  ;;  %v2087_v29 = vpop.f32.mrf.mxu1  ;;  %vm1651_vm14 = vmor %vm1649_vm12, %vm1650_vm8  ;;  %v1668_v25 = vand.u32 2147483647, %v4907_v5  ;;  %vm1664_vm11 = vweird.f32 %v4907_v5 }
 0x4fd   :  { %v1675_v62 = vmul.f32 %v1642_v39, %v4887_v48  ;;  %v1646_v49 = vsub.f32 1.0, %v1645_v31  ;;  %v2117_v19 = vadd.f32 %v2116_v27, %v2087_v29  ;;  %3483 = vpow2.f32 %v1909_v17 }
 0x4fe   :  { %v1656_v27 = vor.u32 1.1754944e-38, %v1655_v0  ;;  %3485 = vpow2.f32 %v2133_v32  ;;  %v1670_v39 = vand.u32 2147483648, %v4907_v5  ;;  %v1345_v0 = vadd.f32 %v1344_v12, %v4768_v55 }
 0x4ff   :  { %v1679_v51 = vmul.f32 %v1675_v62, %v4425_v54  ;;  %v1647_v21 = vmul.f32 %v3480_v6, %v1646_v49  ;;  %v4915_v36 = vadd.f32 %v2117_v19, %v4011_v42  ;;  %vm1669_vm10 = vcmp.eq.f32.partialorder %v1668_v25, 8.507059e+37 }
 0x500   :  { %v1346_v55 = vrot.slane %v1345_v0, 2  ;;  %v1906_v25 = vmax.f32 %v4901_v58, 0.0 }
 0x501   :  { %v1683_v48 = vsel %vm305_vm6, %v1679_v51, 0.0  ;;  %v1648_v20 = vadd.f32 %v3480_v6, %v1647_v21  ;;  %v2130_v1 = vsub.f32 0.0, %v4915_v36  ;;  %v1671_v51 = vor.u32 1.1754944e-38, %v1670_v39  ;;  %v2122_v21 = vpop.f32.mrf.mxu2 }
 0x502   :  { %v3482_v63 = vpop.eup %3481  ;;  %v1684_v34 = vadd.f32 %v1683_v48, %v1682_v16  ;;  %v1347_v39 = vadd.f32 %v1346_v55, %v1345_v0 }
 0x503   :  { %v1652_v45 = vsel %vm1651_vm14, %v3480_v6, %v1648_v20  ;;  %v1660_v26 = vmul.f32 %v3482_v63, %v4907_v5  ;;  %v2135_v43 = vmul.f32 1.442695, %v2130_v1  ;;  %v3484_v15 = vpop.eup %3483  ;;  %vm1665_vm5 = vweird.f32 %v3482_v63 }
 0x504   :  { %v1657_v52 = vsel %vm1654_vm9, %v1656_v27, %v1652_v45  ;;  %v2090_v56 = vpop.f32.mrf.mxu1  ;;  %v1911_v6 = vadd.f32 1.0, %v3484_v15  ;;  %v1914_v29 = vmul.f32 -0.5, %v3484_v15  ;;  %vm1666_vm13 = vmor %vm1664_vm11, %vm1665_vm5  ;;  %v1917_v27 = vand.u32 2147483647, %v3484_v15 }
 0x505   :  { %v1676_v11 = vmul.f32 %v1657_v52, %v4891_v7  ;;  %v1661_v31 = vsub.f32 1.0, %v1660_v26  ;;  %v2120_v35 = vadd.f32 %v2119_v60, %v2090_v56  ;;  %3487 = vpow2.f32 %v2135_v43  ;;  %v3486_v60 = vpop.eup %3485 }
 0x506   :  { %3489 = vlog2.f32 %v1911_v6  ;;  %v1915_v48 = vadd.f32 1.0, %v1914_v29  ;;  %vm1918_vm15 = vcmp.lt.f32.partialorder %v1917_v27, 0.0004427343 }
 0x507   :  { %v1680_v62 = vmul.f32 %v1676_v11, %v4434_v2  ;;  %v1662_v49 = vmul.f32 %v3482_v63, %v1661_v31  ;;  %v4927_v17 = vadd.f32 %v2120_v35, %v4018_v61 }
 0x508   :  { %v1916_v56 = vmul.f32 %v3484_v15, %v1915_v48 }
 0x509   :  { %v1685_v47 = vsel %vm305_vm6, %v1680_v62, 0.0  ;;  %v1663_v23 = vadd.f32 %v3482_v63, %v1662_v49  ;;  %v2131_v7 = vsub.f32 0.0, %v4927_v17 }
 0x50a   :  { %v1686_v19 = vadd.f32 %v1685_v47, %v1684_v34  ;;  %v4935_v34 = vadd.f32 1.0, %v3486_v60  ;;  %v1882_v60 = vadd.f32 %v4894_v22, %v4037_v46 }
 0x50b   :  { %v1667_v16 = vsel %vm1666_vm13, %v3482_v63, %v1663_v23  ;;  %v2137_v20 = vmul.f32 1.442695, %v2131_v7  ;;  %v3488_v45 = vpop.eup %3487  ;;  %v1348_v23 = vrot.slane %v1347_v39, 1 }
 0x50c   :  { %v1672_v32 = vsel %vm1669_vm10, %v1671_v51, %v1667_v16  ;;  %v2093_v1 = vpop.f32.mrf.mxu1  ;;  %v3490_v52 = vpop.eup %3489  ;;  %v4942_v11 = vadd.f32 1.0, %v3488_v45  ;;  %v4970_v55 = vclamps-f32 %v1882_v60, 20.0  ;;  %vm2150_vm8 = vweird.f32 %v4935_v34 }
 0x50d   :  { %v1677_v5 = vmul.f32 %v1672_v32, %v4897_v4  ;;  %3491 = vpow2.f32 %v2137_v20  ;;  %v2123_v26 = vadd.f32 %v2122_v21, %v2093_v1  ;;  %v1913_v43 = vmul.f32 0.6931472, %v3490_v52 }
 0x50e   :  { %3493 = vrcp.f32 %v4935_v34  ;;  %v1349_v21 = vadd.f32 %v1348_v23, %v1347_v39  ;;  %v1924_v39 = vadd.f32 %v4970_v55, %v4561_v38  ;;  %vm2165_vm4 = vweird.f32 %v4942_v11 }
 0x50f   :  { %v1681_v12 = vmul.f32 %v1677_v5, %v4440_v8  ;;  %v4939_v63 = vadd.f32 %v2123_v26, %v4004_v18  ;;  %v1919_v31 = vsel %vm1918_vm15, %v1916_v56, %v1913_v43  ;;  %3495 = vrcp.f32 %v4942_v11 }
 0x510   :  { %v1920_v29 = vadd.f32 %v1919_v31, %v1906_v25  ;;  %v1351_v52 = vadd.f32 %v1349_v21, %v4539_v33 }
 0x511   :  { %v1687_v4 = vsel %vm305_vm6, %v1681_v12, 0.0  ;;  %v2132_v35 = vsub.f32 0.0, %v4939_v63 }
 0x512   :  { %v1688_v6 = vadd.f32 %v1687_v4, %v1686_v19  ;;  %v4947_v47 = vadd.f32 0.001, %v1920_v29 }
 0x513   :  { %v3492_v62 = vpop.eup %3491  ;;  %v2139_v15 = vmul.f32 1.442695, %v2132_v35 }
 0x514   :  { %v1689_v49 = vrot.slane %v1688_v6, 4  ;;  %v4950_v58 = vadd.f32 1.0, %v3492_v62  ;;  %v4954_v19 = vpop.eup %3493  ;;  %vm1932_vm3 = vcmp.eq.f32.partialorder %v4947_v47, inf  ;;  %vm1934_vm7 = vcmp.eq.f32.partialorder %v4947_v47, 0.0 }
 0x515   :  { %3497 = vpow2.f32 %v2139_v15  ;;  %v4956_v51 = vpop.eup %3495  ;;  %v2146_v1 = vmul.f32 %v4954_v19, %v4935_v34  ;;  %v2154_v15 = vand.u32 2147483647, %v4935_v34  ;;  %vm2151_vm13 = vweird.f32 %v4954_v19 }
 0x516   :  { %v1690_v7 = vadd.f32 %v1689_v49, %v1688_v6  ;;  %3499 = vrsqrt.f32 %v4947_v47  ;;  %v2161_v26 = vmul.f32 %v4956_v51, %v4942_v11  ;;  %vm2180_vm12 = vweird.f32 %v4950_v58 }
 0x517   :  { %3501 = vrcp.f32 %v4950_v58  ;;  %v2147_v25 = vsub.f32 1.0, %v2146_v1  ;;  %vm2166_vm9 = vweird.f32 %v4956_v51 }
 0x518   :  { %v1691_v0 = vrot.slane %v1690_v7, 2  ;;  %v2162_v35 = vsub.f32 1.0, %v2161_v26  ;;  %vm5025_vm15 = vmor %vm2165_vm4, %vm2166_vm9 }
 0x519   :  { %vm5039_vm4 = vmor %vm2150_vm8, %vm2151_vm13  ;;  %vm2155_vm8 = vcmp.eq.f32.partialorder %v2154_v15, 8.507059e+37  ;;  %v3650_v15 = vld [vmem:[%s5713_s3 + $0x10] sm:$0xff] }
 0x51a   :  { %v1692_v16 = vadd.f32 %v1691_v0, %v1690_v7  ;;  %v2169_v7 = vand.u32 2147483647, %v4942_v11  ;;  %v2148_v0 = vmul.f32 %v4954_v19, %v2147_v25  ;;  %v2163_v60 = vmul.f32 %v4956_v51, %v2162_v35 }
 0x51b   :  { %v3498_v48 = vpop.eup %3497 }
 0x51c   :  { %v3500_v20 = vpop.eup %3499  ;;  %v1693_v32 = vrot.slane %v1692_v16, 1  ;;  %v4960_v27 = vadd.f32 1.0, %v3498_v48  ;;  %v2184_v48 = vand.u32 2147483647, %v4950_v58  ;;  %v2149_v35 = vadd.f32 %v4954_v19, %v2148_v0 }
 0x51d   :  { %v4964_v45 = vpop.eup %3501  ;;  %v1926_v5 = vmul.f32 %v3500_v20, %v4947_v47  ;;  %v2156_v0 = vand.u32 2147483648, %v4935_v34  ;;  %v3649_v34 = vld [vmem:[%s5715_s8 + $0x8] sm:$0xff] }
 0x51e   :  { %v1694_v22 = vadd.f32 %v1693_v32, %v1692_v16  ;;  %3503 = vrcp.f32 %v4960_v27  ;;  %v2176_v43 = vmul.f32 %v4964_v45, %v4950_v58  ;;  %v1935_v16 = vand.u32 2147483648, %v4947_v47 }
 0x51f   :  { %v1927_v12 = vmul.f32 %v3500_v20, %v1926_v5  ;;  %vm2181_vm14 = vweird.f32 %v4964_v45  ;;  %v2199_v26 = vand.u32 2147483647, %v4960_v27  ;;  %vm2195_vm10 = vweird.f32 %v4960_v27 }
 0x520   :  { %v1695_v56 = vadd.f32 %v1694_v22, %v1351_v52  ;;  %v2177_v31 = vsub.f32 1.0, %v2176_v43  ;;  %v2201_v52 = vand.u32 2147483648, %v4960_v27  ;;  %v3252_v22 = vld [vmem:[%s5716_s1 + $0x20] sm:$0xff]  ;;  %vm5012_vm11 = vmor %vm2180_vm12, %vm2181_vm14  ;;  %vm2170_vm14 = vcmp.eq.f32.partialorder %v2169_v7, 8.507059e+37 }
 0x521   :  { %v1928_v4 = vmul.f32 0.5, %v1927_v12  ;;  %v2186_v12 = vand.u32 2147483648, %v4950_v58  ;;  %vm2200_vm12 = vcmp.eq.f32.partialorder %v2199_v26, 8.507059e+37 }
 0x522   :  { %v1696_v6 = vadd.f32 %v1695_v56, %v4539_v33  ;;  %v2178_v62 = vmul.f32 %v4964_v45, %v2177_v31  ;;  %v2164_v56 = vadd.f32 %v4956_v51, %v2163_v60  ;;  %v2171_v31 = vand.u32 2147483648, %v4942_v11 }
 0x523   :  { %v1929_v29 = vsub.f32 1.5, %v1928_v4 }
 0x524   :  { %v3504_v49 = vpop.eup %3503  ;;  %v1715_v23 = vmul.f32 0.5, %v1696_v6  ;;  %v2172_v60 = vor.u32 1.1754944e-38, %v2171_v31 }
 0x525   :  { %v2191_v21 = vmul.f32 %v3504_v49, %v4960_v27  ;;  %v1930_v38 = vmul.f32 %v3500_v20, %v1929_v29  ;;  %v2179_v20 = vadd.f32 %v4964_v45, %v2178_v62  ;;  %vm2196_vm5 = vweird.f32 %v3504_v49 }
 0x526   :  { %v4992_v32 = vadd.f32 %v1715_v23, %v4730_v57  ;;  %v2202_v62 = vor.u32 1.1754944e-38, %v2201_v52  ;;  %v2187_v23 = vor.u32 1.1754944e-38, %v2186_v12  ;;  %v5075_v52 = vld [vmem:[%s5717_s10 + $0x8] sm:$0xff]  ;;  %v3652_v12 = vld [vmem:[%s5713_s3 + $0x18] sm:$0xff] }
 0x527   :  { %v2192_v1 = vsub.f32 1.0, %v2191_v21  ;;  %v1931_v5 = vmul.f32 %v1930_v38, %v4947_v47 }
 0x529   :  { %v2193_v57 = vmul.f32 %v3504_v49, %v2192_v1  ;;  %v1933_v43 = vsel %vm1932_vm3, %v4947_v47, %v1931_v5  ;;  %v2183_v47 = vsel %vm5012_vm11, %v4964_v45, %v2179_v20  ;;  %vm2197_vm3 = vmor %vm2195_vm10, %vm2196_vm5  ;;  %v2168_v45 = vsel %vm5025_vm15, %v4956_v51, %v2164_v56  ;;  %v3655_v56 = vld [vmem:[%s5708_s4 + $0x10] sm:$0xff] }
 0x52a   :  { %v1936_v25 = vsel %vm1934_vm7, %v1935_v16, %v1933_v43  ;;  %vm2185_vm7 = vcmp.eq.f32.partialorder %v2184_v48, 8.507059e+37  ;;  %v2153_v51 = vsel %vm5039_vm4, %v4954_v19, %v2149_v35  ;;  %v5057_v48 = vld [vmem:[%s5717_s10] sm:$0xff]  ;;  %v2173_v1 = vsel %vm2170_vm14, %v2172_v60, %v2168_v45  ;;  %v3654_v43 = vld [vmem:[%s5708_s4 + $0x8] sm:$0xff] }
 0x52b   :  { %v2194_v6 = vadd.f32 %v3504_v49, %v2193_v57  ;;  %v1937_v29 = vmul.f32 %v3252_v22, %v1936_v25  ;;  %v2188_v11 = vsel %vm2185_vm7, %v2187_v23, %v2183_v47  ;;  %v2157_v5 = vor.u32 1.1754944e-38, %v2156_v0  ;;  %v5105_v22 = vld [vmem:[%s5717_s10 + $0x18] sm:$0xff]  ;;  %v3653_v57 = vld [vmem:[%s5708_s4] sm:$0xff] }
 0x52c   :  { %v2207_v7 = vmul.f32 %v2188_v11, %v4927_v17  ;;  %v2206_v20 = vmul.f32 %v2173_v1, %v4915_v36  ;;  %v3646_v17 = vld [vmem:[%s5714_s6 + $0x8] sm:$0xff]  ;;  %v5090_v36 = vld [vmem:[%s5717_s10 + $0x10] sm:$0xff]  ;;  %v3656_v25 = vld [vmem:[%s5708_s4 + $0x18] sm:$0xff] }
 0x52d   :  { %v2198_v21 = vsel %vm2197_vm3, %v3504_v49, %v2194_v6  ;;  %v5030_v27 = vadd.f32 %v1937_v29, %v1924_v39  ;;  %v5046_v39 = vld [vmem:[%s5707_s0 + $0xc] sm:$0xf]  ;;  %v2158_v19 = vsel %vm2155_vm8, %v2157_v5, %v2153_v51 }
 0x52e   :  { %v2203_v38 = vsel %vm2200_vm12, %v2202_v62, %v2198_v21  ;;  %v2205_v26 = vmul.f32 %v2158_v19, %v4905_v3  ;;  %v3647_v3 = vld [vmem:[%s5713_s3 + $0x8] sm:$0xff] }
 0x52f   :  { %v2208_v49 = vmul.f32 %v2203_v38, %v4939_v63  ;;  %1954 = vmatpush.msrb.mxu0 %v5030_v27  ;;  %2481 = vmatpush.msra.mxu1 %v5030_v27  ;;  %v3644_v63 = vld [vmem:[%s5713_s3] sm:$0xff] }
 0x530   :  { %3253 = vmatmul.msk.f32.vlgmr.msrb.gmra.mxu0 %vm154_vm2, %v5057_v48  ;;  %3280 = vmatmul.msk.f32.vlgmr.msra.gmra.mxu1 %vm154_vm2, %v3644_v63 }
 0x531   :  { %2221 = vmatpush.msra.mxu3 %v2208_v49  ;;  %3275 = vmatpush.msk.msra.mxu0 %vm121_vm0, %v5046_v39 }
 0x533   :  { %2222 = vmatpush.msra.mxu3 %v2207_v7 }
 0x535   :  { %2223 = vmatpush.msra.mxu3 %v2206_v20 }
 0x537   :  { %2224 = vmatpush.msra.mxu3 %v2205_v26 }
 0x538   :  { %3254 = vmatmul.msk.f32.gmra.mxu0 %vm154_vm2, %v5075_v52  ;;  %3266 = vmatmul.msk.f32.vlgmr.msra.gmra.mxu3 %vm305_vm6, %v3646_v17 }
 0x539   :  { %2243 = vmatpush.msrb.mxu3 %v2208_v49  ;;  %3281 = vmatmul.msk.f32.gmra.mxu1 %vm154_vm2, %v3647_v3 }
 0x53b   :  { %2244 = vmatpush.msrb.mxu3 %v2207_v7 }
 0x53d   :  { %2245 = vmatpush.msrb.mxu3 %v2206_v20 }
 0x53f   :  { %2246 = vmatpush.msrb.mxu3 %v2205_v26 }
 0x540   :  { %3255 = vmatmul.msk.f32.gmra.mxu0 %vm154_vm2, %v5090_v36  ;;  %3268 = vmatmul.msk.f32.vlgmr.msrb.gmra.mxu3 %vm305_vm6, %v3649_v34 }
 0x541   :  { %3282 = vmatmul.msk.f32.gmra.mxu1 %vm154_vm2, %v3650_v15 }
 0x548   :  { %3256 = vmatmul.msk.f32.gmra.mxu0 %vm154_vm2, %v5105_v22 }
 0x549   :  { %3283 = vmatmul.msk.f32.gmra.mxu1 %vm154_vm2, %v3652_v12 }
 0x550   :  { %3276 = vmatmul.msk.f32.vlgmr.msra.gmra.mxu0 %vm108_vm1, %v3653_v57 }
 0x558   :  { %3277 = vmatmul.msk.f32.gmra.mxu0 %vm108_vm1, %v3654_v43 }
 0x560   :  { %3278 = vmatmul.msk.f32.gmra.mxu0 %vm108_vm1, %v3655_v56 }
 0x568   :  { %3279 = vmatmul.msk.f32.gmra.mxu0 %vm108_vm1, %v3656_v25 }
 0x5ad   :  { %v1956_v4 = vpop.f32.mrf.mxu0  ;;  %v2483_v3 = vpop.f32.mrf.mxu1 }
 0x5ae   :  { %v5130_v31 = vadd.f32 %v1956_v4, %v4296_v44 }
 0x5b0   :  { %v1968_v35 = vsub.f32 0.0, %v5130_v31 }
 0x5b2   :  { %v1972_v6 = vmul.f32 1.442695, %v1968_v35 }
 0x5b4   :  { %3505 = vpow2.f32 %v1972_v6 }
 0x5b5   :  { %v1959_v29 = vpop.f32.mrf.mxu0 }
 0x5b6   :  { %v5134_v47 = vadd.f32 %v1959_v29, %v4298_v28 }
 0x5b8   :  { %v1969_v58 = vsub.f32 0.0, %v5134_v47 }
 0x5ba   :  { %v3506_v62 = vpop.eup %3505  ;;  %v1974_v23 = vmul.f32 1.442695, %v1969_v58 }
 0x5bb   :  { %v1980_v0 = vadd.f32 1.0, %v3506_v62  ;;  %v2226_v21 = vpop.f32.mrf.mxu3 }
 0x5bc   :  { %3507 = vpow2.f32 %v1974_v23  ;;  %v2227_v45 = vadd.f32 %v2226_v21, %v4212_v14 }
 0x5bd   :  { %3509 = vrcp.f32 %v1980_v0  ;;  %v1962_v38 = vpop.f32.mrf.mxu0  ;;  %vm1989_vm5 = vweird.f32 %v1980_v0  ;;  %v1993_v58 = vand.u32 2147483647, %v1980_v0 }
 0x5be   :  { %v5139_v11 = vadd.f32 %v1962_v38, %v4303_v10  ;;  %v5141_v60 = vclamps-f32 %v2227_v45, 20.0 }
 0x5bf   :  { %vm1994_vm13 = vcmp.eq.f32.partialorder %v1993_v58, 8.507059e+37 }
 0x5c0   :  { %v1970_v16 = vsub.f32 0.0, %v5139_v11  ;;  %v2413_v49 = vadd.f32 %v5141_v60, %v4970_v55 }
 0x5c2   :  { %v3508_v51 = vpop.eup %3507  ;;  %v1976_v1 = vmul.f32 1.442695, %v1970_v16  ;;  %v2414_v5 = vmul.f32 0.5, %v2413_v49 }
 0x5c3   :  { %v3510_v63 = vpop.eup %3509  ;;  %v1981_v7 = vadd.f32 1.0, %v3508_v51  ;;  %v2248_v26 = vpop.f32.mrf.mxu3 }
 0x5c4   :  { %v1985_v19 = vmul.f32 %v3510_v63, %v1980_v0  ;;  %3511 = vpow2.f32 %v1976_v1  ;;  %v2415_v20 = vsub.f32 %v4970_v55, %v2414_v5  ;;  %v2418_v12 = vsub.f32 %v5141_v60, %v2414_v5 }
 0x5c5   :  { %3513 = vrcp.f32 %v1981_v7  ;;  %v1965_v17 = vpop.f32.mrf.mxu0  ;;  %v5152_v43 = vadd.f32 %v2248_v26, %v4180_v9  ;;  %vm1990_vm9 = vweird.f32 %v3510_v63  ;;  %v1995_v55 = vand.u32 2147483648, %v1980_v0 }
 0x5c6   :  { %v1986_v34 = vsub.f32 1.0, %v1985_v19  ;;  %v2416_v15 = vmul.f32 %v2415_v20, %v2415_v20  ;;  %v5149_v57 = vadd.f32 %v1965_v17, %v4311_v41  ;;  %v2419_v25 = vmul.f32 %v2418_v12, %v2418_v12  ;;  %vm1991_vm11 = vmor %vm1989_vm5, %vm1990_vm9 }
 0x5c7   :  { %v2252_v35 = vand.u32 2147483647, %v5152_v43  ;;  %v1996_v1 = vor.u32 1.1754944e-38, %v1995_v55  ;;  %v2010_v20 = vand.u32 2147483648, %v1981_v7  ;;  %vm2004_vm15 = vweird.f32 %v1981_v7 }
 0x5c8   :  { %v1987_v56 = vmul.f32 %v3510_v63, %v1986_v34  ;;  %v1971_v4 = vsub.f32 0.0, %v5149_v57  ;;  %v2420_v62 = vadd.f32 %v2419_v25, %v2416_v15  ;;  %v2486_v15 = vpop.f32.mrf.mxu1 }
 0x5c9   :  { %v2253_v38 = vsub.f32 0.0, %v2252_v35 }
 0x5ca   :  { %v3512_v6 = vpop.eup %3511  ;;  %v1988_v29 = vadd.f32 %v3510_v63, %v1987_v56  ;;  %v1978_v45 = vmul.f32 1.442695, %v1971_v4  ;;  %v2421_v51 = vmul.f32 0.5, %v2420_v62  ;;  %v2008_v56 = vand.u32 2147483647, %v1981_v7 }
 0x5cb   :  { %v3514_v23 = vpop.eup %3513  ;;  %v5156_v21 = vadd.f32 1.0, %v3512_v6  ;;  %v2254_v34 = vmul.f32 1.442695, %v2253_v38  ;;  %v2011_v6 = vor.u32 1.1754944e-38, %v2010_v20 }
 0x5cc   :  { %v1992_v16 = vsel %vm1991_vm11, %v3510_v63, %v1988_v29  ;;  %v2000_v49 = vmul.f32 %v3514_v23, %v1981_v7  ;;  %v2422_v26 = vsel %vm305_vm6, %v2421_v51, 0.0  ;;  %vm2005_vm10 = vweird.f32 %v3514_v23 }
 0x5cd   :  { %3515 = vrcp.f32 %v5156_v21  ;;  %v2454_v5 = vpop.f32.mrf.mxu0  ;;  %v1997_v0 = vsel %vm1994_vm13, %v1996_v1, %v1992_v16  ;;  %v2423_v17 = vrot.slane %v2422_v26, 4  ;;  %vm2006_vm3 = vmor %vm2004_vm15, %vm2005_vm10  ;;  %vm2009_vm7 = vcmp.eq.f32.partialorder %v2008_v56, 8.507059e+37 }
 0x5ce   :  { %v2001_v19 = vsub.f32 1.0, %v2000_v49  ;;  %3517 = vpow2.f32 %v1978_v45  ;;  %v2484_v63 = vadd.f32 %v2483_v3, %v2454_v5  ;;  %v2044_v4 = vmul.f32 %v1997_v0, %v5130_v31 }
 0x5cf   :  { %v2424_v25 = vadd.f32 %v2423_v17, %v2422_v26  ;;  %3519 = vpow2.f32 %v2254_v34  ;;  %vm2019_vm4 = vweird.f32 %v5156_v21 }
 0x5d0   :  { %v2002_v12 = vmul.f32 %v3514_v23, %v2001_v19  ;;  %v5162_v58 = vadd.f32 %v2484_v63, %v3886_v40  ;;  %v2048_v51 = vmul.f32 %v2044_v4, %v4405_v59  ;;  %v2023_v19 = vand.u32 2147483647, %v5156_v21 }
 0x5d1   :  { %v2425_v29 = vrot.slane %v2424_v25, 2  ;;  %v2025_v40 = vand.u32 2147483648, %v5156_v21 }
 0x5d2   :  { %v2003_v55 = vadd.f32 %v3514_v23, %v2002_v12  ;;  %v2499_v20 = vsub.f32 0.0, %v5162_v58  ;;  %v2489_v12 = vpop.f32.mrf.mxu1  ;;  %v2052_v56 = vsel %vm305_vm6, %v2048_v51, 0.0  ;;  %vm2024_vm8 = vcmp.eq.f32.partialorder %v2023_v19, 8.507059e+37 }
 0x5d3   :  { %v3516_v35 = vpop.eup %3515  ;;  %v2426_v3 = vadd.f32 %v2425_v29, %v2424_v25 }
 0x5d4   :  { %v2007_v62 = vsel %vm2006_vm3, %v3514_v23, %v2003_v55  ;;  %v2015_v45 = vmul.f32 %v3516_v35, %v5156_v21  ;;  %v3518_v38 = vpop.eup %3517  ;;  %vm2020_vm12 = vweird.f32 %v3516_v35 }
 0x5d5   :  { %v2012_v16 = vsel %vm2009_vm7, %v2011_v6, %v2007_v62  ;;  %v2457_v49 = vpop.f32.mrf.mxu0  ;;  %v5167_v1 = vadd.f32 1.0, %v3518_v38  ;;  %v3520_v5 = vpop.eup %3519  ;;  %v2427_v23 = vrot.slane %v2426_v3, 1  ;;  %vm2021_vm14 = vmor %vm2019_vm4, %vm2020_vm12  ;;  %v2026_v6 = vor.u32 1.1754944e-38, %v2025_v40 }
 0x5d6   :  { %v2045_v31 = vmul.f32 %v2012_v16, %v5134_v47  ;;  %v2016_v7 = vsub.f32 1.0, %v2015_v45  ;;  %v2256_v17 = vadd.f32 1.0, %v3520_v5  ;;  %v2487_v34 = vadd.f32 %v2486_v15, %v2457_v49 }
 0x5d7   :  { %3521 = vrcp.f32 %v5167_v1  ;;  %v2428_v47 = vadd.f32 %v2427_v23, %v2426_v3  ;;  %v2259_v4 = vmul.f32 -0.5, %v3520_v5  ;;  %v2503_v62 = vmul.f32 1.442695, %v2499_v20 }
 0x5d8   :  { %v2049_v26 = vmul.f32 %v2045_v31, %v4425_v54  ;;  %v2017_v0 = vmul.f32 %v3516_v35, %v2016_v7  ;;  %3523 = vlog2.f32 %v2256_v17  ;;  %v5181_v15 = vadd.f32 %v2487_v34, %v3897_v53 }
 0x5d9   :  { %v5178_v29 = vadd.f32 %v2428_v47, %v4992_v32  ;;  %v2260_v49 = vadd.f32 1.0, %v2259_v4  ;;  %3525 = vpow2.f32 %v2503_v62  ;;  %v2038_v53 = vand.u32 2147483647, %v5167_v1 }
 0x5da   :  { %v2053_v63 = vsel %vm305_vm6, %v2049_v26, 0.0  ;;  %v2018_v25 = vadd.f32 %v3516_v35, %v2017_v0  ;;  %v2500_v32 = vsub.f32 0.0, %v5181_v15  ;;  %v2040_v23 = vand.u32 2147483648, %v5167_v1 }
 0x5db   :  { %v2054_v55 = vadd.f32 %v2053_v63, %v2052_v56  ;;  %v2261_v0 = vmul.f32 %v3520_v5, %v2260_v49  ;;  %v2492_v56 = vpop.f32.mrf.mxu1  ;;  %vm2034_vm11 = vweird.f32 %v5167_v1  ;;  %vm2039_vm10 = vcmp.eq.f32.partialorder %v2038_v53, 8.507059e+37 }
 0x5dc   :  { %v2022_v45 = vsel %vm2021_vm14, %v3516_v35, %v2018_v25  ;;  %v2262_v35 = vand.u32 2147483647, %v3520_v5  ;;  %v2505_v20 = vmul.f32 1.442695, %v2500_v32  ;;  %v2041_v5 = vor.u32 1.1754944e-38, %v2040_v23 }
 0x5dd   :  { %v2027_v21 = vsel %vm2024_vm8, %v2026_v6, %v2022_v45  ;;  %v2460_v38 = vpop.f32.mrf.mxu0  ;;  %v3522_v16 = vpop.eup %3521 }
 0x5de   :  { %v2046_v3 = vmul.f32 %v2027_v21, %v5139_v11  ;;  %v2490_v51 = vadd.f32 %v2489_v12, %v2460_v38  ;;  %v2030_v31 = vmul.f32 %v3522_v16, %v5167_v1  ;;  %v3524_v11 = vpop.eup %3523  ;;  %vm2035_vm9 = vweird.f32 %v3522_v16 }
 0x5df   :  { %v2258_v12 = vmul.f32 0.6931472, %v3524_v11  ;;  %3527 = vpow2.f32 %v2505_v20  ;;  %vm2263_vm5 = vcmp.lt.f32.partialorder %v2262_v35, 0.0004427343  ;;  %v3526_v25 = vpop.eup %3525  ;;  %vm2036_vm13 = vmor %vm2034_vm11, %vm2035_vm9 }
 0x5e0   :  { %v2050_v7 = vmul.f32 %v2046_v3, %v4434_v2  ;;  %v5188_v19 = vadd.f32 %v2490_v51, %v3884_v37  ;;  %v2031_v40 = vsub.f32 1.0, %v2030_v31  ;;  %v2251_v37 = vmax.f32 %v5152_v43, 0.0 }
 0x5e1   :  { %v2264_v6 = vsel %vm2263_vm5, %v2261_v0, %v2258_v12  ;;  %v5197_v49 = vadd.f32 1.0, %v3526_v25 }
 0x5e2   :  { %v2055_v26 = vsel %vm305_vm6, %v2050_v7, 0.0  ;;  %v2501_v47 = vsub.f32 0.0, %v5188_v19  ;;  %v2032_v34 = vmul.f32 %v3522_v16, %v2031_v40  ;;  %v2265_v45 = vadd.f32 %v2264_v6, %v2251_v37 }
 0x5e3   :  { %v2056_v17 = vadd.f32 %v2055_v26, %v2054_v55  ;;  %vm2520_vm7 = vweird.f32 %v5197_v49 }
 0x5e4   :  { %v2507_v63 = vmul.f32 1.442695, %v2501_v47  ;;  %v2033_v4 = vadd.f32 %v3522_v16, %v2032_v34  ;;  %v2266_v3 = vadd.f32 0.001, %v2265_v45 }
 0x5e5   :  { %v2463_v62 = vpop.f32.mrf.mxu0  ;;  %v3528_v51 = vpop.eup %3527 }
 0x5e6   :  { %v2493_v21 = vadd.f32 %v2492_v56, %v2463_v62  ;;  %v2037_v55 = vsel %vm2036_vm13, %v3522_v16, %v2033_v4  ;;  %3529 = vpow2.f32 %v2507_v63  ;;  %v5203_v31 = vadd.f32 1.0, %v3528_v51 }
 0x5e7   :  { %v2042_v38 = vsel %vm2039_vm10, %v2041_v5, %v2037_v55  ;;  %3531 = vrsqrt.f32 %v2266_v3  ;;  %v2269_v55 = vadd.f32 %v5141_v60, %v4787_v24  ;;  %vm2277_vm15 = vcmp.eq.f32.partialorder %v2266_v3, inf }
 0x5e8   :  { %v5200_v43 = vadd.f32 %v2493_v21, %v3892_v50  ;;  %v2047_v1 = vmul.f32 %v2042_v38, %v5149_v57  ;;  %3533 = vrcp.f32 %v5197_v49  ;;  %v3269_v38 = vld [vmem:[%s5716_s1 + $0x28] sm:$0xff]  ;;  %v2280_v51 = vand.u32 2147483648, %v2266_v3 }
 0x5e9   :  { %3535 = vrcp.f32 %v5203_v31  ;;  %vm2279_vm3 = vcmp.eq.f32.partialorder %v2266_v3, 0.0  ;;  %vm2535_vm5 = vweird.f32 %v5203_v31 }
 0x5ea   :  { %v2502_v32 = vsub.f32 0.0, %v5200_v43  ;;  %v2051_v7 = vmul.f32 %v2047_v1, %v4440_v8 }
 0x5ec   :  { %v2509_v16 = vmul.f32 1.442695, %v2502_v32  ;;  %v3530_v35 = vpop.eup %3529  ;;  %v2057_v40 = vsel %vm305_vm6, %v2051_v7, 0.0 }
 0x5ed   :  { %v5210_v50 = vadd.f32 %v2057_v40, %v2056_v17  ;;  %v5212_v53 = vadd.f32 1.0, %v3530_v35  ;;  %v3532_v57 = vpop.eup %3531 }
 0x5ee   :  { %3537 = vpow2.f32 %v2509_v16  ;;  %v2271_v23 = vmul.f32 %v3532_v57, %v2266_v3  ;;  %v5215_v20 = vpop.eup %3533 }
 0x5ef   :  { %3539 = vrcp.f32 %v5212_v53  ;;  %v5217_v11 = vpop.eup %3535  ;;  %v2516_v56 = vmul.f32 %v5215_v20, %v5197_v49  ;;  %vm2550_vm12 = vweird.f32 %v5212_v53  ;;  %v2554_v35 = vand.u32 2147483647, %v5212_v53 }
 0x5f0   :  { %v2272_v26 = vmul.f32 %v3532_v57, %v2271_v23  ;;  %v2531_v17 = vmul.f32 %v5217_v11, %v5203_v31  ;;  %vm2536_vm14 = vweird.f32 %v5217_v11  ;;  %vm2521_vm11 = vweird.f32 %v5215_v20 }
 0x5f1   :  { %v2517_v62 = vsub.f32 1.0, %v2516_v56  ;;  %vm5262_vm10 = vmor %vm2535_vm5, %vm2536_vm14 }
 0x5f2   :  { %v2273_v34 = vmul.f32 0.5, %v2272_v26  ;;  %v2532_v6 = vsub.f32 1.0, %v2531_v17 }
 0x5f3   :  { %v2518_v24 = vmul.f32 %v5215_v20, %v2517_v62  ;;  %v2524_v62 = vand.u32 2147483647, %v5197_v49 }
 0x5f4   :  { %v3538_v0 = vpop.eup %3537  ;;  %v2274_v37 = vsub.f32 1.5, %v2273_v34  ;;  %v2533_v7 = vmul.f32 %v5217_v11, %v2532_v6 }
 0x5f5   :  { %v2514_v47 = vadd.f32 1.0, %v3538_v0  ;;  %v5219_v12 = vpop.eup %3539 }
 0x5f6   :  { %v2546_v63 = vmul.f32 %v5219_v12, %v5212_v53  ;;  %v2275_v25 = vmul.f32 %v3532_v57, %v2274_v37  ;;  %vm2551_vm4 = vweird.f32 %v5219_v12  ;;  %v2534_v17 = vadd.f32 %v5217_v11, %v2533_v7 }
 0x5f7   :  { %3541 = vrcp.f32 %v2514_v47  ;;  %v2569_v23 = vand.u32 2147483647, %v2514_v47  ;;  %v2571_v26 = vand.u32 2147483648, %v2514_v47  ;;  %vm5247_vm9 = vmor %vm2550_vm12, %vm2551_vm4  ;;  %v2539_v37 = vand.u32 2147483647, %v5203_v31 }
 0x5f8   :  { %v2547_v4 = vsub.f32 1.0, %v2546_v63  ;;  %v2276_v5 = vmul.f32 %v2275_v25, %v2266_v3  ;;  %v2541_v63 = vand.u32 2147483648, %v5203_v31  ;;  %vm2565_vm13 = vweird.f32 %v2514_v47  ;;  %vm2522_vm4 = vmor %vm2520_vm7, %vm2521_vm11 }
 0x5f9   :  { %v2519_v31 = vadd.f32 %v5215_v20, %v2518_v24  ;;  %v2572_v6 = vor.u32 1.1754944e-38, %v2571_v26  ;;  %vm2555_vm12 = vcmp.eq.f32.partialorder %v2554_v35, 8.507059e+37  ;;  %vm2540_vm14 = vcmp.eq.f32.partialorder %v2539_v37, 8.507059e+37  ;;  %v3666_v35 = vld [vmem:[%s5708_s4 + $0x38] sm:$0xff] }
 0x5fa   :  { %v2548_v45 = vmul.f32 %v5219_v12, %v2547_v4  ;;  %v2278_v32 = vsel %vm2277_vm15, %v2266_v3, %v2276_v5  ;;  %v2556_v3 = vand.u32 2147483648, %v5212_v53  ;;  %v2526_v5 = vand.u32 2147483648, %v5197_v49  ;;  %v3658_v49 = vld [vmem:[%s5713_s3 + $0x28] sm:$0xff] }
 0x5fb   :  { %v2281_v16 = vsel %vm2279_vm3, %v2280_v51, %v2278_v32  ;;  %vm2570_vm3 = vcmp.eq.f32.partialorder %v2569_v23, 8.507059e+37  ;;  %v2542_v51 = vor.u32 1.1754944e-38, %v2541_v63 }
 0x5fc   :  { %v2282_v40 = vmul.f32 %v3269_v38, %v2281_v16  ;;  %v2549_v57 = vadd.f32 %v5219_v12, %v2548_v45  ;;  %v2527_v7 = vor.u32 1.1754944e-38, %v2526_v5 }
 0x5fd   :  { %v3542_v21 = vpop.eup %3541 }
 0x5fe   :  { %v2561_v1 = vmul.f32 %v3542_v21, %v2514_v47  ;;  %vm2566_vm8 = vweird.f32 %v3542_v21  ;;  %v5242_v34 = vadd.f32 %v2282_v40, %v2269_v55  ;;  %v2553_v53 = vsel %vm5247_vm9, %v5219_v12, %v2549_v57  ;;  %v3657_v12 = vld [vmem:[%s5713_s3 + $0x20] sm:$0xff] }
 0x5ff   :  { %vm2567_vm15 = vmor %vm2565_vm13, %vm2566_vm8  ;;  %v2557_v47 = vor.u32 1.1754944e-38, %v2556_v3  ;;  %v2538_v55 = vsel %vm5262_vm10, %v5217_v11, %v2534_v17  ;;  %vm2525_vm8 = vcmp.eq.f32.partialorder %v2524_v62, 8.507059e+37 }
 0x600   :  { %v2562_v60 = vsub.f32 1.0, %v2561_v1  ;;  %2299 = vmatpush.msra.mxu3 %v5242_v34  ;;  %2826 = vmatpush.msrb.mxu0 %v5242_v34  ;;  %v2543_v32 = vsel %vm2540_vm14, %v2542_v51, %v2538_v55 }
 0x601   :  { %3270 = vmatmul.msk.f32.vlgmr.msra.gmra.mxu3 %vm154_vm2, %v5057_v48  ;;  %3297 = vmatmul.msk.f32.vlgmr.msrb.gmra.mxu0 %vm154_vm2, %v3657_v12  ;;  %v2558_v38 = vsel %vm2555_vm12, %v2557_v47, %v2553_v53  ;;  %v2576_v16 = vmul.f32 %v2543_v32, %v5181_v15  ;;  %v3663_v15 = vld [vmem:[%s5708_s4 + $0x20] sm:$0xff] }
 0x602   :  { %v2563_v0 = vmul.f32 %v3542_v21, %v2562_v60  ;;  %3292 = vmatpush.msk.msrb.mxu3 %vm121_vm0, %v5046_v39  ;;  %v2577_v11 = vmul.f32 %v2558_v38, %v5188_v19  ;;  %v3659_v19 = vld [vmem:[%s5714_s6] sm:$0xff] }
 0x604   :  { %v2564_v25 = vadd.f32 %v3542_v21, %v2563_v0 }
 0x606   :  { %v2568_v45 = vsel %vm2567_vm15, %v3542_v21, %v2564_v25  ;;  %v2523_v21 = vsel %vm2522_vm4, %v5215_v20, %v2519_v31  ;;  %v3664_v20 = vld [vmem:[%s5708_s4 + $0x28] sm:$0xff] }
 0x607   :  { %v2573_v48 = vsel %vm2570_vm3, %v2572_v6, %v2568_v45  ;;  %v2528_v39 = vsel %vm2525_vm8, %v2527_v7, %v2523_v21 }
 0x608   :  { %v2578_v1 = vmul.f32 %v2573_v48, %v5200_v43  ;;  %v2575_v43 = vmul.f32 %v2528_v39, %v5162_v58  ;;  %v3661_v58 = vld [vmem:[%s5715_s8] sm:$0xff] }
 0x609   :  { %3271 = vmatmul.msk.f32.gmra.mxu3 %vm154_vm2, %v5075_v52  ;;  %3298 = vmatmul.msk.f32.gmra.mxu0 %vm154_vm2, %v3658_v49  ;;  %v3660_v52 = vld [vmem:[%s5713_s3 + $0x30] sm:$0xff] }
 0x60a   :  { %2591 = vmatpush.msrb.mxu2 %v2578_v1 }
 0x60c   :  { %2592 = vmatpush.msrb.mxu2 %v2577_v11 }
 0x60e   :  { %2593 = vmatpush.msrb.mxu2 %v2576_v16 }
 0x610   :  { %2594 = vmatpush.msrb.mxu2 %v2575_v43 }
 0x611   :  { %3284 = vmatmul.msk.f32.vlgmr.msrb.gmra.mxu2 %vm305_vm6, %v3659_v19  ;;  %3272 = vmatmul.msk.f32.gmra.mxu3 %vm154_vm2, %v5090_v36  ;;  %v3662_v36 = vld [vmem:[%s5713_s3 + $0x38] sm:$0xff] }
 0x612   :  { %2613 = vmatpush.msra.mxu2 %v2578_v1  ;;  %3299 = vmatmul.msk.f32.gmra.mxu0 %vm154_vm2, %v3660_v52 }
 0x614   :  { %2614 = vmatpush.msra.mxu2 %v2577_v11 }
 0x616   :  { %2615 = vmatpush.msra.mxu2 %v2576_v16 }
 0x618   :  { %2616 = vmatpush.msra.mxu2 %v2575_v43 }
 0x619   :  { %3286 = vmatmul.msk.f32.vlgmr.msra.gmra.mxu2 %vm305_vm6, %v3661_v58  ;;  %3273 = vmatmul.msk.f32.gmra.mxu3 %vm154_vm2, %v5105_v22  ;;  %v3665_v22 = vld [vmem:[%s5708_s4 + $0x30] sm:$0xff] }
 0x61a   :  { %3300 = vmatmul.msk.f32.gmra.mxu0 %vm154_vm2, %v3662_v36 }
 0x621   :  { %3293 = vmatmul.msk.f32.vlgmr.msrb.gmra.mxu3 %vm108_vm1, %v3663_v15 }
 0x629   :  { %3294 = vmatmul.msk.f32.gmra.mxu3 %vm108_vm1, %v3664_v20 }
 0x631   :  { %3295 = vmatmul.msk.f32.gmra.mxu3 %vm108_vm1, %v3665_v22 }
 0x639   :  { %3296 = vmatmul.msk.f32.gmra.mxu3 %vm108_vm1, %v3666_v35 }
 0x67e   :  { %v2828_v55 = vpop.f32.mrf.mxu0 }
 0x684   :  { %v2301_v24 = vpop.f32.mrf.mxu3 }
 0x685   :  { %v2302_v60 = vadd.f32 %v2301_v24, %v4296_v44 }
 0x687   :  { %v2313_v40 = vsub.f32 0.0, %v2302_v60 }
 0x689   :  { %v2317_v57 = vmul.f32 1.442695, %v2313_v40  ;;  %v2831_v40 = vpop.f32.mrf.mxu0 }
 0x68b   :  { %3543 = vpow2.f32 %v2317_v57 }
 0x68c   :  { %v2304_v23 = vpop.f32.mrf.mxu3 }
 0x68d   :  { %v5334_v26 = vadd.f32 %v2304_v23, %v4298_v28 }
 0x68f   :  { %v2314_v3 = vsub.f32 0.0, %v5334_v26 }
 0x691   :  { %v3544_v17 = vpop.eup %3543  ;;  %v2319_v56 = vmul.f32 1.442695, %v2314_v3 }
 0x692   :  { %v2325_v37 = vadd.f32 1.0, %v3544_v17 }
 0x693   :  { %3545 = vpow2.f32 %v2319_v56 }
 0x694   :  { %v5337_v0 = vpop.f32.mrf.mxu2  ;;  %3547 = vrcp.f32 %v2325_v37  ;;  %v2307_v63 = vpop.f32.mrf.mxu3  ;;  %vm2334_vm1 = vweird.f32 %v2325_v37  ;;  %v2338_v39 = vand.u32 2147483647, %v2325_v37 }
 0x695   :  { %v5340_v25 = vadd.f32 %v2307_v63, %v4303_v10 }
 0x696   :  { %vm2339_vm9 = vcmp.eq.f32.partialorder %v2338_v39, 8.507059e+37 }
 0x697   :  { %v2315_v53 = vsub.f32 0.0, %v5340_v25 }
 0x699   :  { %v3546_v31 = vpop.eup %3545  ;;  %v2321_v6 = vmul.f32 1.442695, %v2315_v53 }
 0x69a   :  { %v3548_v62 = vpop.eup %3547  ;;  %v2326_v5 = vadd.f32 1.0, %v3546_v31 }
 0x69b   :  { %v2330_v12 = vmul.f32 %v3548_v62, %v2325_v37  ;;  %3549 = vpow2.f32 %v2321_v6  ;;  %vm2335_vm0 = vweird.f32 %v3548_v62 }
 0x69c   :  { %v2618_v4 = vpop.f32.mrf.mxu2  ;;  %3551 = vrcp.f32 %v2326_v5  ;;  %v2310_v45 = vpop.f32.mrf.mxu3  ;;  %vm2336_vm7 = vmor %vm2334_vm1, %vm2335_vm0  ;;  %v2355_v35 = vand.u32 2147483648, %v2326_v5  ;;  %v2353_v23 = vand.u32 2147483647, %v2326_v5  ;;  %vm2349_vm11 = vweird.f32 %v2326_v5 }
 0x69d   :  { %v5344_v47 = vadd.f32 %v2618_v4, %v4001_v13  ;;  %v2331_v48 = vsub.f32 1.0, %v2330_v12  ;;  %v5347_v38 = vadd.f32 %v2310_v45, %v4311_v41  ;;  %v2340_v13 = vand.u32 2147483648, %v2325_v37 }
 0x69e   :  { %v2356_v63 = vor.u32 1.1754944e-38, %v2355_v35  ;;  %vm2354_vm10 = vcmp.eq.f32.partialorder %v2353_v23, 8.507059e+37 }
 0x69f   :  { %v2622_v51 = vand.u32 2147483647, %v5344_v47  ;;  %v2332_v1 = vmul.f32 %v3548_v62, %v2331_v48  ;;  %v2316_v21 = vsub.f32 0.0, %v5347_v38  ;;  %v2341_v36 = vor.u32 1.1754944e-38, %v2340_v13 }
 0x6a1   :  { %v2623_v32 = vsub.f32 0.0, %v2622_v51  ;;  %v3550_v7 = vpop.eup %3549  ;;  %v2333_v11 = vadd.f32 %v3548_v62, %v2332_v1  ;;  %v2323_v16 = vmul.f32 1.442695, %v2316_v21 }
 0x6a2   :  { %v3552_v43 = vpop.eup %3551  ;;  %v2327_v19 = vadd.f32 1.0, %v3550_v7  ;;  %v2059_v7 = vrot.slane %v5210_v50, 4 }
 0x6a3   :  { %v2624_v49 = vmul.f32 1.442695, %v2623_v32  ;;  %v2337_v52 = vsel %vm2336_vm7, %v3548_v62, %v2333_v11  ;;  %v2345_v58 = vmul.f32 %v3552_v43, %v2326_v5  ;;  %3553 = vpow2.f32 %v2323_v16  ;;  %v2834_v16 = vpop.f32.mrf.mxu0 }
 0x6a4   :  { %3555 = vrcp.f32 %v2327_v19  ;;  %v2799_v15 = vpop.f32.mrf.mxu3  ;;  %v2342_v22 = vsel %vm2339_vm9, %v2341_v36, %v2337_v52  ;;  %vm2350_vm5 = vweird.f32 %v3552_v43  ;;  %v2370_v45 = vand.u32 2147483648, %v2327_v19 }
 0x6a5   :  { %v2346_v20 = vsub.f32 1.0, %v2345_v58  ;;  %3557 = vpow2.f32 %v2624_v49  ;;  %v2829_v24 = vadd.f32 %v2828_v55, %v2799_v15  ;;  %v2389_v17 = vmul.f32 %v2342_v22, %v2302_v60  ;;  %vm2351_vm13 = vmor %vm2349_vm11, %vm2350_vm5 }
 0x6a6   :  { %v2368_v1 = vand.u32 2147483647, %v2327_v19  ;;  %vm2364_vm3 = vweird.f32 %v2327_v19  ;;  %v2371_v11 = vor.u32 1.1754944e-38, %v2370_v45 }
 0x6a7   :  { %v2347_v57 = vmul.f32 %v3552_v43, %v2346_v20  ;;  %v5354_v4 = vadd.f32 %v2829_v24, %v4006_v30  ;;  %v2393_v60 = vmul.f32 %v2389_v17, %v4405_v59  ;;  %v2621_v24 = vmax.f32 %v5344_v47, 0.0 }
 0x6a8   :  { %vm2369_vm4 = vcmp.eq.f32.partialorder %v2368_v1, 8.507059e+37 }
 0x6a9   :  { %v3554_v3 = vpop.eup %3553  ;;  %v2348_v56 = vadd.f32 %v3552_v43, %v2347_v57  ;;  %v2844_v30 = vsub.f32 0.0, %v5354_v4  ;;  %v2397_v49 = vsel %vm305_vm6, %v2393_v60, 0.0 }
 0x6aa   :  { %v3556_v37 = vpop.eup %3555  ;;  %v5351_v53 = vadd.f32 1.0, %v3554_v3 }
 0x6ab   :  { %v3558_v31 = vpop.eup %3557  ;;  %v2352_v6 = vsel %vm2351_vm13, %v3552_v43, %v2348_v56  ;;  %v2360_v62 = vmul.f32 %v3556_v37, %v2327_v19  ;;  %vm2365_vm15 = vweird.f32 %v3556_v37  ;;  %v2848_v20 = vmul.f32 1.442695, %v2844_v30  ;;  %v2837_v30 = vpop.f32.mrf.mxu0 }
 0x6ac   :  { %v2357_v12 = vsel %vm2354_vm10, %v2356_v63, %v2352_v6  ;;  %3559 = vrcp.f32 %v5351_v53  ;;  %v2802_v55 = vpop.f32.mrf.mxu3  ;;  %v2626_v51 = vadd.f32 1.0, %v3558_v31  ;;  %v2629_v21 = vmul.f32 -0.5, %v3558_v31  ;;  %vm2366_vm12 = vmor %vm2364_vm3, %vm2365_vm15 }
 0x6ad   :  { %v2390_v5 = vmul.f32 %v2357_v12, %v5334_v26  ;;  %v2361_v48 = vsub.f32 1.0, %v2360_v62  ;;  %v2832_v39 = vadd.f32 %v2831_v40, %v2802_v55  ;;  %v2632_v52 = vand.u32 2147483647, %v3558_v31 }
 0x6ae   :  { %3561 = vlog2.f32 %v2626_v51  ;;  %v2630_v15 = vadd.f32 1.0, %v2629_v21  ;;  %v2383_v57 = vand.u32 2147483647, %v5351_v53  ;;  %v2385_v23 = vand.u32 2147483648, %v5351_v53 }
 0x6af   :  { %v2394_v32 = vmul.f32 %v2390_v5, %v4425_v54  ;;  %v2362_v13 = vmul.f32 %v3556_v37, %v2361_v48  ;;  %v5365_v22 = vadd.f32 %v2832_v39, %v4011_v42  ;;  %vm2633_vm14 = vcmp.lt.f32.partialorder %v2632_v52, 0.0004427343 }
 0x6b0   :  { %v2631_v62 = vmul.f32 %v3558_v31, %v2630_v15  ;;  %3563 = vpow2.f32 %v2848_v20  ;;  %vm2379_vm0 = vweird.f32 %v5351_v53  ;;  %v2060_v51 = vadd.f32 %v2059_v7, %v5210_v50 }
 0x6b1   :  { %v2398_v26 = vsel %vm305_vm6, %v2394_v32, 0.0  ;;  %v2363_v43 = vadd.f32 %v3556_v37, %v2362_v13  ;;  %v2845_v3 = vsub.f32 0.0, %v5365_v22  ;;  %v2386_v1 = vor.u32 1.1754944e-38, %v2385_v23 }
 0x6b2   :  { %v3560_v58 = vpop.eup %3559  ;;  %v2399_v36 = vadd.f32 %v2398_v26, %v2397_v49  ;;  %vm2384_vm7 = vcmp.eq.f32.partialorder %v2383_v57, 8.507059e+37  ;;  %v2061_v7 = vrot.slane %v2060_v51, 2 }
 0x6b3   :  { %v2367_v35 = vsel %vm2366_vm12, %v3556_v37, %v2363_v43  ;;  %v2375_v19 = vmul.f32 %v3560_v58, %v5351_v53  ;;  %v2850_v12 = vmul.f32 1.442695, %v2845_v3  ;;  %vm2380_vm8 = vweird.f32 %v3560_v58 }
 0x6b4   :  { %v2372_v40 = vsel %vm2369_vm4, %v2371_v11, %v2367_v35  ;;  %v2805_v17 = vpop.f32.mrf.mxu3  ;;  %v3562_v56 = vpop.eup %3561  ;;  %vm2381_vm1 = vmor %vm2379_vm0, %vm2380_vm8 }
 0x6b5   :  { %v2391_v63 = vmul.f32 %v2372_v40, %v5340_v25  ;;  %v2376_v6 = vsub.f32 1.0, %v2375_v19  ;;  %v2835_v42 = vadd.f32 %v2834_v16, %v2805_v17  ;;  %v2628_v37 = vmul.f32 0.6931472, %v3562_v56 }
 0x6b6   :  { %3565 = vpow2.f32 %v2850_v12  ;;  %v3564_v13 = vpop.eup %3563 }
 0x6b7   :  { %v2395_v47 = vmul.f32 %v2391_v63, %v4434_v2  ;;  %v2377_v45 = vmul.f32 %v3560_v58, %v2376_v6  ;;  %v5375_v55 = vadd.f32 %v2835_v42, %v4018_v61  ;;  %v2634_v60 = vsel %vm2633_vm14, %v2631_v62, %v2628_v37 }
 0x6b8   :  { %v2635_v25 = vadd.f32 %v2634_v60, %v2621_v24  ;;  %v5386_v43 = vadd.f32 1.0, %v3564_v13  ;;  %v3287_v13 = vld [vmem:[%s5716_s1 + $0x30] sm:$0xff] }
 0x6b9   :  { %v2400_v5 = vsel %vm305_vm6, %v2395_v47, 0.0  ;;  %v2378_v48 = vadd.f32 %v3560_v58, %v2377_v45  ;;  %v2846_v21 = vsub.f32 0.0, %v5375_v55  ;;  %v2597_v45 = vadd.f32 %v5337_v0, %v4037_v46 }
 0x6ba   :  { %v2401_v31 = vadd.f32 %v2400_v5, %v2399_v36  ;;  %v5381_v61 = vadd.f32 0.001, %v2635_v25  ;;  %vm2865_vm11 = vweird.f32 %v5386_v43 }
 0x6bb   :  { %v2382_v32 = vsel %vm2381_vm1, %v3560_v58, %v2378_v48  ;;  %v2852_v39 = vmul.f32 1.442695, %v2846_v21 }
 0x6bc   :  { %v2387_v11 = vsel %vm2384_vm7, %v2386_v1, %v2382_v32  ;;  %v2808_v16 = vpop.f32.mrf.mxu3  ;;  %3567 = vrsqrt.f32 %v5381_v61  ;;  %v3566_v50 = vpop.eup %3565  ;;  %vm2647_vm9 = vcmp.eq.f32.partialorder %v5381_v61, inf  ;;  %vm2649_vm5 = vcmp.eq.f32.partialorder %v5381_v61, 0.0 }
 0x6bd   :  { %v2392_v49 = vmul.f32 %v2387_v11, %v5347_v38  ;;  %v2838_v53 = vadd.f32 %v2837_v30, %v2808_v16  ;;  %3569 = vpow2.f32 %v2852_v39  ;;  %v5391_v58 = vadd.f32 1.0, %v3566_v50 }
 0x6be   :  { %v2062_v38 = vadd.f32 %v2061_v7, %v2060_v51  ;;  %3571 = vrcp.f32 %v5386_v43  ;;  %v5417_v30 = vclamps-f32 %v2597_v45, 20.0  ;;  %v2650_v11 = vand.u32 2147483648, %v5381_v61 }
 0x6bf   :  { %v2396_v26 = vmul.f32 %v2392_v49, %v4440_v8  ;;  %v5389_v52 = vadd.f32 %v2838_v53, %v4004_v18  ;;  %3573 = vrcp.f32 %v5391_v58  ;;  %vm2880_vm4 = vweird.f32 %v5391_v58 }
 0x6c0   :  { %v2063_v23 = vrot.slane %v2062_v38, 1 }
 0x6c1   :  { %v2402_v36 = vsel %vm305_vm6, %v2396_v26, 0.0  ;;  %v2847_v15 = vsub.f32 0.0, %v5389_v52  ;;  %v2639_v26 = vadd.f32 %v5417_v30, %v5030_v27 }
 0x6c2   :  { %v2403_v20 = vadd.f32 %v2402_v36, %v2401_v31  ;;  %v3568_v35 = vpop.eup %3567  ;;  %v2064_v37 = vadd.f32 %v2063_v23, %v2062_v38 }
 0x6c3   :  { %v2854_v19 = vmul.f32 1.442695, %v2847_v15  ;;  %v3570_v24 = vpop.eup %3569  ;;  %v2641_v57 = vmul.f32 %v3568_v35, %v5381_v61 }
 0x6c4   :  { %v2404_v40 = vrot.slane %v2403_v20, 4  ;;  %v5398_v18 = vadd.f32 1.0, %v3570_v24  ;;  %v5401_v6 = vpop.eup %3571  ;;  %v2066_v31 = vadd.f32 %v2064_v37, %v4539_v33 }
 0x6c5   :  { %3575 = vpow2.f32 %v2854_v19  ;;  %v2642_v17 = vmul.f32 %v3568_v35, %v2641_v57  ;;  %v5403_v42 = vpop.eup %3573  ;;  %v2861_v21 = vmul.f32 %v5401_v6, %v5386_v43  ;;  %vm2866_vm14 = vweird.f32 %v5401_v6 }
 0x6c6   :  { %v2405_v3 = vadd.f32 %v2404_v40, %v2403_v20  ;;  %3577 = vrcp.f32 %v5398_v18  ;;  %v2876_v51 = vmul.f32 %v5403_v42, %v5391_v58  ;;  %vm2895_vm13 = vweird.f32 %v5398_v18 }
 0x6c7   :  { %v2643_v63 = vmul.f32 0.5, %v2642_v17  ;;  %v2862_v7 = vsub.f32 1.0, %v2861_v21  ;;  %v2901_v17 = vand.u32 2147483648, %v5398_v18  ;;  %vm2881_vm15 = vweird.f32 %v5403_v42 }
 0x6c8   :  { %v2406_v56 = vrot.slane %v2405_v3, 2  ;;  %v2877_v49 = vsub.f32 1.0, %v2876_v51  ;;  %vm5468_vm0 = vmor %vm2880_vm4, %vm2881_vm15 }
 0x6c9   :  { %v2644_v12 = vsub.f32 1.5, %v2643_v63 }
 0x6ca   :  { %v2407_v62 = vadd.f32 %v2406_v56, %v2405_v3  ;;  %v2878_v24 = vmul.f32 %v5403_v42, %v2877_v49  ;;  %v5447_v3 = vld [vmem:[%s5717_s10] sm:$0xff]  ;;  %v5497_v49 = vld [vmem:[%s5717_s10 + $0x10] sm:$0xff] }
 0x6cb   :  { %v3576_v47 = vpop.eup %3575  ;;  %v2645_v48 = vmul.f32 %v3568_v35, %v2644_v12  ;;  %v2884_v12 = vand.u32 2147483647, %v5391_v58 }
 0x6cc   :  { %v2408_v60 = vrot.slane %v2407_v62, 1  ;;  %v5407_v5 = vadd.f32 1.0, %v3576_v47  ;;  %v5409_v25 = vpop.eup %3577  ;;  %v2879_v37 = vadd.f32 %v5403_v42, %v2878_v24  ;;  %v2886_v47 = vand.u32 2147483648, %v5391_v58 }
 0x6cd   :  { %v2646_v46 = vmul.f32 %v2645_v48, %v5381_v61  ;;  %v2891_v0 = vmul.f32 %v5409_v25, %v5398_v18  ;;  %vm2896_vm10 = vweird.f32 %v5409_v25  ;;  %v2869_v58 = vand.u32 2147483647, %v5386_v43 }
 0x6ce   :  { %v2409_v1 = vadd.f32 %v2408_v60, %v2407_v62  ;;  %3579 = vrcp.f32 %v5407_v5  ;;  %v2916_v23 = vand.u32 2147483648, %v5407_v5  ;;  %v2914_v63 = vand.u32 2147483647, %v5407_v5  ;;  %vm5456_vm12 = vmor %vm2895_vm13, %vm2896_vm10 }
 0x6cf   :  { %v2648_v39 = vsel %vm2647_vm9, %v5381_v61, %v2646_v46  ;;  %v2892_v16 = vsub.f32 1.0, %v2891_v0  ;;  %v2863_v61 = vmul.f32 %v5401_v6, %v2862_v7  ;;  %vm2910_vm8 = vweird.f32 %v5407_v5 }
 0x6d0   :  { %v2410_v32 = vadd.f32 %v2409_v1, %v2066_v31  ;;  %v2651_v50 = vsel %vm2649_vm5, %v2650_v11, %v2648_v39  ;;  %v2917_v51 = vor.u32 1.1754944e-38, %v2916_v23  ;;  %v2902_v31 = vor.u32 1.1754944e-38, %v2901_v17  ;;  %vm2867_vm5 = vmor %vm2865_vm11, %vm2866_vm14  ;;  %v5487_v11 = vld [vmem:[%s5717_s10 + $0x8] sm:$0xff] }
 0x6d1   :  { %v2652_v36 = vmul.f32 %v3287_v13, %v2651_v50  ;;  %v2893_v15 = vmul.f32 %v5409_v25, %v2892_v16  ;;  %v2864_v48 = vadd.f32 %v5401_v6, %v2863_v61  ;;  %v2871_v1 = vand.u32 2147483648, %v5386_v43 }
 0x6d2   :  { %v2411_v53 = vadd.f32 %v2410_v32, %v4539_v33  ;;  %vm2915_vm7 = vcmp.eq.f32.partialorder %v2914_v63, 8.507059e+37  ;;  %v2887_v0 = vor.u32 1.1754944e-38, %v2886_v47  ;;  %vm2885_vm13 = vcmp.eq.f32.partialorder %v2884_v12, 8.507059e+37 }
 0x6d3   :  { %v2653_v19 = vadd.f32 %v2652_v36, %v2639_v26  ;;  %v2894_v27 = vadd.f32 %v5409_v25, %v2893_v15  ;;  %v2868_v13 = vsel %vm2867_vm5, %v5401_v6, %v2864_v48  ;;  %v2872_v39 = vor.u32 1.1754944e-38, %v2871_v1 }
 0x6d4   :  { %v3580_v38 = vpop.eup %3579  ;;  %v2430_v20 = vmul.f32 0.5, %v2411_v53  ;;  %vm2870_vm10 = vcmp.eq.f32.partialorder %v2869_v58, 8.507059e+37 }
 0x6d5   :  { %v2906_v35 = vmul.f32 %v3580_v38, %v5407_v5  ;;  %2669 = vmatpush.msrb.mxu2 %v2653_v19  ;;  %vm2911_vm3 = vweird.f32 %v3580_v38  ;;  %v2898_v45 = vsel %vm5456_vm12, %v5409_v25, %v2894_v27  ;;  %v2883_v5 = vsel %vm5468_vm0, %v5403_v42, %v2879_v37 }
 0x6d6   :  { %v5438_v40 = vadd.f32 %v2430_v20, %v5178_v29  ;;  %3288 = vmatmul.msk.f32.vlgmr.msrb.gmra.mxu2 %vm154_vm2, %v5447_v3  ;;  %v2899_v29 = vand.u32 2147483647, %v5398_v18  ;;  %vm2912_vm1 = vmor %vm2910_vm8, %vm2911_vm3  ;;  %v2888_v42 = vsel %vm2885_vm13, %v2887_v0, %v2883_v5  ;;  %v2873_v43 = vsel %vm2870_vm10, %v2872_v39, %v2868_v13 }
 0x6d7   :  { %v2907_v57 = vsub.f32 1.0, %v2906_v35  ;;  %v2920_v6 = vmul.f32 %v2873_v43, %v5354_v4  ;;  %v5508_v4 = vld [vmem:[%s5717_s10 + $0x18] sm:$0xff] }
 0x6d8   :  { %vm2900_vm9 = vcmp.eq.f32.partialorder %v2899_v29, 8.507059e+37 }
 0x6d9   :  { %v2908_v56 = vmul.f32 %v3580_v38, %v2907_v57  ;;  %v2903_v46 = vsel %vm2900_vm9, %v2902_v31, %v2898_v45 }
 0x6da   :  { %v2922_v16 = vmul.f32 %v2903_v46, %v5375_v55  ;;  %v3670_v55 = vld [vmem:[%s5714_s6 + $0x8] sm:$0xff] }
 0x6db   :  { %v2909_v18 = vadd.f32 %v3580_v38, %v2908_v56 }
 0x6dd   :  { %v2913_v21 = vsel %vm2912_vm1, %v3580_v38, %v2909_v18 }
 0x6de   :  { %v2918_v25 = vsel %vm2915_vm7, %v2917_v51, %v2913_v21  ;;  %3289 = vmatmul.msk.f32.gmra.mxu2 %vm154_vm2, %v5487_v11 }
 0x6df   :  { %v2923_v32 = vmul.f32 %v2918_v25, %v5389_v52  ;;  %v2921_v52 = vmul.f32 %v2888_v42, %v5365_v22  ;;  %v3672_v22 = vld [vmem:[%s5715_s8 + $0x8] sm:$0xff] }
 0x6e1   :  { %2936 = vmatpush.msrb.mxu1 %v2923_v32 }
 0x6e3   :  { %2937 = vmatpush.msrb.mxu1 %v2922_v16 }
 0x6e5   :  { %2938 = vmatpush.msrb.mxu1 %v2921_v52 }
 0x6e6   :  { %3290 = vmatmul.msk.f32.gmra.mxu2 %vm154_vm2, %v5497_v49 }
 0x6e7   :  { %2939 = vmatpush.msrb.mxu1 %v2920_v6 }
 0x6e8   :  { %3301 = vmatmul.msk.f32.vlgmr.msrb.gmra.mxu1 %vm305_vm6, %v3670_v55 }
 0x6e9   :  { %2958 = vmatpush.msra.mxu1 %v2923_v32 }
 0x6eb   :  { %2959 = vmatpush.msra.mxu1 %v2922_v16 }
 0x6ed   :  { %2960 = vmatpush.msra.mxu1 %v2921_v52 }
 0x6ee   :  { %3291 = vmatmul.msk.f32.gmra.mxu2 %vm154_vm2, %v5508_v4 }
 0x6ef   :  { %2961 = vmatpush.msra.mxu1 %v2920_v6 }
 0x6f0   :  { %3303 = vmatmul.msk.f32.vlgmr.msra.gmra.mxu1 %vm305_vm6, %v3672_v22 }
 0x765   :  { %v2941_v53 = vpop.f32.mrf.mxu1 }
 0x766   :  { %v2942_v50 = vadd.f32 %v2941_v53, %v4212_v14  ;;  %v2671_v53 = vpop.f32.mrf.mxu2 }
 0x768   :  { %v3302_v7 = vclamps-f32 %v2942_v50, 20.0 }
 0x76a   :  { %v3128_v26 = vadd.f32 %v3302_v7, %v5417_v30  ;;  %v2984_v6 = vadd.f32 %v3302_v7, %v5242_v34  ;;  %v5537_v34 = vadd.f32 %v2671_v53, %v4296_v44 }
 0x76c   :  { %v3129_v36 = vmul.f32 0.5, %v3128_v26 }
 0x76d   :  { %v2963_v15 = vpop.f32.mrf.mxu1 }
 0x76e   :  { %v3130_v38 = vsub.f32 %v5417_v30, %v3129_v36  ;;  %v3133_v20 = vsub.f32 %v3302_v7, %v3129_v36  ;;  %v2964_v35 = vadd.f32 %v2963_v15, %v4180_v9  ;;  %v2674_v50 = vpop.f32.mrf.mxu2 }
 0x76f   :  { %v5540_v7 = vadd.f32 %v2674_v50, %v4298_v28 }
 0x770   :  { %v3131_v19 = vmul.f32 %v3130_v38, %v3130_v38  ;;  %v3134_v24 = vmul.f32 %v3133_v20, %v3133_v20  ;;  %v2967_v61 = vand.u32 2147483647, %v2964_v35  ;;  %v2966_v58 = vmax.f32 %v2964_v35, 0.0 }
 0x772   :  { %v3135_v57 = vadd.f32 %v3134_v24, %v3131_v19  ;;  %v2968_v23 = vsub.f32 0.0, %v2967_v61 }
 0x774   :  { %v3136_v27 = vmul.f32 0.5, %v3135_v57  ;;  %v2969_v17 = vmul.f32 1.442695, %v2968_v23 }
 0x776   :  { %v3137_v29 = vsel %vm305_vm6, %v3136_v27, 0.0  ;;  %3581 = vpow2.f32 %v2969_v17  ;;  %v2677_v26 = vpop.f32.mrf.mxu2 }
 0x777   :  { %v3138_v14 = vrot.slane %v3137_v29, 4 }
 0x779   :  { %v3139_v56 = vadd.f32 %v3138_v14, %v3137_v29 }
 0x77b   :  { %v3140_v63 = vrot.slane %v3139_v56, 2 }
 0x77c   :  { %v3582_v62 = vpop.eup %3581 }
 0x77d   :  { %v3141_v37 = vadd.f32 %v3140_v63, %v3139_v56  ;;  %v2971_v30 = vadd.f32 1.0, %v3582_v62  ;;  %v2974_v47 = vmul.f32 -0.5, %v3582_v62  ;;  %v2977_v60 = vand.u32 2147483647, %v3582_v62 }
 0x77e   :  { %v2680_v36 = vpop.f32.mrf.mxu2 }
 0x77f   :  { %v3142_v12 = vrot.slane %v3141_v37, 1  ;;  %3583 = vlog2.f32 %v2971_v30  ;;  %v2975_v45 = vadd.f32 1.0, %v2974_v47  ;;  %vm2978_vm11 = vcmp.lt.f32.partialorder %v2977_v60, 0.0004427343 }
 0x780   :  { %v5548_v15 = vadd.f32 %v2680_v36, %v4311_v41 }
 0x781   :  { %v3143_v18 = vadd.f32 %v3142_v12, %v3141_v37  ;;  %v2976_v31 = vmul.f32 %v3582_v62, %v2975_v45 }
 0x782   :  { %v2686_v35 = vsub.f32 0.0, %v5548_v15 }
 0x783   :  { %v5522_v9 = vadd.f32 %v3143_v18, %v5438_v40  ;;  %v3304_v40 = vld [vmem:[%s5716_s1 + $0x38] sm:$0xff] }
 0x784   :  { %v2693_v24 = vmul.f32 1.442695, %v2686_v35 }
 0x785   :  { %v3584_v48 = vpop.eup %3583 }
 0x786   :  { %v2973_v51 = vmul.f32 0.6931472, %v3584_v48 }
 0x788   :  { %v2979_v1 = vsel %vm2978_vm11, %v2976_v31, %v2973_v51 }
 0x789   :  { %v2980_v21 = vadd.f32 %v2979_v1, %v2966_v58 }
 0x78b   :  { %v2981_v5 = vadd.f32 0.001, %v2980_v21 }
 0x78d   :  { %3585 = vrsqrt.f32 %v2981_v5  ;;  %vm2992_vm15 = vcmp.eq.f32.partialorder %v2981_v5, inf  ;;  %v2995_v16 = vand.u32 2147483648, %v2981_v5  ;;  %vm2994_vm3 = vcmp.eq.f32.partialorder %v2981_v5, 0.0 }
 0x793   :  { %v3586_v25 = vpop.eup %3585 }
 0x794   :  { %v2986_v46 = vmul.f32 %v3586_v25, %v2981_v5 }
 0x796   :  { %v2987_v0 = vmul.f32 %v3586_v25, %v2986_v46 }
 0x798   :  { %v2988_v32 = vmul.f32 0.5, %v2987_v0 }
 0x79a   :  { %v2989_v13 = vsub.f32 1.5, %v2988_v32 }
 0x79c   :  { %v2990_v42 = vmul.f32 %v3586_v25, %v2989_v13 }
 0x79e   :  { %v2991_v39 = vmul.f32 %v2990_v42, %v2981_v5 }
 0x7a0   :  { %v2993_v43 = vsel %vm2992_vm15, %v2981_v5, %v2991_v39 }
 0x7a1   :  { %v2996_v52 = vsel %vm2994_vm3, %v2995_v16, %v2993_v43 }
 0x7a2   :  { %v2997_v55 = vmul.f32 %v3304_v40, %v2996_v52 }
 0x7a4   :  { %v2998_v22 = vadd.f32 %v2997_v55, %v2984_v6 }
 0x7a6   :  { %3014 = vmatpush.msrb.mxu1 %v2998_v22 }
 0x7a7   :  { %3305 = vmatmul.msk.f32.vlgmr.msrb.gmra.mxu1 %vm154_vm2, %v5447_v3  ;;  %v2683_v3 = vsub.f32 0.0, %v5537_v34 }
 0x7af   :  { %3306 = vmatmul.msk.f32.gmra.mxu1 %vm154_vm2, %v5487_v11  ;;  %v5544_v11 = vadd.f32 %v2677_v26, %v4303_v10 }
 0x7b1   :  { %v2685_v38 = vsub.f32 0.0, %v5544_v11 }
 0x7b3   :  { %v2691_v19 = vmul.f32 1.442695, %v2685_v38 }
 0x7b7   :  { %3307 = vmatmul.msk.f32.gmra.mxu1 %vm154_vm2, %v5497_v49  ;;  %v2684_v49 = vsub.f32 0.0, %v5540_v7 }
 0x7b9   :  { %v2689_v20 = vmul.f32 1.442695, %v2684_v49 }
 0x7bf   :  { %3308 = vmatmul.msk.f32.gmra.mxu1 %vm154_vm2, %v5508_v4  ;;  %v2687_v4 = vmul.f32 1.442695, %v2683_v3 }
 0x7c1   :  { %3587 = vpow2.f32 %v2687_v4 }
 0x7c2   :  { %3589 = vpow2.f32 %v2689_v20 }
 0x7c3   :  { %3591 = vpow2.f32 %v2691_v19 }
 0x7c4   :  { %3593 = vpow2.f32 %v2693_v24 }
 0x7c7   :  { %v3588_v61 = vpop.eup %3587 }
 0x7c8   :  { %v3590_v57 = vpop.eup %3589  ;;  %v2695_v27 = vadd.f32 1.0, %v3588_v61 }
 0x7c9   :  { %v3592_v23 = vpop.eup %3591  ;;  %v5552_v29 = vadd.f32 1.0, %v3590_v57 }
 0x7ca   :  { %v3594_v17 = vpop.eup %3593  ;;  %3595 = vrcp.f32 %v2695_v27  ;;  %v5554_v14 = vadd.f32 1.0, %v3592_v23  ;;  %v2708_v42 = vand.u32 2147483647, %v2695_v27  ;;  %v2710_v39 = vand.u32 2147483648, %v2695_v27 }
 0x7cb   :  { %3597 = vrcp.f32 %v5552_v29  ;;  %v5557_v56 = vadd.f32 1.0, %v3594_v17  ;;  %v2725_v43 = vand.u32 2147483648, %v5552_v29  ;;  %vm2704_vm4 = vweird.f32 %v2695_v27 }
 0x7cc   :  { %3599 = vrcp.f32 %v5554_v14  ;;  %vm5599_vm14 = vcmp.eq.f32.partialorder %v2708_v42, 8.507059e+37  ;;  %vm2719_vm0 = vweird.f32 %v5552_v29  ;;  %v2723_v49 = vand.u32 2147483647, %v5552_v29 }
 0x7cd   :  { %3601 = vrcp.f32 %v5557_v56  ;;  %v2726_v4 = vor.u32 1.1754944e-38, %v2725_v43  ;;  %vm2734_vm9 = vweird.f32 %v5554_v14  ;;  %v2740_v57 = vand.u32 2147483648, %v5554_v14 }
 0x7ce   :  { %v2738_v23 = vand.u32 2147483647, %v5554_v14  ;;  %vm2724_vm13 = vcmp.eq.f32.partialorder %v2723_v49, 8.507059e+37  ;;  %vm2749_vm11 = vweird.f32 %v5557_v56 }
 0x7d0   :  { %v5563_v62 = vpop.eup %3595  ;;  %vm2739_vm3 = vcmp.eq.f32.partialorder %v2738_v23, 8.507059e+37 }
 0x7d1   :  { %v5567_v30 = vpop.eup %3597  ;;  %v2700_v18 = vmul.f32 %v5563_v62, %v2695_v27  ;;  %vm2705_vm2 = vweird.f32 %v5563_v62 }
 0x7d2   :  { %v5570_v45 = vpop.eup %3599  ;;  %v2715_v60 = vmul.f32 %v5567_v30, %v5552_v29  ;;  %vm2720_vm12 = vweird.f32 %v5567_v30  ;;  %vm5604_vm8 = vmor %vm2704_vm4, %vm2705_vm2 }
 0x7d3   :  { %v2701_v31 = vsub.f32 1.0, %v2700_v18  ;;  %v2730_v58 = vmul.f32 %v5570_v45, %v5554_v14  ;;  %vm5613_vm1 = vmor %vm2719_vm0, %vm2720_vm12  ;;  %vm2735_vm7 = vweird.f32 %v5570_v45  ;;  %v2753_v18 = vand.u32 2147483647, %v5557_v56 }
 0x7d4   :  { %v2716_v1 = vsub.f32 1.0, %v2715_v60  ;;  %vm5634_vm10 = vmor %vm2734_vm9, %vm2735_vm7  ;;  %v2741_v60 = vor.u32 1.1754944e-38, %v2740_v57 }
 0x7d5   :  { %v2702_v0 = vmul.f32 %v5563_v62, %v2701_v31  ;;  %v2731_v32 = vsub.f32 1.0, %v2730_v58  ;;  %vm2754_vm2 = vcmp.eq.f32.partialorder %v2753_v18, 8.507059e+37 }
 0x7d7   :  { %v2703_v6 = vadd.f32 %v5563_v62, %v2702_v0  ;;  %v2732_v55 = vmul.f32 %v5570_v45, %v2731_v32 }
 0x7d9   :  { %v2707_v20 = vsel %vm5604_vm8, %v5563_v62, %v2703_v6  ;;  %v2733_v19 = vadd.f32 %v5570_v45, %v2732_v55 }
 0x824   :  { %v3016_v63 = vpop.f32.mrf.mxu1 }
 0x825   :  { %v5561_v37 = vadd.f32 %v3016_v63, %v4296_v44  ;;  %v5574_v44 = vpop.eup %3601 }
 0x826   :  { %v2745_v5 = vmul.f32 %v5574_v44, %v5557_v56  ;;  %vm2750_vm5 = vweird.f32 %v5574_v44 }
 0x827   :  { %v3028_v12 = vsub.f32 0.0, %v5561_v37  ;;  %vm2751_vm15 = vmor %vm2749_vm11, %vm2750_vm5 }
 0x828   :  { %v2746_v40 = vsub.f32 1.0, %v2745_v5 }
 0x829   :  { %v3032_v47 = vmul.f32 1.442695, %v3028_v12  ;;  %v2755_v12 = vand.u32 2147483648, %v5557_v56 }
 0x82a   :  { %v2747_v26 = vmul.f32 %v5574_v44, %v2746_v40 }
 0x82b   :  { %3603 = vpow2.f32 %v3032_v47  ;;  %v2737_v47 = vsel %vm5634_vm10, %v5570_v45, %v2733_v19  ;;  %v2756_v5 = vor.u32 1.1754944e-38, %v2755_v12 }
 0x82c   :  { %v3019_v48 = vpop.f32.mrf.mxu1  ;;  %v2748_v29 = vadd.f32 %v5574_v44, %v2747_v26  ;;  %v2742_v45 = vsel %vm2739_vm3, %v2741_v60, %v2737_v47 }
 0x82d   :  { %v5577_v51 = vadd.f32 %v3019_v48, %v4298_v28  ;;  %v2717_v28 = vmul.f32 %v5567_v30, %v2716_v1  ;;  %v2761_v42 = vmul.f32 %v2742_v45, %v5544_v11 }
 0x82f   :  { %v3029_v21 = vsub.f32 0.0, %v5577_v51  ;;  %v2718_v22 = vadd.f32 %v5567_v30, %v2717_v28  ;;  %v2765_v43 = vmul.f32 %v2761_v42, %v4434_v2 }
 0x831   :  { %v3604_v25 = vpop.eup %3603  ;;  %v3034_v46 = vmul.f32 1.442695, %v3029_v21  ;;  %v2722_v61 = vsel %vm5613_vm1, %v5567_v30, %v2718_v22 }
 0x832   :  { %v5585_v13 = vadd.f32 1.0, %v3604_v25  ;;  %v2727_v14 = vsel %vm2724_vm13, %v2726_v4, %v2722_v61  ;;  %v2770_v4 = vsel %vm305_vm6, %v2765_v43, 0.0 }
 0x833   :  { %3605 = vpow2.f32 %v3034_v46  ;;  %v2760_v21 = vmul.f32 %v2727_v14, %v5540_v7 }
 0x834   :  { %v3022_v16 = vpop.f32.mrf.mxu1  ;;  %3607 = vrcp.f32 %v5585_v13  ;;  %vm3049_vm0 = vweird.f32 %v5585_v13  ;;  %v3053_v35 = vand.u32 2147483647, %v5585_v13 }
 0x835   :  { %v5590_v52 = vadd.f32 %v3022_v16, %v4303_v10  ;;  %v2711_v10 = vor.u32 1.1754944e-38, %v2710_v39 }
 0x836   :  { %vm3054_vm5 = vcmp.eq.f32.partialorder %v3053_v35, 8.507059e+37 }
 0x837   :  { %v3030_v53 = vsub.f32 0.0, %v5590_v52  ;;  %v2712_v63 = vsel %vm5599_vm14, %v2711_v10, %v2707_v20 }
 0x838   :  { %v2759_v58 = vmul.f32 %v2712_v63, %v5537_v34 }
 0x839   :  { %v3606_v36 = vpop.eup %3605  ;;  %v3036_v38 = vmul.f32 1.442695, %v3030_v53 }
 0x83a   :  { %v5619_v24 = vadd.f32 1.0, %v3606_v36  ;;  %v5626_v27 = vpop.eup %3607  ;;  %v2763_v34 = vmul.f32 %v2759_v58, %v4405_v59 }
 0x83b   :  { %3609 = vpow2.f32 %v3036_v38  ;;  %v3045_v48 = vmul.f32 %v5626_v27, %v5585_v13  ;;  %vm3050_vm4 = vweird.f32 %v5626_v27  ;;  %v3055_v38 = vand.u32 2147483648, %v5585_v13 }
 0x83c   :  { %3611 = vrcp.f32 %v5619_v24  ;;  %v3025_v17 = vpop.f32.mrf.mxu1  ;;  %v2767_v55 = vsel %vm305_vm6, %v2763_v34, 0.0  ;;  %v3068_v10 = vand.u32 2147483647, %v5619_v24  ;;  %v3070_v26 = vand.u32 2147483648, %v5619_v24  ;;  %vm5679_vm1 = vmor %vm3049_vm0, %vm3050_vm4 }
 0x83d   :  { %v5640_v30 = vadd.f32 %v3025_v17, %v4311_v41  ;;  %v2752_v41 = vsel %vm2751_vm15, %v5574_v44, %v2748_v29  ;;  %v3046_v32 = vsub.f32 1.0, %v3045_v48  ;;  %v2764_v44 = vmul.f32 %v2760_v21, %v4425_v54 }
 0x83e   :  { %v2757_v0 = vsel %vm2754_vm2, %v2756_v5, %v2752_v41  ;;  %vm3064_vm14 = vweird.f32 %v5619_v24  ;;  %vm3069_vm7 = vcmp.eq.f32.partialorder %v3068_v10, 8.507059e+37  ;;  %v3071_v23 = vor.u32 1.1754944e-38, %v3070_v26 }
 0x83f   :  { %v3031_v31 = vsub.f32 0.0, %v5640_v30  ;;  %v2762_v7 = vmul.f32 %v2757_v0, %v5548_v15  ;;  %v3047_v40 = vmul.f32 %v5626_v27, %v3046_v32  ;;  %v2768_v22 = vsel %vm305_vm6, %v2764_v44, 0.0 }
 0x840   :  { %v2769_v49 = vadd.f32 %v2768_v22, %v2767_v55  ;;  %v3056_v12 = vor.u32 1.1754944e-38, %v3055_v38  ;;  %vm3149_vm4 = vcmask 253952  }
 0x841   :  { %v3610_v1 = vpop.eup %3609  ;;  %v3038_v25 = vmul.f32 1.442695, %v3031_v31  ;;  %v2766_v50 = vmul.f32 %v2762_v7, %v4440_v8  ;;  %v3048_v36 = vadd.f32 %v5626_v27, %v3047_v40 }
 0x842   :  { %v3612_v46 = vpop.eup %3611  ;;  %v3042_v56 = vadd.f32 1.0, %v3610_v1  ;;  %v2771_v62 = vadd.f32 %v2770_v4, %v2769_v49 }
 0x843   :  { %v3060_v28 = vmul.f32 %v3612_v46, %v5619_v24  ;;  %3613 = vpow2.f32 %v3038_v25  ;;  %vm3065_vm12 = vweird.f32 %v3612_v46  ;;  %v2772_v24 = vsel %vm305_vm6, %v2766_v50, 0.0 }
 0x844   :  { %3615 = vrcp.f32 %v3042_v56  ;;  %vm5670_vm8 = vmor %vm3064_vm14, %vm3065_vm12  ;;  %v3085_v29 = vand.u32 2147483648, %v3042_v56  ;;  %v3052_v17 = vsel %vm5679_vm1, %v5626_v27, %v3048_v36  ;;  %v3083_v13 = vand.u32 2147483647, %v3042_v56 }
 0x845   :  { %v3061_v39 = vsub.f32 1.0, %v3060_v28  ;;  %vm3079_vm13 = vweird.f32 %v3042_v56  ;;  %v2773_v60 = vadd.f32 %v2772_v24, %v2771_v62  ;;  %v3057_v48 = vsel %vm3054_vm5, %v3056_v12, %v3052_v17 }
 0x846   :  { %v3086_v31 = vor.u32 1.1754944e-38, %v3085_v29  ;;  %vm3084_vm11 = vcmp.eq.f32.partialorder %v3083_v13, 8.507059e+37  ;;  %v3104_v21 = vmul.f32 %v3057_v48, %v5561_v37 }
 0x847   :  { %v3062_v16 = vmul.f32 %v3612_v46, %v3061_v39  ;;  %v2774_v25 = vrot.slane %v2773_v60, 4 }
 0x848   :  { %v3108_v28 = vmul.f32 %v3104_v21, %v4405_v59 }
 0x849   :  { %v3614_v6 = vpop.eup %3613  ;;  %v3063_v53 = vadd.f32 %v3612_v46, %v3062_v16  ;;  %v2775_v34 = vadd.f32 %v2774_v25, %v2773_v60 }
 0x84a   :  { %v3616_v11 = vpop.eup %3615  ;;  %v3043_v15 = vadd.f32 1.0, %v3614_v6  ;;  %v3112_v7 = vsel %vm305_vm6, %v3108_v28, 0.0 }
 0x84b   :  { %v3075_v3 = vmul.f32 %v3616_v11, %v3042_v56  ;;  %v3067_v19 = vsel %vm5670_vm8, %v3612_v46, %v3063_v53  ;;  %vm3080_vm9 = vweird.f32 %v3616_v11  ;;  %v2776_v16 = vrot.slane %v2775_v34, 2 }
 0x84c   :  { %3617 = vrcp.f32 %v3043_v15  ;;  %v3072_v14 = vsel %vm3069_vm7, %v3071_v23, %v3067_v19  ;;  %vm3081_vm10 = vmor %vm3079_vm13, %vm3080_vm9  ;;  %v3100_v46 = vand.u32 2147483648, %v3043_v15  ;;  %v3098_v32 = vand.u32 2147483647, %v3043_v15 }
 0x84d   :  { %v3076_v61 = vsub.f32 1.0, %v3075_v3  ;;  %v3105_v58 = vmul.f32 %v3072_v14, %v5577_v51  ;;  %vm3094_vm3 = vweird.f32 %v3043_v15  ;;  %v2777_v55 = vadd.f32 %v2776_v16, %v2775_v34 }
 0x84e   :  { %v3101_v44 = vor.u32 1.1754944e-38, %v3100_v46  ;;  %vm3099_vm12 = vcmp.eq.f32.partialorder %v3098_v32, 8.507059e+37 }
 0x84f   :  { %v3077_v63 = vmul.f32 %v3616_v11, %v3076_v61  ;;  %v3109_v56 = vmul.f32 %v3105_v58, %v4425_v54 }
 0x851   :  { %v3078_v47 = vadd.f32 %v3616_v11, %v3077_v63  ;;  %v3113_v37 = vsel %vm305_vm6, %v3109_v56, 0.0 }
 0x852   :  { %v3618_v18 = vpop.eup %3617  ;;  %v3114_v59 = vadd.f32 %v3113_v37, %v3112_v7 }
 0x853   :  { %v3082_v41 = vsel %vm3081_vm10, %v3616_v11, %v3078_v47  ;;  %v3090_v1 = vmul.f32 %v3618_v18, %v3043_v15  ;;  %vm3095_vm15 = vweird.f32 %v3618_v18  ;;  %v2778_v11 = vrot.slane %v2777_v55, 1 }
 0x854   :  { %v3087_v27 = vsel %vm3084_vm11, %v3086_v31, %v3082_v41  ;;  %vm3096_vm2 = vmor %vm3094_vm3, %vm3095_vm15 }
 0x855   :  { %v3106_v45 = vmul.f32 %v3087_v27, %v5590_v52  ;;  %v3091_v5 = vsub.f32 1.0, %v3090_v1  ;;  %v2779_v26 = vadd.f32 %v2778_v11, %v2777_v55 }
 0x857   :  { %v3092_v0 = vmul.f32 %v3618_v18, %v3091_v5  ;;  %v3110_v51 = vmul.f32 %v3106_v45, %v4434_v2  ;;  %v2781_v3 = vadd.f32 %v2779_v26, %v4539_v33 }
 0x859   :  { %v3093_v42 = vadd.f32 %v3618_v18, %v3092_v0  ;;  %v3115_v54 = vsel %vm305_vm6, %v3110_v51, 0.0 }
 0x85a   :  { %v3116_v43 = vadd.f32 %v3115_v54, %v3114_v59 }
 0x85b   :  { %v3097_v52 = vsel %vm3096_vm2, %v3618_v18, %v3093_v42 }
 0x85c   :  { %v3102_v39 = vsel %vm3099_vm12, %v3101_v44, %v3097_v52 }
 0x85d   :  { %v3107_v40 = vmul.f32 %v3102_v39, %v5640_v30 }
 0x85f   :  { %v3111_v2 = vmul.f32 %v3107_v40, %v4440_v8 }
 0x861   :  { %v3117_v6 = vsel %vm305_vm6, %v3111_v2, 0.0 }
 0x862   :  { %v3118_v22 = vadd.f32 %v3117_v6, %v3116_v43 }
 0x864   :  { %v3119_v53 = vrot.slane %v3118_v22, 4 }
 0x866   :  { %v3120_v50 = vadd.f32 %v3119_v53, %v3118_v22 }
 0x868   :  { %v3121_v10 = vrot.slane %v3120_v50, 2 }
 0x86a   :  { %v3122_v15 = vadd.f32 %v3121_v10, %v3120_v50 }
 0x86c   :  { %v3123_v36 = vrot.slane %v3122_v15, 1 }
 0x86e   :  { %v3124_v49 = vadd.f32 %v3123_v36, %v3122_v15 }
 0x870   :  { %v3125_v30 = vadd.f32 %v3124_v49, %v2781_v3 }
 0x872   :  { %v3126_v4 = vadd.f32 %v3125_v30, %v4539_v33 }
 0x874   :  { %v3145_v38 = vmul.f32 0.5, %v3126_v4 }
 0x876   :  { %v3146_v8 = vadd.f32 %v3145_v38, %v5522_v9 }
 0x878   :  { %vm3147_vm6 = vcmp.ne.f32.partialorder %v3146_v8, %v3146_v8 }
 0x879   :  { %v3148_v20 = vsel %vm3147_vm6, 0.0, %v3146_v8 }
 0x87a   :  { %3150 = vst.msk [vmem:[%s5718_s14] sm:$0x1] %vm3149_vm4, %v3148_v20 }

</bundles_post_ra>
